<compile_context>
chip_gen: v6e
topology: v6e:2x2x1
jax: 0.10.0
libtpu: 0.0.40
codegen_flags: <defaults>
</compile_context>

<pallas_src>
import numpy as np
import jax
import jax.numpy as jnp
from jax.experimental import pallas as pl
from jax.experimental.pallas import tpu as pltpu

# ----------------------- module-consistent sizes -----------------------
BATCH = 2
CHANNELS = 4
SEQ_LEN = 8            # input_size[2]  (Conv3d in_channels)
SPATIAL = 12           # input_size[0] == input_size[1]
LSTMS = 3              # lstms_shape -> (3, 3)
EMBED = 32             # embedding_size
HIDDEN = 32            # hidden_size
DS_VER = 3             # downsample_version (features per block: mean/max/min)
STEP = 5               # Conv3d out_channels
HB = WB = LSTMS
NB = HB * WB           # 9 independent per-block LSTMs
BH = SPATIAL // LSTMS  # 4  (pooling window edge)
NBH = NB * HIDDEN      # 288  stacked per-block hidden columns (n*H + h)
NBE = NB * EMBED       # 288  stacked per-block embedding columns
G4 = 4 * NBH           # 1152 total gate columns

# Recurrent-dot groups (blocks 0-3 | 4-7 | 8): aligned to 128-lane / MXU tile edges.
GROUP_BLOCKS = (4, 4, 1)
GROUP_START = (0, 4, 8)
GROUP_GW = tuple(nb * HIDDEN for nb in GROUP_BLOCKS)                 # (128, 128, 32)
GROUP_COL0 = (0, 4 * GROUP_GW[0], 4 * GROUP_GW[0] + 4 * GROUP_GW[1])  # (0, 512, 1024)
# Packed gate order (i, f, o, g) pulled from PyTorch row order (i, f, g, o).
GATE_TORCH = (0, 1, 3, 2)

SB = SEQ_LEN * BATCH   # 16  rows of the hoisted input projection (t*BATCH + b)
PB = STEP * BATCH      # 10  rows of the output (p*BATCH + b)


# ------------------------------- fused kernel ---------------------------------
def _fused_kernel(ds_ref, we_ref, be_ref, wih_ref, b_ref,
                  whh0_ref, whh1_ref, whh2_ref,
                  wc_ref, bc_ref, wo_ref, bo_ref, out_ref):
    # ds_ref  : (SEQ*B, 3*NB) f32   pooled features, rows t*B+b, cols d*NB+n
    # we_ref  : (3*NB, NBE)   f32   block-diag embedding weight
    # be_ref  : (1, NBE)      f32   embedding bias tiled per block
    # wih_ref : (NBE, G4)     bf16  block-diag LSTM W_ih^T (group-major gate columns)
    # b_ref   : (1, G4)       f32   b_ih + b_hh (same column layout)
    # whh*_ref: (gw, 4*gw)    bf16  per-group block-diag LSTM W_hh^T
    # wc_ref  : (STEP*B, SEQ*B) f32 Conv3d(1x1x1) weight, batch-block-diagonal
    # bc_ref  : (STEP*B, 1)   f32   conv bias (repeated per batch)
    # wo_ref  : (NBH, NB)     f32   block-diag out_linear weight^T
    # bo_ref  : (1,) in SMEM  f32   out_linear bias (scalar)
    # out_ref : (STEP*B, NB)  f32   rows p*B+b

    # --- shared embedding Linear + ReLU (dropout == identity, eval) ---
    emb = jnp.maximum(
        jnp.dot(ds_ref[...], we_ref[...], preferred_element_type=jnp.float32)
        + be_ref[...], 0.0)                                            # (SB, NBE)

    # --- LSTM input projection for all timesteps & all 9 blocks, hoisted out of loop ---
    gx = jnp.dot(emb.astype(jnp.bfloat16), wih_ref[...],
                 preferred_element_type=jnp.float32) + b_ref[...]      # (SB, G4)
    gxs = [gx[:, GROUP_COL0[g]:GROUP_COL0[g] + 4 * GROUP_GW[g]] for g in range(3)]
    whhs = [whh0_ref[...], whh1_ref[...], whh2_ref[...]]               # bf16

    h_prev = [None, None, None]
    c_prev = [None, None, None]
    hs_steps = []
    for t in range(SEQ_LEN):                   # short, static -> unrolled
        r0 = t * BATCH
        parts = []
        for g in range(3):
            gw = GROUP_GW[g]
            gates = gxs[g][r0:r0 + BATCH, :]
            if t > 0:                          # h == 0 at t == 0: skip the recurrent dot
                gates = gates + jnp.dot(h_prev[g].astype(jnp.bfloat16), whhs[g],
                                        preferred_element_type=jnp.float32)
            sg = jax.nn.sigmoid(gates[:, :3 * gw])     # i | f | o  (contiguous)
            gg = jnp.tanh(gates[:, 3 * gw:])           # g
            if t == 0:
                c_new = sg[:, 0:gw] * gg
            else:
                c_new = sg[:, gw:2 * gw] * c_prev[g] + sg[:, 0:gw] * gg
            h_new = sg[:, 2 * gw:3 * gw] * jnp.tanh(c_new)
            c_prev[g], h_prev[g] = c_new, h_new
            parts.append(h_new)
        hs_steps.append(jnp.concatenate(parts, axis=1))    # (B, NBH) block-major cols
    hs_mat = jnp.concatenate(hs_steps, axis=0)             # (SB, NBH), rows t*B + b

    # --- Conv3d(1x1x1) over the seq axis, batch folded: one (PB, SB) x (SB, NBH) dot ---
    z = jnp.maximum(
        jnp.dot(wc_ref[...], hs_mat, preferred_element_type=jnp.float32)
        + bc_ref[...], 0.0)                                            # (PB, NBH)

    # --- out_linear(hidden -> 1) per block, block-diagonal ---
    out = jnp.dot(z, wo_ref[...], preferred_element_type=jnp.float32) + bo_ref[0]
    out_ref[...] = out.astype(out_ref.dtype)                           # (PB, NB)


def fused_forward(ds, p):
    vmem = pl.BlockSpec(memory_space=pltpu.MemorySpace.VMEM)
    smem = pl.BlockSpec(memory_space=pltpu.MemorySpace.SMEM)
    return pl.pallas_call(
        _fused_kernel,
        out_shape=jax.ShapeDtypeStruct((PB, NB), jnp.float32),
        in_specs=[vmem] * 11 + [smem],
        out_specs=vmem,
    )(ds, p["we_bd"], p["be_t"], p["wih_bd"], p["b_bd"],
      p["whh_g0"], p["whh_g1"], p["whh_g2"],
      p["wc_big"], p["bc_big"], p["wo_bd"], p["bo"])


# ------------------------------- wrapper ---------------------------------------
def forward(x, params):
    # Channel 0 only.  Pooling + layout plumbing fused into one tiny XLA prologue;
    # the kernel receives a lane-contiguous (SEQ*B, 27) feature block.
    # TODO(synk): DownSampleForLSTM source was not provided; approximated as per-block
    # (mean, max, min) pooling producing downsample_version=3 features per block.
    x0 = x[:, 0]                                                       # (B, S, 12, 12)
    xb = x0.reshape(BATCH, SEQ_LEN, HB, BH, WB, BH)
    pooled = jnp.stack([xb.mean(axis=(3, 5)), xb.max(axis=(3, 5)), xb.min(axis=(3, 5))],
                       axis=2)                                         # (B, S, 3, HB, WB)
    ds = pooled.reshape(BATCH, SEQ_LEN, DS_VER * NB)                   # cols d*NB + n
    ds = jnp.transpose(ds, (1, 0, 2)).reshape(SB, DS_VER * NB)         # rows t*B + b
    out = fused_forward(ds, params)                                    # (PB, NB), rows p*B+b
    return out.reshape(STEP, BATCH, HB, WB)                            # == torch .squeeze()


# ------------------------------- parameters ------------------------------------
def init_raw_params(key):
    ks = jax.random.split(key, 10)
    s = 0.1
    return {
        "we":  jax.random.normal(ks[0], (EMBED, DS_VER), jnp.float32) * s,   # Linear(ds->embed)
        "be":  jax.random.normal(ks[1], (EMBED,), jnp.float32) * s,
        "wih": jax.random.normal(ks[2], (NB, 4 * HIDDEN, EMBED), jnp.float32) * s,   # per-block LSTM
        "whh": jax.random.normal(ks[3], (NB, 4 * HIDDEN, HIDDEN), jnp.float32) * s,
        "bih": jax.random.normal(ks[4], (NB, 4 * HIDDEN), jnp.float32) * s,
        "bhh": jax.random.normal(ks[5], (NB, 4 * HIDDEN), jnp.float32) * s,
        "wc":  jax.random.normal(ks[6], (STEP, SEQ_LEN), jnp.float32) * s,   # Conv3d(seq, step, 1)
        "bc":  jax.random.normal(ks[7], (STEP,), jnp.float32) * s,
        "wo":  jax.random.normal(ks[8], (1, HIDDEN), jnp.float32) * s,       # Linear(hidden, 1)
        "bo":  jax.random.normal(ks[9], (1,), jnp.float32) * s,
    }


def pack_params(raw):
    """Pack per-block weights into block-diagonal, group-major gate layout."""
    we = np.asarray(raw["we"], np.float32)
    wih = np.asarray(raw["wih"], np.float32)
    whh = np.asarray(raw["whh"], np.float32)
    wo = np.asarray(raw["wo"], np.float32)
    bsum = np.asarray(raw["bih"], np.float32) + np.asarray(raw["bhh"], np.float32)

    we_bd = np.zeros((DS_VER * NB, NBE), np.float32)
    wih_bd = np.zeros((NBE, G4), np.float32)
    whh_g = [np.zeros((GROUP_GW[g], 4 * GROUP_GW[g]), np.float32) for g in range(3)]
    b_bd = np.zeros((1, G4), np.float32)
    wo_bd = np.zeros((NBH, NB), np.float32)

    for n in range(NB):
        g = 0 if n < 4 else (1 if n < 8 else 2)
        k = n - GROUP_START[g]
        gw = GROUP_GW[g]
        for d in range(DS_VER):
            we_bd[d * NB + n, n * EMBED:(n + 1) * EMBED] = we[:, d]
        for gp, gt in enumerate(GATE_TORCH):             # packed (i, f, o, g)
            rows = slice(gt * HIDDEN, (gt + 1) * HIDDEN)
            col0 = GROUP_COL0[g] + gp * gw + k * HIDDEN
            wih_bd[n * EMBED:(n + 1) * EMBED, col0:col0 + HIDDEN] = wih[n, rows, :].T
            whh_g[g][k * HIDDEN:(k + 1) * HIDDEN,
                     gp * gw + k * HIDDEN:gp * gw + (k + 1) * HIDDEN] = whh[n, rows, :].T
            b_bd[0, col0:col0 + HIDDEN] = bsum[n, rows]
        wo_bd[n * HIDDEN:(n + 1) * HIDDEN, n] = wo[0]

    # Batch-block-diagonal conv matrix: z[p*B+b] = sum_t wc[p,t] * h[t*B+b]
    wc_big = np.kron(np.asarray(raw["wc"], np.float32), np.eye(BATCH, dtype=np.float32))
    bc_big = np.repeat(np.asarray(raw["bc"], np.float32), BATCH).reshape(PB, 1)
    be_t = np.tile(np.asarray(raw["be"], np.float32), NB).reshape(1, NBE)

    return {
        "we_bd": jnp.asarray(we_bd),
        "be_t": jnp.asarray(be_t),
        "wih_bd": jnp.asarray(wih_bd, dtype=jnp.bfloat16),   # big weights in bf16:
        "b_bd": jnp.asarray(b_bd),                           #   single-pass MXU + half DMA
        "whh_g0": jnp.asarray(whh_g[0], dtype=jnp.bfloat16),
        "whh_g1": jnp.asarray(whh_g[1], dtype=jnp.bfloat16),
        "whh_g2": jnp.asarray(whh_g[2], dtype=jnp.bfloat16),
        "wc_big": jnp.asarray(wc_big),
        "bc_big": jnp.asarray(bc_big),
        "wo_bd": jnp.asarray(wo_bd),
        "bo": jnp.asarray(np.asarray(raw["bo"], np.float32).reshape(1,)),
    }


# ------------------------- pure-JAX reference (for checking) -------------------
def forward_reference(x, raw):
    hp = "highest"
    x0 = x[:, 0]
    xb = x0.reshape(BATCH, SEQ_LEN, HB, BH, WB, BH)
    ds = jnp.stack([xb.mean(axis=(3, 5)), xb.max(axis=(3, 5)), xb.min(axis=(3, 5))],
                   axis=-1)                                            # (B, S, HB, WB, 3)
    ds = jnp.transpose(ds, (1, 0, 2, 3, 4))                            # (S, B, HB, WB, 3)
    out = jnp.zeros((SEQ_LEN, BATCH, HB, WB, HIDDEN), jnp.float32)
    for i in range(HB):
        for j in range(WB):
            n = i * WB + j
            xe = jax.nn.relu(jnp.dot(ds[:, :, i, j, :], raw["we"].T, precision=hp) + raw["be"])
            h = jnp.zeros((BATCH, HIDDEN), jnp.float32)
            c = jnp.zeros((BATCH, HIDDEN), jnp.float32)
            hs = []
            for t in range(SEQ_LEN):
                g = (jnp.dot(xe[t], raw["wih"][n].T, precision=hp) + raw["bih"][n]
                     + jnp.dot(h, raw["whh"][n].T, precision=hp) + raw["bhh"][n])
                ig = jax.nn.sigmoid(g[:, 0 * HIDDEN:1 * HIDDEN])
                fg = jax.nn.sigmoid(g[:, 1 * HIDDEN:2 * HIDDEN])
                gg = jnp.tanh(g[:, 2 * HIDDEN:3 * HIDDEN])
                og = jax.nn.sigmoid(g[:, 3 * HIDDEN:4 * HIDDEN])
                c = fg * c + ig * gg
                h = og * jnp.tanh(c)
                hs.append(h)
            out = out.at[:, :, i, j, :].set(jnp.stack(hs, axis=0))
    perm = jnp.transpose(out, (1, 0, 2, 3, 4))                         # (B, S, HB, WB, H)
    z = jnp.einsum("pt,btijh->bpijh", raw["wc"], perm, precision=hp)
    z = jax.nn.relu(z + raw["bc"].reshape(1, STEP, 1, 1, 1))
    fin = jnp.transpose(z, (1, 0, 2, 3, 4))                            # (STEP, B, HB, WB, H)
    return jnp.einsum("pbijh,h->pbij", fin, raw["wo"][0], precision=hp) + raw["bo"][0]


if __name__ == "__main__":
    key = jax.random.PRNGKey(0)
    xkey, pkey = jax.random.split(key)
    x = jax.random.normal(xkey, (BATCH, CHANNELS, SEQ_LEN, SPATIAL, SPATIAL), jnp.float32)
    raw = init_raw_params(pkey)
    params = pack_params(raw)

    out = jax.block_until_ready(jax.jit(forward)(x, params))
    assert out.shape == (STEP, BATCH, HB, WB), out.shape
    assert bool(jnp.all(jnp.isfinite(out)))

    # bf16 MXU operands for the LSTM weights define the numeric regime (reference runs
    # at precision="highest"), so the tolerance is kept appropriately loose.
    ref = jax.block_until_ready(jax.jit(forward_reference)(x, raw))
    np.testing.assert_allclose(np.asarray(out), np.asarray(ref), rtol=5e-2, atol=1e-2)

    print("KERNEL_OK")
</pallas_src>

<mosaic_0001>
module attributes {stable_mosaic.version = 11 : i64} {
  func.func @_fused_kernel(%arg0: memref<16x27xf32, #tpu.memory_space<vmem>>, %arg1: memref<27x288xf32, #tpu.memory_space<vmem>>, %arg2: memref<1x288xf32, #tpu.memory_space<vmem>>, %arg3: memref<288x1152xbf16, #tpu.memory_space<vmem>>, %arg4: memref<1x1152xf32, #tpu.memory_space<vmem>>, %arg5: memref<128x512xbf16, #tpu.memory_space<vmem>>, %arg6: memref<128x512xbf16, #tpu.memory_space<vmem>>, %arg7: memref<32x128xbf16, #tpu.memory_space<vmem>>, %arg8: memref<10x16xf32, #tpu.memory_space<vmem>>, %arg9: memref<10x1xf32, #tpu.memory_space<vmem>>, %arg10: memref<288x9xf32, #tpu.memory_space<vmem>>, %arg11: memref<1xf32, #tpu.memory_space<smem>>, %arg12: memref<10x9xf32, #tpu.memory_space<vmem>>) attributes {dimension_semantics = [], scalar_prefetch = 0 : i64, scratch_operands = 0 : i64, tpu.core_type = #tpu.core_type<tc>} {
    %c0 = arith.constant 0 : index
    %c0_0 = arith.constant 0 : index
    %0 = vector.load %arg0[%c0, %c0_0] : memref<16x27xf32, #tpu.memory_space<vmem>>, vector<16x27xf32>
    %c0_1 = arith.constant 0 : index
    %c0_2 = arith.constant 0 : index
    %1 = vector.load %arg1[%c0_1, %c0_2] : memref<27x288xf32, #tpu.memory_space<vmem>>, vector<27x288xf32>
    %cst = arith.constant dense<0.000000e+00> : vector<16x288xf32>
    %2 = tpu.matmul %0, %1, %cst {dimension_numbers = #tpu.dot_dimension_numbers<[1], [0], [0], [1], [0, 0, 1, 1], [], []>} : vector<16x27xf32>, vector<27x288xf32>, vector<16x288xf32> -> vector<16x288xf32>
    %c0_3 = arith.constant 0 : index
    %c0_4 = arith.constant 0 : index
    %3 = vector.load %arg2[%c0_3, %c0_4] : memref<1x288xf32, #tpu.memory_space<vmem>>, vector<1x288xf32>
    %4 = vector.broadcast %3 : vector<1x288xf32> to vector<16x288xf32>
    %5 = arith.addf %2, %4 : vector<16x288xf32>
    %cst_5 = arith.constant 0.000000e+00 : f32
    %6 = vector.broadcast %cst_5 : f32 to vector<16x288xf32>
    %7 = arith.maximumf %5, %6 : vector<16x288xf32>
    %8 = arith.truncf %7 : vector<16x288xf32> to vector<16x288xbf16>
    %c0_6 = arith.constant 0 : index
    %c0_7 = arith.constant 0 : index
    %9 = vector.load %arg3[%c0_6, %c0_7] : memref<288x1152xbf16, #tpu.memory_space<vmem>>, vector<288x1152xbf16>
    %cst_8 = arith.constant dense<0.000000e+00> : vector<16x1152xf32>
    %10 = tpu.matmul %8, %9, %cst_8 {dimension_numbers = #tpu.dot_dimension_numbers<[1], [0], [0], [1], [0, 0, 1, 1], [], []>} : vector<16x288xbf16>, vector<288x1152xbf16>, vector<16x1152xf32> -> vector<16x1152xf32>
    %c0_9 = arith.constant 0 : index
    %c0_10 = arith.constant 0 : index
    %11 = vector.load %arg4[%c0_9, %c0_10] : memref<1x1152xf32, #tpu.memory_space<vmem>>, vector<1x1152xf32>
    %12 = vector.broadcast %11 : vector<1x1152xf32> to vector<16x1152xf32>
    %13 = arith.addf %10, %12 : vector<16x1152xf32>
    %14 = vector.extract_strided_slice %13 {offsets = [0, 0], sizes = [16, 512], strides = [1, 1]} : vector<16x1152xf32> to vector<16x512xf32>
    %15 = vector.extract_strided_slice %13 {offsets = [0, 512], sizes = [16, 512], strides = [1, 1]} : vector<16x1152xf32> to vector<16x512xf32>
    %16 = vector.extract_strided_slice %13 {offsets = [0, 1024], sizes = [16, 128], strides = [1, 1]} : vector<16x1152xf32> to vector<16x128xf32>
    %c0_11 = arith.constant 0 : index
    %c0_12 = arith.constant 0 : index
    %17 = vector.load %arg5[%c0_11, %c0_12] : memref<128x512xbf16, #tpu.memory_space<vmem>>, vector<128x512xbf16>
    %c0_13 = arith.constant 0 : index
    %c0_14 = arith.constant 0 : index
    %18 = vector.load %arg6[%c0_13, %c0_14] : memref<128x512xbf16, #tpu.memory_space<vmem>>, vector<128x512xbf16>
    %c0_15 = arith.constant 0 : index
    %c0_16 = arith.constant 0 : index
    %19 = vector.load %arg7[%c0_15, %c0_16] : memref<32x128xbf16, #tpu.memory_space<vmem>>, vector<32x128xbf16>
    %20 = vector.extract_strided_slice %14 {offsets = [0, 0], sizes = [2, 512], strides = [1, 1]} : vector<16x512xf32> to vector<2x512xf32>
    %21 = vector.extract_strided_slice %20 {offsets = [0, 0], sizes = [2, 384], strides = [1, 1]} : vector<2x512xf32> to vector<2x384xf32>
    %22 = arith.negf %21 : vector<2x384xf32>
    %23 = math.exp %22 : vector<2x384xf32>
    %cst_17 = arith.constant 1.000000e+00 : f32
    %24 = vector.broadcast %cst_17 : f32 to vector<2x384xf32>
    %25 = arith.addf %24, %23 : vector<2x384xf32>
    %26 = arith.divf %24, %25 : vector<2x384xf32>
    %27 = vector.extract_strided_slice %20 {offsets = [0, 384], sizes = [2, 128], strides = [1, 1]} : vector<2x512xf32> to vector<2x128xf32>
    %28 = math.tanh %27 : vector<2x128xf32>
    %29 = vector.extract_strided_slice %26 {offsets = [0, 0], sizes = [2, 128], strides = [1, 1]} : vector<2x384xf32> to vector<2x128xf32>
    %30 = arith.mulf %29, %28 : vector<2x128xf32>
    %31 = vector.extract_strided_slice %26 {offsets = [0, 256], sizes = [2, 128], strides = [1, 1]} : vector<2x384xf32> to vector<2x128xf32>
    %32 = math.tanh %30 : vector<2x128xf32>
    %33 = arith.mulf %31, %32 : vector<2x128xf32>
    %34 = vector.extract_strided_slice %15 {offsets = [0, 0], sizes = [2, 512], strides = [1, 1]} : vector<16x512xf32> to vector<2x512xf32>
    %35 = vector.extract_strided_slice %34 {offsets = [0, 0], sizes = [2, 384], strides = [1, 1]} : vector<2x512xf32> to vector<2x384xf32>
    %36 = arith.negf %35 : vector<2x384xf32>
    %37 = math.exp %36 : vector<2x384xf32>
    %cst_18 = arith.constant 1.000000e+00 : f32
    %38 = vector.broadcast %cst_18 : f32 to vector<2x384xf32>
    %39 = arith.addf %38, %37 : vector<2x384xf32>
    %40 = arith.divf %38, %39 : vector<2x384xf32>
    %41 = vector.extract_strided_slice %34 {offsets = [0, 384], sizes = [2, 128], strides = [1, 1]} : vector<2x512xf32> to vector<2x128xf32>
    %42 = math.tanh %41 : vector<2x128xf32>
    %43 = vector.extract_strided_slice %40 {offsets = [0, 0], sizes = [2, 128], strides = [1, 1]} : vector<2x384xf32> to vector<2x128xf32>
    %44 = arith.mulf %43, %42 : vector<2x128xf32>
    %45 = vector.extract_strided_slice %40 {offsets = [0, 256], sizes = [2, 128], strides = [1, 1]} : vector<2x384xf32> to vector<2x128xf32>
    %46 = math.tanh %44 : vector<2x128xf32>
    %47 = arith.mulf %45, %46 : vector<2x128xf32>
    %48 = vector.extract_strided_slice %16 {offsets = [0, 0], sizes = [2, 128], strides = [1, 1]} : vector<16x128xf32> to vector<2x128xf32>
    %49 = vector.extract_strided_slice %48 {offsets = [0, 0], sizes = [2, 96], strides = [1, 1]} : vector<2x128xf32> to vector<2x96xf32>
    %50 = arith.negf %49 : vector<2x96xf32>
    %51 = math.exp %50 : vector<2x96xf32>
    %cst_19 = arith.constant 1.000000e+00 : f32
    %52 = vector.broadcast %cst_19 : f32 to vector<2x96xf32>
    %53 = arith.addf %52, %51 : vector<2x96xf32>
    %54 = arith.divf %52, %53 : vector<2x96xf32>
    %55 = vector.extract_strided_slice %48 {offsets = [0, 96], sizes = [2, 32], strides = [1, 1]} : vector<2x128xf32> to vector<2x32xf32>
    %56 = math.tanh %55 : vector<2x32xf32>
    %57 = vector.extract_strided_slice %54 {offsets = [0, 0], sizes = [2, 32], strides = [1, 1]} : vector<2x96xf32> to vector<2x32xf32>
    %58 = arith.mulf %57, %56 : vector<2x32xf32>
    %59 = vector.extract_strided_slice %54 {offsets = [0, 64], sizes = [2, 32], strides = [1, 1]} : vector<2x96xf32> to vector<2x32xf32>
    %60 = math.tanh %58 : vector<2x32xf32>
    %61 = arith.mulf %59, %60 : vector<2x32xf32>
    %62 = tpu.concatenate %33, %47, %61 in 1 : vector<2x128xf32>, vector<2x128xf32>, vector<2x32xf32> -> vector<2x288xf32>
    %63 = vector.extract_strided_slice %14 {offsets = [2, 0], sizes = [2, 512], strides = [1, 1]} : vector<16x512xf32> to vector<2x512xf32>
    %64 = arith.truncf %33 : vector<2x128xf32> to vector<2x128xbf16>
    %cst_20 = arith.constant dense<0.000000e+00> : vector<2x512xf32>
    %65 = tpu.matmul %64, %17, %cst_20 {dimension_numbers = #tpu.dot_dimension_numbers<[1], [0], [0], [1], [0, 0, 1, 1], [], []>} : vector<2x128xbf16>, vector<128x512xbf16>, vector<2x512xf32> -> vector<2x512xf32>
    %66 = arith.addf %63, %65 : vector<2x512xf32>
    %67 = vector.extract_strided_slice %66 {offsets = [0, 0], sizes = [2, 384], strides = [1, 1]} : vector<2x512xf32> to vector<2x384xf32>
    %68 = arith.negf %67 : vector<2x384xf32>
    %69 = math.exp %68 : vector<2x384xf32>
    %cst_21 = arith.constant 1.000000e+00 : f32
    %70 = vector.broadcast %cst_21 : f32 to vector<2x384xf32>
    %71 = arith.addf %70, %69 : vector<2x384xf32>
    %72 = arith.divf %70, %71 : vector<2x384xf32>
    %73 = vector.extract_strided_slice %66 {offsets = [0, 384], sizes = [2, 128], strides = [1, 1]} : vector<2x512xf32> to vector<2x128xf32>
    %74 = math.tanh %73 : vector<2x128xf32>
    %75 = vector.extract_strided_slice %72 {offsets = [0, 128], sizes = [2, 128], strides = [1, 1]} : vector<2x384xf32> to vector<2x128xf32>
    %76 = arith.mulf %75, %30 : vector<2x128xf32>
    %77 = vector.extract_strided_slice %72 {offsets = [0, 0], sizes = [2, 128], strides = [1, 1]} : vector<2x384xf32> to vector<2x128xf32>
    %78 = arith.mulf %77, %74 : vector<2x128xf32>
    %79 = arith.addf %76, %78 : vector<2x128xf32>
    %80 = vector.extract_strided_slice %72 {offsets = [0, 256], sizes = [2, 128], strides = [1, 1]} : vector<2x384xf32> to vector<2x128xf32>
    %81 = math.tanh %79 : vector<2x128xf32>
    %82 = arith.mulf %80, %81 : vector<2x128xf32>
    %83 = vector.extract_strided_slice %15 {offsets = [2, 0], sizes = [2, 512], strides = [1, 1]} : vector<16x512xf32> to vector<2x512xf32>
    %84 = arith.truncf %47 : vector<2x128xf32> to vector<2x128xbf16>
    %cst_22 = arith.constant dense<0.000000e+00> : vector<2x512xf32>
    %85 = tpu.matmul %84, %18, %cst_22 {dimension_numbers = #tpu.dot_dimension_numbers<[1], [0], [0], [1], [0, 0, 1, 1], [], []>} : vector<2x128xbf16>, vector<128x512xbf16>, vector<2x512xf32> -> vector<2x512xf32>
    %86 = arith.addf %83, %85 : vector<2x512xf32>
    %87 = vector.extract_strided_slice %86 {offsets = [0, 0], sizes = [2, 384], strides = [1, 1]} : vector<2x512xf32> to vector<2x384xf32>
    %88 = arith.negf %87 : vector<2x384xf32>
    %89 = math.exp %88 : vector<2x384xf32>
    %cst_23 = arith.constant 1.000000e+00 : f32
    %90 = vector.broadcast %cst_23 : f32 to vector<2x384xf32>
    %91 = arith.addf %90, %89 : vector<2x384xf32>
    %92 = arith.divf %90, %91 : vector<2x384xf32>
    %93 = vector.extract_strided_slice %86 {offsets = [0, 384], sizes = [2, 128], strides = [1, 1]} : vector<2x512xf32> to vector<2x128xf32>
    %94 = math.tanh %93 : vector<2x128xf32>
    %95 = vector.extract_strided_slice %92 {offsets = [0, 128], sizes = [2, 128], strides = [1, 1]} : vector<2x384xf32> to vector<2x128xf32>
    %96 = arith.mulf %95, %44 : vector<2x128xf32>
    %97 = vector.extract_strided_slice %92 {offsets = [0, 0], sizes = [2, 128], strides = [1, 1]} : vector<2x384xf32> to vector<2x128xf32>
    %98 = arith.mulf %97, %94 : vector<2x128xf32>
    %99 = arith.addf %96, %98 : vector<2x128xf32>
    %100 = vector.extract_strided_slice %92 {offsets = [0, 256], sizes = [2, 128], strides = [1, 1]} : vector<2x384xf32> to vector<2x128xf32>
    %101 = math.tanh %99 : vector<2x128xf32>
    %102 = arith.mulf %100, %101 : vector<2x128xf32>
    %103 = vector.extract_strided_slice %16 {offsets = [2, 0], sizes = [2, 128], strides = [1, 1]} : vector<16x128xf32> to vector<2x128xf32>
    %104 = arith.truncf %61 : vector<2x32xf32> to vector<2x32xbf16>
    %cst_24 = arith.constant dense<0.000000e+00> : vector<2x128xf32>
    %105 = tpu.matmul %104, %19, %cst_24 {dimension_numbers = #tpu.dot_dimension_numbers<[1], [0], [0], [1], [0, 0, 1, 1], [], []>} : vector<2x32xbf16>, vector<32x128xbf16>, vector<2x128xf32> -> vector<2x128xf32>
    %106 = arith.addf %103, %105 : vector<2x128xf32>
    %107 = vector.extract_strided_slice %106 {offsets = [0, 0], sizes = [2, 96], strides = [1, 1]} : vector<2x128xf32> to vector<2x96xf32>
    %108 = arith.negf %107 : vector<2x96xf32>
    %109 = math.exp %108 : vector<2x96xf32>
    %cst_25 = arith.constant 1.000000e+00 : f32
    %110 = vector.broadcast %cst_25 : f32 to vector<2x96xf32>
    %111 = arith.addf %110, %109 : vector<2x96xf32>
    %112 = arith.divf %110, %111 : vector<2x96xf32>
    %113 = vector.extract_strided_slice %106 {offsets = [0, 96], sizes = [2, 32], strides = [1, 1]} : vector<2x128xf32> to vector<2x32xf32>
    %114 = math.tanh %113 : vector<2x32xf32>
    %115 = vector.extract_strided_slice %112 {offsets = [0, 32], sizes = [2, 32], strides = [1, 1]} : vector<2x96xf32> to vector<2x32xf32>
    %116 = arith.mulf %115, %58 : vector<2x32xf32>
    %117 = vector.extract_strided_slice %112 {offsets = [0, 0], sizes = [2, 32], strides = [1, 1]} : vector<2x96xf32> to vector<2x32xf32>
    %118 = arith.mulf %117, %114 : vector<2x32xf32>
    %119 = arith.addf %116, %118 : vector<2x32xf32>
    %120 = vector.extract_strided_slice %112 {offsets = [0, 64], sizes = [2, 32], strides = [1, 1]} : vector<2x96xf32> to vector<2x32xf32>
    %121 = math.tanh %119 : vector<2x32xf32>
    %122 = arith.mulf %120, %121 : vector<2x32xf32>
    %123 = tpu.concatenate %82, %102, %122 in 1 : vector<2x128xf32>, vector<2x128xf32>, vector<2x32xf32> -> vector<2x288xf32>
    %124 = vector.extract_strided_slice %14 {offsets = [4, 0], sizes = [2, 512], strides = [1, 1]} : vector<16x512xf32> to vector<2x512xf32>
    %125 = arith.truncf %82 : vector<2x128xf32> to vector<2x128xbf16>
    %cst_26 = arith.constant dense<0.000000e+00> : vector<2x512xf32>
    %126 = tpu.matmul %125, %17, %cst_26 {dimension_numbers = #tpu.dot_dimension_numbers<[1], [0], [0], [1], [0, 0, 1, 1], [], []>} : vector<2x128xbf16>, vector<128x512xbf16>, vector<2x512xf32> -> vector<2x512xf32>
    %127 = arith.addf %124, %126 : vector<2x512xf32>
    %128 = vector.extract_strided_slice %127 {offsets = [0, 0], sizes = [2, 384], strides = [1, 1]} : vector<2x512xf32> to vector<2x384xf32>
    %129 = arith.negf %128 : vector<2x384xf32>
    %130 = math.exp %129 : vector<2x384xf32>
    %cst_27 = arith.constant 1.000000e+00 : f32
    %131 = vector.broadcast %cst_27 : f32 to vector<2x384xf32>
    %132 = arith.addf %131, %130 : vector<2x384xf32>
    %133 = arith.divf %131, %132 : vector<2x384xf32>
    %134 = vector.extract_strided_slice %127 {offsets = [0, 384], sizes = [2, 128], strides = [1, 1]} : vector<2x512xf32> to vector<2x128xf32>
    %135 = math.tanh %134 : vector<2x128xf32>
    %136 = vector.extract_strided_slice %133 {offsets = [0, 128], sizes = [2, 128], strides = [1, 1]} : vector<2x384xf32> to vector<2x128xf32>
    %137 = arith.mulf %136, %79 : vector<2x128xf32>
    %138 = vector.extract_strided_slice %133 {offsets = [0, 0], sizes = [2, 128], strides = [1, 1]} : vector<2x384xf32> to vector<2x128xf32>
    %139 = arith.mulf %138, %135 : vector<2x128xf32>
    %140 = arith.addf %137, %139 : vector<2x128xf32>
    %141 = vector.extract_strided_slice %133 {offsets = [0, 256], sizes = [2, 128], strides = [1, 1]} : vector<2x384xf32> to vector<2x128xf32>
    %142 = math.tanh %140 : vector<2x128xf32>
    %143 = arith.mulf %141, %142 : vector<2x128xf32>
    %144 = vector.extract_strided_slice %15 {offsets = [4, 0], sizes = [2, 512], strides = [1, 1]} : vector<16x512xf32> to vector<2x512xf32>
    %145 = arith.truncf %102 : vector<2x128xf32> to vector<2x128xbf16>
    %cst_28 = arith.constant dense<0.000000e+00> : vector<2x512xf32>
    %146 = tpu.matmul %145, %18, %cst_28 {dimension_numbers = #tpu.dot_dimension_numbers<[1], [0], [0], [1], [0, 0, 1, 1], [], []>} : vector<2x128xbf16>, vector<128x512xbf16>, vector<2x512xf32> -> vector<2x512xf32>
    %147 = arith.addf %144, %146 : vector<2x512xf32>
    %148 = vector.extract_strided_slice %147 {offsets = [0, 0], sizes = [2, 384], strides = [1, 1]} : vector<2x512xf32> to vector<2x384xf32>
    %149 = arith.negf %148 : vector<2x384xf32>
    %150 = math.exp %149 : vector<2x384xf32>
    %cst_29 = arith.constant 1.000000e+00 : f32
    %151 = vector.broadcast %cst_29 : f32 to vector<2x384xf32>
    %152 = arith.addf %151, %150 : vector<2x384xf32>
    %153 = arith.divf %151, %152 : vector<2x384xf32>
    %154 = vector.extract_strided_slice %147 {offsets = [0, 384], sizes = [2, 128], strides = [1, 1]} : vector<2x512xf32> to vector<2x128xf32>
    %155 = math.tanh %154 : vector<2x128xf32>
    %156 = vector.extract_strided_slice %153 {offsets = [0, 128], sizes = [2, 128], strides = [1, 1]} : vector<2x384xf32> to vector<2x128xf32>
    %157 = arith.mulf %156, %99 : vector<2x128xf32>
    %158 = vector.extract_strided_slice %153 {offsets = [0, 0], sizes = [2, 128], strides = [1, 1]} : vector<2x384xf32> to vector<2x128xf32>
    %159 = arith.mulf %158, %155 : vector<2x128xf32>
    %160 = arith.addf %157, %159 : vector<2x128xf32>
    %161 = vector.extract_strided_slice %153 {offsets = [0, 256], sizes = [2, 128], strides = [1, 1]} : vector<2x384xf32> to vector<2x128xf32>
    %162 = math.tanh %160 : vector<2x128xf32>
    %163 = arith.mulf %161, %162 : vector<2x128xf32>
    %164 = vector.extract_strided_slice %16 {offsets = [4, 0], sizes = [2, 128], strides = [1, 1]} : vector<16x128xf32> to vector<2x128xf32>
    %165 = arith.truncf %122 : vector<2x32xf32> to vector<2x32xbf16>
    %cst_30 = arith.constant dense<0.000000e+00> : vector<2x128xf32>
    %166 = tpu.matmul %165, %19, %cst_30 {dimension_numbers = #tpu.dot_dimension_numbers<[1], [0], [0], [1], [0, 0, 1, 1], [], []>} : vector<2x32xbf16>, vector<32x128xbf16>, vector<2x128xf32> -> vector<2x128xf32>
    %167 = arith.addf %164, %166 : vector<2x128xf32>
    %168 = vector.extract_strided_slice %167 {offsets = [0, 0], sizes = [2, 96], strides = [1, 1]} : vector<2x128xf32> to vector<2x96xf32>
    %169 = arith.negf %168 : vector<2x96xf32>
    %170 = math.exp %169 : vector<2x96xf32>
    %cst_31 = arith.constant 1.000000e+00 : f32
    %171 = vector.broadcast %cst_31 : f32 to vector<2x96xf32>
    %172 = arith.addf %171, %170 : vector<2x96xf32>
    %173 = arith.divf %171, %172 : vector<2x96xf32>
    %174 = vector.extract_strided_slice %167 {offsets = [0, 96], sizes = [2, 32], strides = [1, 1]} : vector<2x128xf32> to vector<2x32xf32>
    %175 = math.tanh %174 : vector<2x32xf32>
    %176 = vector.extract_strided_slice %173 {offsets = [0, 32], sizes = [2, 32], strides = [1, 1]} : vector<2x96xf32> to vector<2x32xf32>
    %177 = arith.mulf %176, %119 : vector<2x32xf32>
    %178 = vector.extract_strided_slice %173 {offsets = [0, 0], sizes = [2, 32], strides = [1, 1]} : vector<2x96xf32> to vector<2x32xf32>
    %179 = arith.mulf %178, %175 : vector<2x32xf32>
    %180 = arith.addf %177, %179 : vector<2x32xf32>
    %181 = vector.extract_strided_slice %173 {offsets = [0, 64], sizes = [2, 32], strides = [1, 1]} : vector<2x96xf32> to vector<2x32xf32>
    %182 = math.tanh %180 : vector<2x32xf32>
    %183 = arith.mulf %181, %182 : vector<2x32xf32>
    %184 = tpu.concatenate %143, %163, %183 in 1 : vector<2x128xf32>, vector<2x128xf32>, vector<2x32xf32> -> vector<2x288xf32>
    %185 = vector.extract_strided_slice %14 {offsets = [6, 0], sizes = [2, 512], strides = [1, 1]} : vector<16x512xf32> to vector<2x512xf32>
    %186 = arith.truncf %143 : vector<2x128xf32> to vector<2x128xbf16>
    %cst_32 = arith.constant dense<0.000000e+00> : vector<2x512xf32>
    %187 = tpu.matmul %186, %17, %cst_32 {dimension_numbers = #tpu.dot_dimension_numbers<[1], [0], [0], [1], [0, 0, 1, 1], [], []>} : vector<2x128xbf16>, vector<128x512xbf16>, vector<2x512xf32> -> vector<2x512xf32>
    %188 = arith.addf %185, %187 : vector<2x512xf32>
    %189 = vector.extract_strided_slice %188 {offsets = [0, 0], sizes = [2, 384], strides = [1, 1]} : vector<2x512xf32> to vector<2x384xf32>
    %190 = arith.negf %189 : vector<2x384xf32>
    %191 = math.exp %190 : vector<2x384xf32>
    %cst_33 = arith.constant 1.000000e+00 : f32
    %192 = vector.broadcast %cst_33 : f32 to vector<2x384xf32>
    %193 = arith.addf %192, %191 : vector<2x384xf32>
    %194 = arith.divf %192, %193 : vector<2x384xf32>
    %195 = vector.extract_strided_slice %188 {offsets = [0, 384], sizes = [2, 128], strides = [1, 1]} : vector<2x512xf32> to vector<2x128xf32>
    %196 = math.tanh %195 : vector<2x128xf32>
    %197 = vector.extract_strided_slice %194 {offsets = [0, 128], sizes = [2, 128], strides = [1, 1]} : vector<2x384xf32> to vector<2x128xf32>
    %198 = arith.mulf %197, %140 : vector<2x128xf32>
    %199 = vector.extract_strided_slice %194 {offsets = [0, 0], sizes = [2, 128], strides = [1, 1]} : vector<2x384xf32> to vector<2x128xf32>
    %200 = arith.mulf %199, %196 : vector<2x128xf32>
    %201 = arith.addf %198, %200 : vector<2x128xf32>
    %202 = vector.extract_strided_slice %194 {offsets = [0, 256], sizes = [2, 128], strides = [1, 1]} : vector<2x384xf32> to vector<2x128xf32>
    %203 = math.tanh %201 : vector<2x128xf32>
    %204 = arith.mulf %202, %203 : vector<2x128xf32>
    %205 = vector.extract_strided_slice %15 {offsets = [6, 0], sizes = [2, 512], strides = [1, 1]} : vector<16x512xf32> to vector<2x512xf32>
    %206 = arith.truncf %163 : vector<2x128xf32> to vector<2x128xbf16>
    %cst_34 = arith.constant dense<0.000000e+00> : vector<2x512xf32>
    %207 = tpu.matmul %206, %18, %cst_34 {dimension_numbers = #tpu.dot_dimension_numbers<[1], [0], [0], [1], [0, 0, 1, 1], [], []>} : vector<2x128xbf16>, vector<128x512xbf16>, vector<2x512xf32> -> vector<2x512xf32>
    %208 = arith.addf %205, %207 : vector<2x512xf32>
    %209 = vector.extract_strided_slice %208 {offsets = [0, 0], sizes = [2, 384], strides = [1, 1]} : vector<2x512xf32> to vector<2x384xf32>
    %210 = arith.negf %209 : vector<2x384xf32>
    %211 = math.exp %210 : vector<2x384xf32>
    %cst_35 = arith.constant 1.000000e+00 : f32
    %212 = vector.broadcast %cst_35 : f32 to vector<2x384xf32>
    %213 = arith.addf %212, %211 : vector<2x384xf32>
    %214 = arith.divf %212, %213 : vector<2x384xf32>
    %215 = vector.extract_strided_slice %208 {offsets = [0, 384], sizes = [2, 128], strides = [1, 1]} : vector<2x512xf32> to vector<2x128xf32>
    %216 = math.tanh %215 : vector<2x128xf32>
    %217 = vector.extract_strided_slice %214 {offsets = [0, 128], sizes = [2, 128], strides = [1, 1]} : vector<2x384xf32> to vector<2x128xf32>
    %218 = arith.mulf %217, %160 : vector<2x128xf32>
    %219 = vector.extract_strided_slice %214 {offsets = [0, 0], sizes = [2, 128], strides = [1, 1]} : vector<2x384xf32> to vector<2x128xf32>
    %220 = arith.mulf %219, %216 : vector<2x128xf32>
    %221 = arith.addf %218, %220 : vector<2x128xf32>
    %222 = vector.extract_strided_slice %214 {offsets = [0, 256], sizes = [2, 128], strides = [1, 1]} : vector<2x384xf32> to vector<2x128xf32>
    %223 = math.tanh %221 : vector<2x128xf32>
    %224 = arith.mulf %222, %223 : vector<2x128xf32>
    %225 = vector.extract_strided_slice %16 {offsets = [6, 0], sizes = [2, 128], strides = [1, 1]} : vector<16x128xf32> to vector<2x128xf32>
    %226 = arith.truncf %183 : vector<2x32xf32> to vector<2x32xbf16>
    %cst_36 = arith.constant dense<0.000000e+00> : vector<2x128xf32>
    %227 = tpu.matmul %226, %19, %cst_36 {dimension_numbers = #tpu.dot_dimension_numbers<[1], [0], [0], [1], [0, 0, 1, 1], [], []>} : vector<2x32xbf16>, vector<32x128xbf16>, vector<2x128xf32> -> vector<2x128xf32>
    %228 = arith.addf %225, %227 : vector<2x128xf32>
    %229 = vector.extract_strided_slice %228 {offsets = [0, 0], sizes = [2, 96], strides = [1, 1]} : vector<2x128xf32> to vector<2x96xf32>
    %230 = arith.negf %229 : vector<2x96xf32>
    %231 = math.exp %230 : vector<2x96xf32>
    %cst_37 = arith.constant 1.000000e+00 : f32
    %232 = vector.broadcast %cst_37 : f32 to vector<2x96xf32>
    %233 = arith.addf %232, %231 : vector<2x96xf32>
    %234 = arith.divf %232, %233 : vector<2x96xf32>
    %235 = vector.extract_strided_slice %228 {offsets = [0, 96], sizes = [2, 32], strides = [1, 1]} : vector<2x128xf32> to vector<2x32xf32>
    %236 = math.tanh %235 : vector<2x32xf32>
    %237 = vector.extract_strided_slice %234 {offsets = [0, 32], sizes = [2, 32], strides = [1, 1]} : vector<2x96xf32> to vector<2x32xf32>
    %238 = arith.mulf %237, %180 : vector<2x32xf32>
    %239 = vector.extract_strided_slice %234 {offsets = [0, 0], sizes = [2, 32], strides = [1, 1]} : vector<2x96xf32> to vector<2x32xf32>
    %240 = arith.mulf %239, %236 : vector<2x32xf32>
    %241 = arith.addf %238, %240 : vector<2x32xf32>
    %242 = vector.extract_strided_slice %234 {offsets = [0, 64], sizes = [2, 32], strides = [1, 1]} : vector<2x96xf32> to vector<2x32xf32>
    %243 = math.tanh %241 : vector<2x32xf32>
    %244 = arith.mulf %242, %243 : vector<2x32xf32>
    %245 = tpu.concatenate %204, %224, %244 in 1 : vector<2x128xf32>, vector<2x128xf32>, vector<2x32xf32> -> vector<2x288xf32>
    %246 = vector.extract_strided_slice %14 {offsets = [8, 0], sizes = [2, 512], strides = [1, 1]} : vector<16x512xf32> to vector<2x512xf32>
    %247 = arith.truncf %204 : vector<2x128xf32> to vector<2x128xbf16>
    %cst_38 = arith.constant dense<0.000000e+00> : vector<2x512xf32>
    %248 = tpu.matmul %247, %17, %cst_38 {dimension_numbers = #tpu.dot_dimension_numbers<[1], [0], [0], [1], [0, 0, 1, 1], [], []>} : vector<2x128xbf16>, vector<128x512xbf16>, vector<2x512xf32> -> vector<2x512xf32>
    %249 = arith.addf %246, %248 : vector<2x512xf32>
    %250 = vector.extract_strided_slice %249 {offsets = [0, 0], sizes = [2, 384], strides = [1, 1]} : vector<2x512xf32> to vector<2x384xf32>
    %251 = arith.negf %250 : vector<2x384xf32>
    %252 = math.exp %251 : vector<2x384xf32>
    %cst_39 = arith.constant 1.000000e+00 : f32
    %253 = vector.broadcast %cst_39 : f32 to vector<2x384xf32>
    %254 = arith.addf %253, %252 : vector<2x384xf32>
    %255 = arith.divf %253, %254 : vector<2x384xf32>
    %256 = vector.extract_strided_slice %249 {offsets = [0, 384], sizes = [2, 128], strides = [1, 1]} : vector<2x512xf32> to vector<2x128xf32>
    %257 = math.tanh %256 : vector<2x128xf32>
    %258 = vector.extract_strided_slice %255 {offsets = [0, 128], sizes = [2, 128], strides = [1, 1]} : vector<2x384xf32> to vector<2x128xf32>
    %259 = arith.mulf %258, %201 : vector<2x128xf32>
    %260 = vector.extract_strided_slice %255 {offsets = [0, 0], sizes = [2, 128], strides = [1, 1]} : vector<2x384xf32> to vector<2x128xf32>
    %261 = arith.mulf %260, %257 : vector<2x128xf32>
    %262 = arith.addf %259, %261 : vector<2x128xf32>
    %263 = vector.extract_strided_slice %255 {offsets = [0, 256], sizes = [2, 128], strides = [1, 1]} : vector<2x384xf32> to vector<2x128xf32>
    %264 = math.tanh %262 : vector<2x128xf32>
    %265 = arith.mulf %263, %264 : vector<2x128xf32>
    %266 = vector.extract_strided_slice %15 {offsets = [8, 0], sizes = [2, 512], strides = [1, 1]} : vector<16x512xf32> to vector<2x512xf32>
    %267 = arith.truncf %224 : vector<2x128xf32> to vector<2x128xbf16>
    %cst_40 = arith.constant dense<0.000000e+00> : vector<2x512xf32>
    %268 = tpu.matmul %267, %18, %cst_40 {dimension_numbers = #tpu.dot_dimension_numbers<[1], [0], [0], [1], [0, 0, 1, 1], [], []>} : vector<2x128xbf16>, vector<128x512xbf16>, vector<2x512xf32> -> vector<2x512xf32>
    %269 = arith.addf %266, %268 : vector<2x512xf32>
    %270 = vector.extract_strided_slice %269 {offsets = [0, 0], sizes = [2, 384], strides = [1, 1]} : vector<2x512xf32> to vector<2x384xf32>
    %271 = arith.negf %270 : vector<2x384xf32>
    %272 = math.exp %271 : vector<2x384xf32>
    %cst_41 = arith.constant 1.000000e+00 : f32
    %273 = vector.broadcast %cst_41 : f32 to vector<2x384xf32>
    %274 = arith.addf %273, %272 : vector<2x384xf32>
    %275 = arith.divf %273, %274 : vector<2x384xf32>
    %276 = vector.extract_strided_slice %269 {offsets = [0, 384], sizes = [2, 128], strides = [1, 1]} : vector<2x512xf32> to vector<2x128xf32>
    %277 = math.tanh %276 : vector<2x128xf32>
    %278 = vector.extract_strided_slice %275 {offsets = [0, 128], sizes = [2, 128], strides = [1, 1]} : vector<2x384xf32> to vector<2x128xf32>
    %279 = arith.mulf %278, %221 : vector<2x128xf32>
    %280 = vector.extract_strided_slice %275 {offsets = [0, 0], sizes = [2, 128], strides = [1, 1]} : vector<2x384xf32> to vector<2x128xf32>
    %281 = arith.mulf %280, %277 : vector<2x128xf32>
    %282 = arith.addf %279, %281 : vector<2x128xf32>
    %283 = vector.extract_strided_slice %275 {offsets = [0, 256], sizes = [2, 128], strides = [1, 1]} : vector<2x384xf32> to vector<2x128xf32>
    %284 = math.tanh %282 : vector<2x128xf32>
    %285 = arith.mulf %283, %284 : vector<2x128xf32>
    %286 = vector.extract_strided_slice %16 {offsets = [8, 0], sizes = [2, 128], strides = [1, 1]} : vector<16x128xf32> to vector<2x128xf32>
    %287 = arith.truncf %244 : vector<2x32xf32> to vector<2x32xbf16>
    %cst_42 = arith.constant dense<0.000000e+00> : vector<2x128xf32>
    %288 = tpu.matmul %287, %19, %cst_42 {dimension_numbers = #tpu.dot_dimension_numbers<[1], [0], [0], [1], [0, 0, 1, 1], [], []>} : vector<2x32xbf16>, vector<32x128xbf16>, vector<2x128xf32> -> vector<2x128xf32>
    %289 = arith.addf %286, %288 : vector<2x128xf32>
    %290 = vector.extract_strided_slice %289 {offsets = [0, 0], sizes = [2, 96], strides = [1, 1]} : vector<2x128xf32> to vector<2x96xf32>
    %291 = arith.negf %290 : vector<2x96xf32>
    %292 = math.exp %291 : vector<2x96xf32>
    %cst_43 = arith.constant 1.000000e+00 : f32
    %293 = vector.broadcast %cst_43 : f32 to vector<2x96xf32>
    %294 = arith.addf %293, %292 : vector<2x96xf32>
    %295 = arith.divf %293, %294 : vector<2x96xf32>
    %296 = vector.extract_strided_slice %289 {offsets = [0, 96], sizes = [2, 32], strides = [1, 1]} : vector<2x128xf32> to vector<2x32xf32>
    %297 = math.tanh %296 : vector<2x32xf32>
    %298 = vector.extract_strided_slice %295 {offsets = [0, 32], sizes = [2, 32], strides = [1, 1]} : vector<2x96xf32> to vector<2x32xf32>
    %299 = arith.mulf %298, %241 : vector<2x32xf32>
    %300 = vector.extract_strided_slice %295 {offsets = [0, 0], sizes = [2, 32], strides = [1, 1]} : vector<2x96xf32> to vector<2x32xf32>
    %301 = arith.mulf %300, %297 : vector<2x32xf32>
    %302 = arith.addf %299, %301 : vector<2x32xf32>
    %303 = vector.extract_strided_slice %295 {offsets = [0, 64], sizes = [2, 32], strides = [1, 1]} : vector<2x96xf32> to vector<2x32xf32>
    %304 = math.tanh %302 : vector<2x32xf32>
    %305 = arith.mulf %303, %304 : vector<2x32xf32>
    %306 = tpu.concatenate %265, %285, %305 in 1 : vector<2x128xf32>, vector<2x128xf32>, vector<2x32xf32> -> vector<2x288xf32>
    %307 = vector.extract_strided_slice %14 {offsets = [10, 0], sizes = [2, 512], strides = [1, 1]} : vector<16x512xf32> to vector<2x512xf32>
    %308 = arith.truncf %265 : vector<2x128xf32> to vector<2x128xbf16>
    %cst_44 = arith.constant dense<0.000000e+00> : vector<2x512xf32>
    %309 = tpu.matmul %308, %17, %cst_44 {dimension_numbers = #tpu.dot_dimension_numbers<[1], [0], [0], [1], [0, 0, 1, 1], [], []>} : vector<2x128xbf16>, vector<128x512xbf16>, vector<2x512xf32> -> vector<2x512xf32>
    %310 = arith.addf %307, %309 : vector<2x512xf32>
    %311 = vector.extract_strided_slice %310 {offsets = [0, 0], sizes = [2, 384], strides = [1, 1]} : vector<2x512xf32> to vector<2x384xf32>
    %312 = arith.negf %311 : vector<2x384xf32>
    %313 = math.exp %312 : vector<2x384xf32>
    %cst_45 = arith.constant 1.000000e+00 : f32
    %314 = vector.broadcast %cst_45 : f32 to vector<2x384xf32>
    %315 = arith.addf %314, %313 : vector<2x384xf32>
    %316 = arith.divf %314, %315 : vector<2x384xf32>
    %317 = vector.extract_strided_slice %310 {offsets = [0, 384], sizes = [2, 128], strides = [1, 1]} : vector<2x512xf32> to vector<2x128xf32>
    %318 = math.tanh %317 : vector<2x128xf32>
    %319 = vector.extract_strided_slice %316 {offsets = [0, 128], sizes = [2, 128], strides = [1, 1]} : vector<2x384xf32> to vector<2x128xf32>
    %320 = arith.mulf %319, %262 : vector<2x128xf32>
    %321 = vector.extract_strided_slice %316 {offsets = [0, 0], sizes = [2, 128], strides = [1, 1]} : vector<2x384xf32> to vector<2x128xf32>
    %322 = arith.mulf %321, %318 : vector<2x128xf32>
    %323 = arith.addf %320, %322 : vector<2x128xf32>
    %324 = vector.extract_strided_slice %316 {offsets = [0, 256], sizes = [2, 128], strides = [1, 1]} : vector<2x384xf32> to vector<2x128xf32>
    %325 = math.tanh %323 : vector<2x128xf32>
    %326 = arith.mulf %324, %325 : vector<2x128xf32>
    %327 = vector.extract_strided_slice %15 {offsets = [10, 0], sizes = [2, 512], strides = [1, 1]} : vector<16x512xf32> to vector<2x512xf32>
    %328 = arith.truncf %285 : vector<2x128xf32> to vector<2x128xbf16>
    %cst_46 = arith.constant dense<0.000000e+00> : vector<2x512xf32>
    %329 = tpu.matmul %328, %18, %cst_46 {dimension_numbers = #tpu.dot_dimension_numbers<[1], [0], [0], [1], [0, 0, 1, 1], [], []>} : vector<2x128xbf16>, vector<128x512xbf16>, vector<2x512xf32> -> vector<2x512xf32>
    %330 = arith.addf %327, %329 : vector<2x512xf32>
    %331 = vector.extract_strided_slice %330 {offsets = [0, 0], sizes = [2, 384], strides = [1, 1]} : vector<2x512xf32> to vector<2x384xf32>
    %332 = arith.negf %331 : vector<2x384xf32>
    %333 = math.exp %332 : vector<2x384xf32>
    %cst_47 = arith.constant 1.000000e+00 : f32
    %334 = vector.broadcast %cst_47 : f32 to vector<2x384xf32>
    %335 = arith.addf %334, %333 : vector<2x384xf32>
    %336 = arith.divf %334, %335 : vector<2x384xf32>
    %337 = vector.extract_strided_slice %330 {offsets = [0, 384], sizes = [2, 128], strides = [1, 1]} : vector<2x512xf32> to vector<2x128xf32>
    %338 = math.tanh %337 : vector<2x128xf32>
    %339 = vector.extract_strided_slice %336 {offsets = [0, 128], sizes = [2, 128], strides = [1, 1]} : vector<2x384xf32> to vector<2x128xf32>
    %340 = arith.mulf %339, %282 : vector<2x128xf32>
    %341 = vector.extract_strided_slice %336 {offsets = [0, 0], sizes = [2, 128], strides = [1, 1]} : vector<2x384xf32> to vector<2x128xf32>
    %342 = arith.mulf %341, %338 : vector<2x128xf32>
    %343 = arith.addf %340, %342 : vector<2x128xf32>
    %344 = vector.extract_strided_slice %336 {offsets = [0, 256], sizes = [2, 128], strides = [1, 1]} : vector<2x384xf32> to vector<2x128xf32>
    %345 = math.tanh %343 : vector<2x128xf32>
    %346 = arith.mulf %344, %345 : vector<2x128xf32>
    %347 = vector.extract_strided_slice %16 {offsets = [10, 0], sizes = [2, 128], strides = [1, 1]} : vector<16x128xf32> to vector<2x128xf32>
    %348 = arith.truncf %305 : vector<2x32xf32> to vector<2x32xbf16>
    %cst_48 = arith.constant dense<0.000000e+00> : vector<2x128xf32>
    %349 = tpu.matmul %348, %19, %cst_48 {dimension_numbers = #tpu.dot_dimension_numbers<[1], [0], [0], [1], [0, 0, 1, 1], [], []>} : vector<2x32xbf16>, vector<32x128xbf16>, vector<2x128xf32> -> vector<2x128xf32>
    %350 = arith.addf %347, %349 : vector<2x128xf32>
    %351 = vector.extract_strided_slice %350 {offsets = [0, 0], sizes = [2, 96], strides = [1, 1]} : vector<2x128xf32> to vector<2x96xf32>
    %352 = arith.negf %351 : vector<2x96xf32>
    %353 = math.exp %352 : vector<2x96xf32>
    %cst_49 = arith.constant 1.000000e+00 : f32
    %354 = vector.broadcast %cst_49 : f32 to vector<2x96xf32>
    %355 = arith.addf %354, %353 : vector<2x96xf32>
    %356 = arith.divf %354, %355 : vector<2x96xf32>
    %357 = vector.extract_strided_slice %350 {offsets = [0, 96], sizes = [2, 32], strides = [1, 1]} : vector<2x128xf32> to vector<2x32xf32>
    %358 = math.tanh %357 : vector<2x32xf32>
    %359 = vector.extract_strided_slice %356 {offsets = [0, 32], sizes = [2, 32], strides = [1, 1]} : vector<2x96xf32> to vector<2x32xf32>
    %360 = arith.mulf %359, %302 : vector<2x32xf32>
    %361 = vector.extract_strided_slice %356 {offsets = [0, 0], sizes = [2, 32], strides = [1, 1]} : vector<2x96xf32> to vector<2x32xf32>
    %362 = arith.mulf %361, %358 : vector<2x32xf32>
    %363 = arith.addf %360, %362 : vector<2x32xf32>
    %364 = vector.extract_strided_slice %356 {offsets = [0, 64], sizes = [2, 32], strides = [1, 1]} : vector<2x96xf32> to vector<2x32xf32>
    %365 = math.tanh %363 : vector<2x32xf32>
    %366 = arith.mulf %364, %365 : vector<2x32xf32>
    %367 = tpu.concatenate %326, %346, %366 in 1 : vector<2x128xf32>, vector<2x128xf32>, vector<2x32xf32> -> vector<2x288xf32>
    %368 = vector.extract_strided_slice %14 {offsets = [12, 0], sizes = [2, 512], strides = [1, 1]} : vector<16x512xf32> to vector<2x512xf32>
    %369 = arith.truncf %326 : vector<2x128xf32> to vector<2x128xbf16>
    %cst_50 = arith.constant dense<0.000000e+00> : vector<2x512xf32>
    %370 = tpu.matmul %369, %17, %cst_50 {dimension_numbers = #tpu.dot_dimension_numbers<[1], [0], [0], [1], [0, 0, 1, 1], [], []>} : vector<2x128xbf16>, vector<128x512xbf16>, vector<2x512xf32> -> vector<2x512xf32>
    %371 = arith.addf %368, %370 : vector<2x512xf32>
    %372 = vector.extract_strided_slice %371 {offsets = [0, 0], sizes = [2, 384], strides = [1, 1]} : vector<2x512xf32> to vector<2x384xf32>
    %373 = arith.negf %372 : vector<2x384xf32>
    %374 = math.exp %373 : vector<2x384xf32>
    %cst_51 = arith.constant 1.000000e+00 : f32
    %375 = vector.broadcast %cst_51 : f32 to vector<2x384xf32>
    %376 = arith.addf %375, %374 : vector<2x384xf32>
    %377 = arith.divf %375, %376 : vector<2x384xf32>
    %378 = vector.extract_strided_slice %371 {offsets = [0, 384], sizes = [2, 128], strides = [1, 1]} : vector<2x512xf32> to vector<2x128xf32>
    %379 = math.tanh %378 : vector<2x128xf32>
    %380 = vector.extract_strided_slice %377 {offsets = [0, 128], sizes = [2, 128], strides = [1, 1]} : vector<2x384xf32> to vector<2x128xf32>
    %381 = arith.mulf %380, %323 : vector<2x128xf32>
    %382 = vector.extract_strided_slice %377 {offsets = [0, 0], sizes = [2, 128], strides = [1, 1]} : vector<2x384xf32> to vector<2x128xf32>
    %383 = arith.mulf %382, %379 : vector<2x128xf32>
    %384 = arith.addf %381, %383 : vector<2x128xf32>
    %385 = vector.extract_strided_slice %377 {offsets = [0, 256], sizes = [2, 128], strides = [1, 1]} : vector<2x384xf32> to vector<2x128xf32>
    %386 = math.tanh %384 : vector<2x128xf32>
    %387 = arith.mulf %385, %386 : vector<2x128xf32>
    %388 = vector.extract_strided_slice %15 {offsets = [12, 0], sizes = [2, 512], strides = [1, 1]} : vector<16x512xf32> to vector<2x512xf32>
    %389 = arith.truncf %346 : vector<2x128xf32> to vector<2x128xbf16>
    %cst_52 = arith.constant dense<0.000000e+00> : vector<2x512xf32>
    %390 = tpu.matmul %389, %18, %cst_52 {dimension_numbers = #tpu.dot_dimension_numbers<[1], [0], [0], [1], [0, 0, 1, 1], [], []>} : vector<2x128xbf16>, vector<128x512xbf16>, vector<2x512xf32> -> vector<2x512xf32>
    %391 = arith.addf %388, %390 : vector<2x512xf32>
    %392 = vector.extract_strided_slice %391 {offsets = [0, 0], sizes = [2, 384], strides = [1, 1]} : vector<2x512xf32> to vector<2x384xf32>
    %393 = arith.negf %392 : vector<2x384xf32>
    %394 = math.exp %393 : vector<2x384xf32>
    %cst_53 = arith.constant 1.000000e+00 : f32
    %395 = vector.broadcast %cst_53 : f32 to vector<2x384xf32>
    %396 = arith.addf %395, %394 : vector<2x384xf32>
    %397 = arith.divf %395, %396 : vector<2x384xf32>
    %398 = vector.extract_strided_slice %391 {offsets = [0, 384], sizes = [2, 128], strides = [1, 1]} : vector<2x512xf32> to vector<2x128xf32>
    %399 = math.tanh %398 : vector<2x128xf32>
    %400 = vector.extract_strided_slice %397 {offsets = [0, 128], sizes = [2, 128], strides = [1, 1]} : vector<2x384xf32> to vector<2x128xf32>
    %401 = arith.mulf %400, %343 : vector<2x128xf32>
    %402 = vector.extract_strided_slice %397 {offsets = [0, 0], sizes = [2, 128], strides = [1, 1]} : vector<2x384xf32> to vector<2x128xf32>
    %403 = arith.mulf %402, %399 : vector<2x128xf32>
    %404 = arith.addf %401, %403 : vector<2x128xf32>
    %405 = vector.extract_strided_slice %397 {offsets = [0, 256], sizes = [2, 128], strides = [1, 1]} : vector<2x384xf32> to vector<2x128xf32>
    %406 = math.tanh %404 : vector<2x128xf32>
    %407 = arith.mulf %405, %406 : vector<2x128xf32>
    %408 = vector.extract_strided_slice %16 {offsets = [12, 0], sizes = [2, 128], strides = [1, 1]} : vector<16x128xf32> to vector<2x128xf32>
    %409 = arith.truncf %366 : vector<2x32xf32> to vector<2x32xbf16>
    %cst_54 = arith.constant dense<0.000000e+00> : vector<2x128xf32>
    %410 = tpu.matmul %409, %19, %cst_54 {dimension_numbers = #tpu.dot_dimension_numbers<[1], [0], [0], [1], [0, 0, 1, 1], [], []>} : vector<2x32xbf16>, vector<32x128xbf16>, vector<2x128xf32> -> vector<2x128xf32>
    %411 = arith.addf %408, %410 : vector<2x128xf32>
    %412 = vector.extract_strided_slice %411 {offsets = [0, 0], sizes = [2, 96], strides = [1, 1]} : vector<2x128xf32> to vector<2x96xf32>
    %413 = arith.negf %412 : vector<2x96xf32>
    %414 = math.exp %413 : vector<2x96xf32>
    %cst_55 = arith.constant 1.000000e+00 : f32
    %415 = vector.broadcast %cst_55 : f32 to vector<2x96xf32>
    %416 = arith.addf %415, %414 : vector<2x96xf32>
    %417 = arith.divf %415, %416 : vector<2x96xf32>
    %418 = vector.extract_strided_slice %411 {offsets = [0, 96], sizes = [2, 32], strides = [1, 1]} : vector<2x128xf32> to vector<2x32xf32>
    %419 = math.tanh %418 : vector<2x32xf32>
    %420 = vector.extract_strided_slice %417 {offsets = [0, 32], sizes = [2, 32], strides = [1, 1]} : vector<2x96xf32> to vector<2x32xf32>
    %421 = arith.mulf %420, %363 : vector<2x32xf32>
    %422 = vector.extract_strided_slice %417 {offsets = [0, 0], sizes = [2, 32], strides = [1, 1]} : vector<2x96xf32> to vector<2x32xf32>
    %423 = arith.mulf %422, %419 : vector<2x32xf32>
    %424 = arith.addf %421, %423 : vector<2x32xf32>
    %425 = vector.extract_strided_slice %417 {offsets = [0, 64], sizes = [2, 32], strides = [1, 1]} : vector<2x96xf32> to vector<2x32xf32>
    %426 = math.tanh %424 : vector<2x32xf32>
    %427 = arith.mulf %425, %426 : vector<2x32xf32>
    %428 = tpu.concatenate %387, %407, %427 in 1 : vector<2x128xf32>, vector<2x128xf32>, vector<2x32xf32> -> vector<2x288xf32>
    %429 = vector.extract_strided_slice %14 {offsets = [14, 0], sizes = [2, 512], strides = [1, 1]} : vector<16x512xf32> to vector<2x512xf32>
    %430 = arith.truncf %387 : vector<2x128xf32> to vector<2x128xbf16>
    %cst_56 = arith.constant dense<0.000000e+00> : vector<2x512xf32>
    %431 = tpu.matmul %430, %17, %cst_56 {dimension_numbers = #tpu.dot_dimension_numbers<[1], [0], [0], [1], [0, 0, 1, 1], [], []>} : vector<2x128xbf16>, vector<128x512xbf16>, vector<2x512xf32> -> vector<2x512xf32>
    %432 = arith.addf %429, %431 : vector<2x512xf32>
    %433 = vector.extract_strided_slice %432 {offsets = [0, 0], sizes = [2, 384], strides = [1, 1]} : vector<2x512xf32> to vector<2x384xf32>
    %434 = arith.negf %433 : vector<2x384xf32>
    %435 = math.exp %434 : vector<2x384xf32>
    %cst_57 = arith.constant 1.000000e+00 : f32
    %436 = vector.broadcast %cst_57 : f32 to vector<2x384xf32>
    %437 = arith.addf %436, %435 : vector<2x384xf32>
    %438 = arith.divf %436, %437 : vector<2x384xf32>
    %439 = vector.extract_strided_slice %432 {offsets = [0, 384], sizes = [2, 128], strides = [1, 1]} : vector<2x512xf32> to vector<2x128xf32>
    %440 = math.tanh %439 : vector<2x128xf32>
    %441 = vector.extract_strided_slice %438 {offsets = [0, 128], sizes = [2, 128], strides = [1, 1]} : vector<2x384xf32> to vector<2x128xf32>
    %442 = arith.mulf %441, %384 : vector<2x128xf32>
    %443 = vector.extract_strided_slice %438 {offsets = [0, 0], sizes = [2, 128], strides = [1, 1]} : vector<2x384xf32> to vector<2x128xf32>
    %444 = arith.mulf %443, %440 : vector<2x128xf32>
    %445 = arith.addf %442, %444 : vector<2x128xf32>
    %446 = vector.extract_strided_slice %438 {offsets = [0, 256], sizes = [2, 128], strides = [1, 1]} : vector<2x384xf32> to vector<2x128xf32>
    %447 = math.tanh %445 : vector<2x128xf32>
    %448 = arith.mulf %446, %447 : vector<2x128xf32>
    %449 = vector.extract_strided_slice %15 {offsets = [14, 0], sizes = [2, 512], strides = [1, 1]} : vector<16x512xf32> to vector<2x512xf32>
    %450 = arith.truncf %407 : vector<2x128xf32> to vector<2x128xbf16>
    %cst_58 = arith.constant dense<0.000000e+00> : vector<2x512xf32>
    %451 = tpu.matmul %450, %18, %cst_58 {dimension_numbers = #tpu.dot_dimension_numbers<[1], [0], [0], [1], [0, 0, 1, 1], [], []>} : vector<2x128xbf16>, vector<128x512xbf16>, vector<2x512xf32> -> vector<2x512xf32>
    %452 = arith.addf %449, %451 : vector<2x512xf32>
    %453 = vector.extract_strided_slice %452 {offsets = [0, 0], sizes = [2, 384], strides = [1, 1]} : vector<2x512xf32> to vector<2x384xf32>
    %454 = arith.negf %453 : vector<2x384xf32>
    %455 = math.exp %454 : vector<2x384xf32>
    %cst_59 = arith.constant 1.000000e+00 : f32
    %456 = vector.broadcast %cst_59 : f32 to vector<2x384xf32>
    %457 = arith.addf %456, %455 : vector<2x384xf32>
    %458 = arith.divf %456, %457 : vector<2x384xf32>
    %459 = vector.extract_strided_slice %452 {offsets = [0, 384], sizes = [2, 128], strides = [1, 1]} : vector<2x512xf32> to vector<2x128xf32>
    %460 = math.tanh %459 : vector<2x128xf32>
    %461 = vector.extract_strided_slice %458 {offsets = [0, 128], sizes = [2, 128], strides = [1, 1]} : vector<2x384xf32> to vector<2x128xf32>
    %462 = arith.mulf %461, %404 : vector<2x128xf32>
    %463 = vector.extract_strided_slice %458 {offsets = [0, 0], sizes = [2, 128], strides = [1, 1]} : vector<2x384xf32> to vector<2x128xf32>
    %464 = arith.mulf %463, %460 : vector<2x128xf32>
    %465 = arith.addf %462, %464 : vector<2x128xf32>
    %466 = vector.extract_strided_slice %458 {offsets = [0, 256], sizes = [2, 128], strides = [1, 1]} : vector<2x384xf32> to vector<2x128xf32>
    %467 = math.tanh %465 : vector<2x128xf32>
    %468 = arith.mulf %466, %467 : vector<2x128xf32>
    %469 = vector.extract_strided_slice %16 {offsets = [14, 0], sizes = [2, 128], strides = [1, 1]} : vector<16x128xf32> to vector<2x128xf32>
    %470 = arith.truncf %427 : vector<2x32xf32> to vector<2x32xbf16>
    %cst_60 = arith.constant dense<0.000000e+00> : vector<2x128xf32>
    %471 = tpu.matmul %470, %19, %cst_60 {dimension_numbers = #tpu.dot_dimension_numbers<[1], [0], [0], [1], [0, 0, 1, 1], [], []>} : vector<2x32xbf16>, vector<32x128xbf16>, vector<2x128xf32> -> vector<2x128xf32>
    %472 = arith.addf %469, %471 : vector<2x128xf32>
    %473 = vector.extract_strided_slice %472 {offsets = [0, 0], sizes = [2, 96], strides = [1, 1]} : vector<2x128xf32> to vector<2x96xf32>
    %474 = arith.negf %473 : vector<2x96xf32>
    %475 = math.exp %474 : vector<2x96xf32>
    %cst_61 = arith.constant 1.000000e+00 : f32
    %476 = vector.broadcast %cst_61 : f32 to vector<2x96xf32>
    %477 = arith.addf %476, %475 : vector<2x96xf32>
    %478 = arith.divf %476, %477 : vector<2x96xf32>
    %479 = vector.extract_strided_slice %472 {offsets = [0, 96], sizes = [2, 32], strides = [1, 1]} : vector<2x128xf32> to vector<2x32xf32>
    %480 = math.tanh %479 : vector<2x32xf32>
    %481 = vector.extract_strided_slice %478 {offsets = [0, 32], sizes = [2, 32], strides = [1, 1]} : vector<2x96xf32> to vector<2x32xf32>
    %482 = arith.mulf %481, %424 : vector<2x32xf32>
    %483 = vector.extract_strided_slice %478 {offsets = [0, 0], sizes = [2, 32], strides = [1, 1]} : vector<2x96xf32> to vector<2x32xf32>
    %484 = arith.mulf %483, %480 : vector<2x32xf32>
    %485 = arith.addf %482, %484 : vector<2x32xf32>
    %486 = vector.extract_strided_slice %478 {offsets = [0, 64], sizes = [2, 32], strides = [1, 1]} : vector<2x96xf32> to vector<2x32xf32>
    %487 = math.tanh %485 : vector<2x32xf32>
    %488 = arith.mulf %486, %487 : vector<2x32xf32>
    %489 = tpu.concatenate %448, %468, %488 in 1 : vector<2x128xf32>, vector<2x128xf32>, vector<2x32xf32> -> vector<2x288xf32>
    %490 = tpu.concatenate %62, %123, %184, %245, %306, %367, %428, %489 in 0 : vector<2x288xf32>, vector<2x288xf32>, vector<2x288xf32>, vector<2x288xf32>, vector<2x288xf32>, vector<2x288xf32>, vector<2x288xf32>, vector<2x288xf32> -> vector<16x288xf32>
    %c0_62 = arith.constant 0 : index
    %c0_63 = arith.constant 0 : index
    %491 = vector.load %arg8[%c0_62, %c0_63] : memref<10x16xf32, #tpu.memory_space<vmem>>, vector<10x16xf32>
    %cst_64 = arith.constant dense<0.000000e+00> : vector<10x288xf32>
    %492 = tpu.matmul %491, %490, %cst_64 {dimension_numbers = #tpu.dot_dimension_numbers<[1], [0], [0], [1], [0, 0, 1, 1], [], []>} : vector<10x16xf32>, vector<16x288xf32>, vector<10x288xf32> -> vector<10x288xf32>
    %c0_65 = arith.constant 0 : index
    %c0_66 = arith.constant 0 : index
    %493 = vector.load %arg9[%c0_65, %c0_66] : memref<10x1xf32, #tpu.memory_space<vmem>>, vector<10x1xf32>
    %494 = vector.broadcast %493 : vector<10x1xf32> to vector<10x288xf32>
    %495 = arith.addf %492, %494 : vector<10x288xf32>
    %cst_67 = arith.constant 0.000000e+00 : f32
    %496 = vector.broadcast %cst_67 : f32 to vector<10x288xf32>
    %497 = arith.maximumf %495, %496 : vector<10x288xf32>
    %c0_68 = arith.constant 0 : index
    %c0_69 = arith.constant 0 : index
    %498 = vector.load %arg10[%c0_68, %c0_69] : memref<288x9xf32, #tpu.memory_space<vmem>>, vector<288x9xf32>
    %cst_70 = arith.constant dense<0.000000e+00> : vector<10x9xf32>
    %499 = tpu.matmul %497, %498, %cst_70 {dimension_numbers = #tpu.dot_dimension_numbers<[1], [0], [0], [1], [0, 0, 1, 1], [], []>} : vector<10x288xf32>, vector<288x9xf32>, vector<10x9xf32> -> vector<10x9xf32>
    %c0_71 = arith.constant 0 : index
    %500 = memref.load %arg11[%c0_71] : memref<1xf32, #tpu.memory_space<smem>>
    %501 = vector.broadcast %500 : f32 to vector<10x9xf32>
    %502 = arith.addf %499, %501 : vector<10x9xf32>
    %c0_72 = arith.constant 0 : index
    %c0_73 = arith.constant 0 : index
    %503 = vector.load %arg12[%c0_72, %c0_73] : memref<10x9xf32, #tpu.memory_space<vmem>>, vector<10x9xf32>
    tpu.vector_store %arg12[%c0_72, %c0_73], %502 {strides = array<i32>} : memref<10x9xf32, #tpu.memory_space<vmem>>, vector<10x9xf32>,
    return
  }
}

</mosaic_0001>

<bundles_post_ra>
// kernel: forward.1
= control target key start
LH: loop header
LB: loop body
LE: loop exit
PB: predicated region body
PF: predicated region fallthrough
CT: control target
= control target key end

     0   :  { %18 = vsyncpa [#allocation4], 0  ;;  %s8696_s0 = inlined_call_operand.vmem [shape: f32[16,27], index: 0, kind: input, shape index: {}]   ;;  %s8697_s1 = inlined_call_operand.hbm [shape: f32[27,288], index: 1, kind: input, shape index: {}]   ;;  %s8698_s2 = inlined_call_operand.vmem [shape: f32[1,288], index: 2, kind: input, shape index: {}]   ;;  %s8699_s3 = inlined_call_operand.vmem [shape: bf16[288,1152], index: 3, kind: input, shape index: {}]   ;;  %s8700_s4 = inlined_call_operand.vmem [shape: f32[1,1152], index: 4, kind: input, shape index: {}]   ;;  %s8701_s5 = inlined_call_operand.vmem [shape: bf16[128,512], index: 5, kind: input, shape index: {}]   ;;  %s8702_s6 = inlined_call_operand.hbm [shape: bf16[128,512], index: 6, kind: input, shape index: {}]   ;;  %s8703_s7 = inlined_call_operand.hbm [shape: bf16[32,128], index: 7, kind: input, shape index: {}]   ;;  %s8704_s8 = inlined_call_operand.hbm [shape: f32[10,16], index: 8, kind: input, shape index: {}]   ;;  %s8705_s9 = inlined_call_operand.vmem [shape: f32[10,1], index: 9, kind: input, shape index: {}]   ;;  %s8706_s10 = inlined_call_operand.vmem [shape: f32[288,9], index: 10, kind: input, shape index: {}]   ;;  %s8707_s11 = inlined_call_operand.<no memory space> [shape: f32[1], index: 11, kind: input, shape index: {}]   ;;  %s8708_s12 = inlined_call_operand.vmem [shape: f32[10,9], index: 12, kind: output, shape index: {}]  }
   0x1   :  { %19 = vsyncpa [#allocation6], 0 }
   0x2   :  { %20 = vsyncpa [#allocation9], 0  ;;  %s6379_s21 = smov [#allocation5]  }
   0x3   :  { %s48_s22 = sshll.u32 %s6379_s21, 4  ;;  %s49_s22 = int_to_ptr.vmem [resolvable:$true] %s48_s22 }
   0x4   :  { %s6301_s23 = scalar_lea.vmem %s49_s22, 4096  ;;  %p6306_p1 = scmp.lt.s32.totalorder %s49_s22, %s49_s22 }
   0x5   :  { %p6302_p0 = scmp.ne.s32.totalorder %s49_s22, %s6301_s23  ;;  %p6307_p2 = scmp.lt.s32.totalorder %s6301_s23, %s6301_s23 }
   0x7   :  { %p6308_p3 = por %p6307_p2, %p6306_p1 }
   0x9   :  { %p6309_p4 = pnand %p6308_p3, %p6302_p0 }
   0xb   :  { %6312 = shalt.err (!%p6309_p4)
}
   0xc   :  { %s6380_s24 = smov 256   ;;  %s6381_s25 = smov 16  }
   0xd   :  { %54 = dma.hbm_to_vmem [thread:$0]  %s8702_s6, 4096, %s49_s22, [#allocation6], %s6380_s24, %s6380_s24, %s6381_s25  }
   0xe   :  { %s6382_s28 = smov [#allocation3]  }
   0xf   :  { %s28_s29 = sshll.u32 %s6382_s28, 4  ;;  %s29_s29 = int_to_ptr.vmem [resolvable:$true] %s28_s29 }
  0x10   :  { %s6321_s30 = scalar_lea.vmem %s29_s29, 1536  ;;  %p6326_p6 = scmp.lt.s32.totalorder %s29_s29, %s29_s29 }
  0x11   :  { %p6322_p5 = scmp.ne.s32.totalorder %s29_s29, %s6321_s30  ;;  %p6327_p7 = scmp.lt.s32.totalorder %s6321_s30, %s6321_s30 }
  0x13   :  { %p6328_p8 = por %p6327_p7, %p6326_p6 }
  0x15   :  { %p6329_p9 = pnand %p6328_p8, %p6322_p5 }
  0x17   :  { %6332 = shalt.err (!%p6329_p9)
}
  0x18   :  { %s6383_s13 = smov 384   ;;  %s6384_s14 = smov 24  }
  0x19   :  { %34 = dma.hbm_to_vmem [thread:$0]  %s8697_s1, 1536, %s29_s29, [#allocation4], %s6383_s13, %s6383_s13, %s6384_s14  }
  0x1a   :  { %s6385_s17 = smov [#allocation7]  }
  0x1b   :  { %s60_s18 = sshll.u32 %s6385_s17, 4  ;;  %s61_s18 = int_to_ptr.vmem [resolvable:$true] %s60_s18 }
  0x1c   :  { %s6341_s6 = scalar_lea.vmem %s61_s18, 256  ;;  %p6346_p11 = scmp.lt.s32.totalorder %s61_s18, %s61_s18 }
  0x1d   :  { %p6342_p10 = scmp.ne.s32.totalorder %s61_s18, %s6341_s6  ;;  %p6347_p12 = scmp.lt.s32.totalorder %s6341_s6, %s6341_s6 }
  0x1f   :  { %p6348_p13 = por %p6347_p12, %p6346_p11 }
  0x21   :  { %p6349_p0 = pnand %p6348_p13, %p6342_p10 }
  0x23   :  { %6352 = shalt.err (!%p6349_p0)
}
  0x24   :  { %s6386_s19 = smov 64   ;;  %s6387_s20 = smov 4  }
  0x25   :  { %66 = dma.hbm_to_vmem [thread:$0]  %s8703_s7, 256, %s61_s18, [#allocation6], %s6386_s19, %s6386_s19, %s6387_s20  }
  0x26   :  { %s6388_s23 = smov [#allocation8]  }
  0x27   :  { %s72_s1 = sshll.u32 %s6388_s23, 4  ;;  %s73_s1 = int_to_ptr.vmem [resolvable:$true] %s72_s1 }
  0x28   :  { %s6361_s24 = scalar_lea.vmem %s73_s1, 256  ;;  %p6366_p2 = scmp.lt.s32.totalorder %s73_s1, %s73_s1 }
  0x29   :  { %p6362_p1 = scmp.ne.s32.totalorder %s73_s1, %s6361_s24  ;;  %p6367_p3 = scmp.lt.s32.totalorder %s6361_s24, %s6361_s24 }
  0x2b   :  { %p6368_p4 = por %p6367_p3, %p6366_p2 }
  0x2d   :  { %p6369_p5 = pnand %p6368_p4, %p6362_p1 }
  0x2f   :  { %6372 = shalt.err (!%p6369_p5)
}
  0x30   :  { %s6389_s25 = smov 128   ;;  %s6390_s26 = smov 8  }
  0x31   :  { %78 = dma.hbm_to_vmem [thread:$0]  %s8704_s8, 256, %s73_s1, [#allocation9], %s6389_s25, %s6389_s25, %s6390_s26  }
  0x32   :  { %6373 = dma.done.wait [#allocation4], 1536  }
  0x33   :  { %6374 = vsyncadd [#allocation4], 4294965760 }
  0x34   :  { %6375 = dma.done.wait [#allocation6], 4352  }
  0x35   :  { %6376 = vsyncadd [#allocation6], 4294962944 }
  0x36   :  { %6377 = dma.done.wait [#allocation9], 256  }
  0x37   :  { %6378 = vsyncadd [#allocation9], 4294967040  ;;  %v8709_v0 = vmov 0.0   ;;  %vm136_vm0 = vcmask 1042432   ;;  %v110_v1 = vld [vmem:[#allocation3 + $0x50] sm:$0x7]  ;;  %v114_v54 = vlaneseq }
  0x38   :  { %210 = vmatprep.mubr.f32.mxu1 %v8709_v0  ;;  %v109_v2 = vld [vmem:[#allocation3 + $0x48] sm:$0x7]  ;;  %v107_v3 = vld [vmem:[#allocation3 + $0x38] sm:$0xff]  ;;  %5001 = vmatprep.subr.msk.mxu1 %vm136_vm0, %v110_v1  ;;  %v106_v4 = vld [vmem:[#allocation3 + $0x30] sm:$0xff]  ;;  %vm129_vm1 = vcmask 220160   ;;  %v8711_v53 = vmov 0  }
  0x39   :  { %5002 = vmatpush1.msk.msra.mxu1 %vm136_vm0, %v109_v2  ;;  %v104_v5 = vld [vmem:[#allocation3 + $0x20] sm:$0xff]  ;;  %v103_v6 = vld [vmem:[#allocation3 + $0x18] sm:$0xff]  ;;  %v101_v7 = vld [vmem:[#allocation3 + $0x8] sm:$0xff]  ;;  %5518 = vset.pattern.permute.xlu1 %v8711_v53  ;;  %v6607_v55 = vshrl.u32 %v114_v54, 7  ;;  %vm1364_vm2 = vcmask 261120   ;;  %vm6393_vm3 = vmmov 0  }
  0x3a   :  { %172 = vmatprep.subr.mxu1 %v107_v3  ;;  %v100_v8 = vld [vmem:[#allocation3] sm:$0xff]  ;;  %v5522_v11 = vld [vmem:[%s8699_s3 + $0x1f8] ss:$36 sps:$4 sm:$0xff]   ;;  %v5525_v15 = vld [vmem:[%s8699_s3 + $0x1b0] ss:$36 sps:$4 sm:$0xff]   ;;  %5519 = vset.pattern.permute.xlu0 %v8711_v53  ;;  %vm4596_vm4 = vcmask 1041408  }
  0x3b   :  { %173 = vmatpush1.msra.mxu1 %v106_v4  ;;  %v98_v9 = vld [vmem:[%s8696_s0] sm:$0xff]  ;;  %v111_v12 = vld [vmem:[#allocation3 + $0x58] sm:$0x7]  ;;  %v99_v16 = vld [vmem:[%s8696_s0 + $0x8] sm:$0xff]  ;;  %v120_v56 = vsub.s32 1, %v6607_v55  ;;  %v116_v57 = vsub.s32 0, %v6607_v55 }
  0x3c   :  { %174 = vmatprep.subr.mxu1 %v104_v5  ;;  %v5520_v10 = vld [vmem:[%s8699_s3 + $0x1fc] ss:$36 sps:$4 sm:$0xff]   ;;  %v5523_v13 = vld [vmem:[%s8699_s3 + $0x1b4] ss:$36 sps:$4 sm:$0xff]   ;;  %v105_v17 = vld [vmem:[#allocation3 + $0x28] sm:$0xff]  ;;  %v124_v61 = vsub.s32 2, %v6607_v55 }
  0x3d   :  { %175 = vmatpush1.msra.mxu1 %v103_v6  ;;  %1368 = vmatprep.subr.bf16.mxu0 %v5520_v10  ;;  %v108_v14 = vld [vmem:[#allocation3 + $0x40] sm:$0xff]  ;;  %v5526_v18 = vld [vmem:[%s8699_s3 + $0x16c] ss:$36 sps:$4 sm:$0xff]   ;;  %v5534_v24 = vld [vmem:[%s8699_s3 + $0xd8] ss:$36 sps:$4 sm:$0xff]   ;;  %vm4600_vm5 = vcmask 1043456  }
  0x3e   :  { %176 = vmatprep.subr.mxu1 %v101_v7  ;;  %1369 = vmatpush1.bf16.msra.mxu0 %v5522_v11  ;;  %v102_v19 = vld [vmem:[#allocation3 + $0x10] sm:$0xff]  ;;  %v5528_v20 = vld [vmem:[%s8699_s3 + $0x168] ss:$36 sps:$4 sm:$0xff]   ;;  %v5531_v22 = vld [vmem:[%s8699_s3 + $0x120] ss:$36 sps:$4 sm:$0xff]   ;;  %vm4604_vm6 = vcmask 1045504  }
  0x3f   :  { %177 = vmatpush1.msra.mxu1 %v100_v8  ;;  %1370 = vmatprep.subr.bf16.mxu0 %v5523_v13  ;;  %v5529_v21 = vld [vmem:[%s8699_s3 + $0x124] ss:$36 sps:$4 sm:$0xff]   ;;  %v5532_v23 = vld [vmem:[%s8699_s3 + $0xdc] ss:$36 sps:$4 sm:$0xff]   ;;  %v5535_v25 = vld [vmem:[%s8699_s3 + $0x94] ss:$36 sps:$4 sm:$0xff]  }
  0x40   :  { %5003 = vmatmul.mubr.msk.f32.vlgmr.msra.gmra.mxu1 %vm129_vm1, %v98_v9  ;;  %5409 = vmatprep.subr.msk.mxu1 %vm136_vm0, %v111_v12  ;;  %v5537_v26 = vld [vmem:[%s8699_s3 + $0x90] ss:$36 sps:$4 sm:$0xff]   ;;  %v5540_v28 = vld [vmem:[%s8699_s3 + $0x48] ss:$36 sps:$4 sm:$0xff]   ;;  %v5543_v30 = vld [vmem:[%s8699_s3] ss:$36 sps:$4 sm:$0xff]  }
  0x41   :  { %5410 = vmatpush3.msk.msra.mxu1 %vm136_vm0, %v111_v12  ;;  %216 = vmatprep.mubr.f32.mxu1 %v8709_v0  ;;  %v5538_v27 = vld [vmem:[%s8699_s3 + $0x4c] ss:$36 sps:$4 sm:$0xff]   ;;  %v5541_v29 = vld [vmem:[%s8699_s3 + $0x4] ss:$36 sps:$4 sm:$0xff]   ;;  %v5544_v31 = vld [vmem:[%s8699_s3 + $0x43c] ss:$36 sps:$4 sm:$0xff]  }
  0x42   :  { %5411 = vmatprep.subr.mxu1 %v108_v14  ;;  %1371 = vmatpush1.bf16.msra.mxu0 %v5525_v15  ;;  %v5546_v32 = vld [vmem:[%s8699_s3 + $0x438] ss:$36 sps:$4 sm:$0xff]   ;;  %v5549_v34 = vld [vmem:[%s8699_s3 + $0x3f0] ss:$36 sps:$4 sm:$0xff]   ;;  %v5552_v36 = vld [vmem:[%s8699_s3 + $0x3a8] ss:$36 sps:$4 sm:$0xff]  }
  0x43   :  { %5412 = vmatpush3.msra.mxu1 %v108_v14  ;;  %1372 = vmatprep.subr.bf16.mxu0 %v5526_v18  ;;  %v5547_v33 = vld [vmem:[%s8699_s3 + $0x3f4] ss:$36 sps:$4 sm:$0xff]   ;;  %v5550_v35 = vld [vmem:[%s8699_s3 + $0x3ac] ss:$36 sps:$4 sm:$0xff]   ;;  %v5553_v37 = vld [vmem:[%s8699_s3 + $0x364] ss:$36 sps:$4 sm:$0xff]  }
  0x44   :  { %5004 = vmatmul.mubr.msk.f32.gmra.mxu1 %vm129_vm1, %v99_v16  ;;  %5413 = vmatprep.subr.mxu1 %v105_v17  ;;  %v5555_v38 = vld [vmem:[%s8699_s3 + $0x360] ss:$36 sps:$4 sm:$0xff]   ;;  %v5558_v40 = vld [vmem:[%s8699_s3 + $0x318] ss:$36 sps:$4 sm:$0xff]   ;;  %v5561_v42 = vld [vmem:[%s8699_s3 + $0x2d0] ss:$36 sps:$4 sm:$0xff]  }
  0x45   :  { %5414 = vmatpush3.msra.mxu1 %v105_v17  ;;  %5417 = vmatprep.mubr.msk.f32.mxu1 %vm129_vm1, %v98_v9  ;;  %v5556_v39 = vld [vmem:[%s8699_s3 + $0x31c] ss:$36 sps:$4 sm:$0xff]   ;;  %v5559_v41 = vld [vmem:[%s8699_s3 + $0x2d4] ss:$36 sps:$4 sm:$0xff]   ;;  %v5562_v43 = vld [vmem:[%s8699_s3 + $0x28c] ss:$36 sps:$4 sm:$0xff]  }
  0x46   :  { %5415 = vmatprep.subr.mxu1 %v102_v19  ;;  %1373 = vmatpush1.bf16.msra.mxu0 %v5528_v20  ;;  %v5564_v44 = vld [vmem:[%s8699_s3 + $0x288] ss:$36 sps:$4 sm:$0xff]   ;;  %v5570_v48 = vld [vmem:[%s8699_s3 + $0x240] ss:$36 sps:$4 sm:$0xff]   ;;  %vm4631_vm7 = vcmask 130048   ;;  %vm4992_vm8 = vcmask 66560  }
  0x47   :  { %5416 = vmatpush3.msra.mxu1 %v102_v19  ;;  %1374 = vmatprep.subr.bf16.mxu0 %v5529_v21  ;;  %v5567_v45 = vld [vmem:[%s8699_s3 + $0x4cc] ss:$36 sps:$4 sm:$0xff]   ;;  %v5568_v47 = vld [vmem:[%s8699_s3 + $0x244] ss:$36 sps:$4 sm:$0xff]   ;;  %v112_v58 = vld [vmem:[%s8698_s2] sm:$0x7] }
  0x48   :  { %5418 = vmatmul.mubr.msk.f32.vlgmr.msra.gmra.mxu1 %vm129_vm1, %v99_v16  ;;  %v5565_v46 = vld [vmem:[%s8699_s3 + $0x4c8] ss:$36 sps:$4 sm:$0xff]   ;;  %1423 = vmatprep.subr.bf16.mxu1 %v5567_v45  ;;  %v5571_v50 = vld [vmem:[%s8699_s3 + $0x480] ss:$36 sps:$4 sm:$0xff]   ;;  %v121_v60 = vrot.slane %v112_v58, %v120_v56  ;;  %v117_v62 = vrot.slane %v112_v58, %v116_v57  ;;  %v125_v4 = vrot.slane %v112_v58, %v124_v61  ;;  %v5615_v45 = vld [vmem:[%s8699_s3 + $0x54] ss:$36 sps:$4 sm:$0xff]  }
  0x49   :  { %1424 = vmatpush1.bf16.msra.mxu1 %v5565_v46  ;;  %v5573_v49 = vld [vmem:[%s8699_s3 + $0x484] ss:$36 sps:$4 sm:$0xff]   ;;  %v5576_v51 = vld [vmem:[%s8699_s3 + $0x20c] ss:$36 sps:$4 sm:$0xff]   ;;  %1443 = vmatprep.mubr.bf16.mxu1 %v8711_v53  ;;  %v5618_v46 = vld [vmem:[%s8699_s3 + $0x14] ss:$36 sps:$4 sm:$0xff]  }
  0x4a   :  { %1375 = vmatpush1.bf16.msra.mxu0 %v5531_v22  ;;  %1425 = vmatprep.subr.bf16.mxu1 %v5573_v49  ;;  %v5579_v52 = vld [vmem:[%s8699_s3 + $0x204] ss:$36 sps:$4 sm:$0xff]   ;;  %v5621_v49 = vld [vmem:[%s8699_s3 + $0xc] ss:$36 sps:$4 sm:$0xff]   ;;  %vm4990_vm9 = vcmask 72704  }
  0x4b   :  { %1376 = vmatprep.subr.bf16.mxu0 %v5532_v23  ;;  %v5574_v17 = vld [vmem:[%s8699_s3 + $0x208] ss:$36 sps:$4 sm:$0xff]   ;;  %v5577_v22 = vld [vmem:[%s8699_s3 + $0x200] ss:$36 sps:$4 sm:$0xff]  }
  0x4c   :  { %v5582_v19 = vld [vmem:[%s8699_s3 + $0x1c4] ss:$36 sps:$4 sm:$0xff]  }
  0x4d   :  { %1426 = vmatpush1.bf16.msra.mxu1 %v5571_v50  ;;  %v5624_v50 = vld [vmem:[%s8699_s3 + $0x44c] ss:$36 sps:$4 sm:$0xff]   ;;  %v5627_v54 = vld [vmem:[%s8699_s3 + $0x444] ss:$36 sps:$4 sm:$0xff]  }
  0x4e   :  { %1377 = vmatpush1.bf16.msra.mxu0 %v5534_v24  ;;  %1454 = vmatprep.subr.bf16.mxu1 %v5579_v52  ;;  %v5580_v24 = vld [vmem:[%s8699_s3 + $0x1c0] ss:$36 sps:$4 sm:$0xff]   ;;  %v5622_v52 = vld [vmem:[%s8699_s3 + $0x448] ss:$36 sps:$4 sm:$0xff]  }
  0x4f   :  { %1378 = vmatprep.subr.bf16.mxu0 %v5535_v25  ;;  %v5585_v25 = vld [vmem:[%s8699_s3 + $0x1bc] ss:$36 sps:$4 sm:$0xff]   ;;  %v5630_v58 = vld [vmem:[%s8699_s3 + $0x404] ss:$36 sps:$4 sm:$0xff]  }
  0x52   :  { %1379 = vmatpush1.bf16.msra.mxu0 %v5537_v26  ;;  %v5588_v26 = vld [vmem:[%s8699_s3 + $0x17c] ss:$36 sps:$4 sm:$0xff]  }
  0x53   :  { %1380 = vmatprep.subr.bf16.mxu0 %v5538_v27  ;;  %v5583_v27 = vld [vmem:[%s8699_s3 + $0x1b8] ss:$36 sps:$4 sm:$0xff]  }
  0x56   :  { %1381 = vmatpush1.bf16.msra.mxu0 %v5540_v28  ;;  %v5586_v28 = vld [vmem:[%s8699_s3 + $0x178] ss:$36 sps:$4 sm:$0xff]  }
  0x57   :  { %1382 = vmatprep.subr.bf16.mxu0 %v5541_v29  ;;  %v5591_v29 = vld [vmem:[%s8699_s3 + $0x174] ss:$36 sps:$4 sm:$0xff]  }
  0x5a   :  { %1383 = vmatpush1.bf16.msra.mxu0 %v5543_v30  ;;  %v5594_v30 = vld [vmem:[%s8699_s3 + $0x134] ss:$36 sps:$4 sm:$0xff]  }
  0x5b   :  { %1384 = vmatprep.subr.bf16.mxu0 %v5544_v31  ;;  %v5589_v31 = vld [vmem:[%s8699_s3 + $0x170] ss:$36 sps:$4 sm:$0xff]  }
  0x5e   :  { %1385 = vmatpush2.bf16.msra.mxu0 %v5546_v32  ;;  %v5592_v32 = vld [vmem:[%s8699_s3 + $0x130] ss:$36 sps:$4 sm:$0xff]  }
  0x5f   :  { %1386 = vmatprep.subr.bf16.mxu0 %v5547_v33  ;;  %v5597_v33 = vld [vmem:[%s8699_s3 + $0x12c] ss:$36 sps:$4 sm:$0xff]  }
  0x62   :  { %1387 = vmatpush2.bf16.msra.mxu0 %v5549_v34  ;;  %v5600_v34 = vld [vmem:[%s8699_s3 + $0xec] ss:$36 sps:$4 sm:$0xff]  }
  0x63   :  { %1388 = vmatprep.subr.bf16.mxu0 %v5550_v35  ;;  %v5595_v35 = vld [vmem:[%s8699_s3 + $0x128] ss:$36 sps:$4 sm:$0xff]  }
  0x66   :  { %1389 = vmatpush2.bf16.msra.mxu0 %v5552_v36  ;;  %v5598_v36 = vld [vmem:[%s8699_s3 + $0xe8] ss:$36 sps:$4 sm:$0xff]  }
  0x67   :  { %1390 = vmatprep.subr.bf16.mxu0 %v5553_v37  ;;  %v5603_v37 = vld [vmem:[%s8699_s3 + $0xe4] ss:$36 sps:$4 sm:$0xff]  }
  0x6a   :  { %1391 = vmatpush2.bf16.msra.mxu0 %v5555_v38  ;;  %v5606_v38 = vld [vmem:[%s8699_s3 + $0xa4] ss:$36 sps:$4 sm:$0xff]  }
  0x6b   :  { %1392 = vmatprep.subr.bf16.mxu0 %v5556_v39  ;;  %v5601_v39 = vld [vmem:[%s8699_s3 + $0xe0] ss:$36 sps:$4 sm:$0xff]  }
  0x6e   :  { %1393 = vmatpush2.bf16.msra.mxu0 %v5558_v40  ;;  %v5604_v40 = vld [vmem:[%s8699_s3 + $0xa0] ss:$36 sps:$4 sm:$0xff]  }
  0x6f   :  { %1394 = vmatprep.subr.bf16.mxu0 %v5559_v41  ;;  %v5609_v41 = vld [vmem:[%s8699_s3 + $0x9c] ss:$36 sps:$4 sm:$0xff]  }
  0x72   :  { %1395 = vmatpush2.bf16.msra.mxu0 %v5561_v42  ;;  %v5612_v42 = vld [vmem:[%s8699_s3 + $0x5c] ss:$36 sps:$4 sm:$0xff]  }
  0x73   :  { %1396 = vmatprep.subr.bf16.mxu0 %v5562_v43  ;;  %v5607_v43 = vld [vmem:[%s8699_s3 + $0x98] ss:$36 sps:$4 sm:$0xff]  }
  0x76   :  { %1397 = vmatpush2.bf16.msra.mxu0 %v5564_v44  ;;  %v5610_v44 = vld [vmem:[%s8699_s3 + $0x58] ss:$36 sps:$4 sm:$0xff]  }
  0x77   :  { %1398 = vmatprep.subr.bf16.mxu0 %v5568_v47  ;;  %v5613_v47 = vld [vmem:[%s8699_s3 + $0x50] ss:$36 sps:$4 sm:$0xff]  }
  0x7a   :  { %1399 = vmatpush2.bf16.msra.mxu0 %v5570_v48  ;;  %v5616_v48 = vld [vmem:[%s8699_s3 + $0x10] ss:$36 sps:$4 sm:$0xff]  }
  0x7b   :  { %1540 = vmatprep.subr.bf16.mxu0 %v5576_v51  ;;  %v5619_v51 = vld [vmem:[%s8699_s3 + $0x8] ss:$36 sps:$4 sm:$0xff]  }
 0x100   :  { %v212_v59 = vpop.f32.mrf.mxu1 }
 0x101   :  { %v213_v5 = vadd.f32 %v212_v59, %v117_v62  ;;  %v5625_v59 = vld [vmem:[%s8699_s3 + $0x440] ss:$36 sps:$4 sm:$0xff]  }
 0x102   :  { %v214_v63 = vpop.f32.mrf.mxu1 }
 0x103   :  { %v215_v2 = vadd.f32 %v214_v63, %v121_v60  ;;  %v298_v13 = vmax.f32 %v213_v5, 0.0  ;;  %v5636_v63 = vld [vmem:[%s8699_s3 + $0x3bc] ss:$36 sps:$4 sm:$0xff]   ;;  %v5637_v5 = vld [vmem:[%s8699_s3 + $0x3b0] ss:$36 sps:$4 sm:$0xff]  }
 0x104   :  { %v218_v1 = vpop.f32.mrf.mxu1 }
 0x105   :  { %v219_v3 = vadd.f32 %v218_v1, %v117_v62  ;;  %v299_v10 = vmax.f32 %v215_v2, 0.0  ;;  %v5633_v62 = vld [vmem:[%s8699_s3 + $0x3fc] ss:$36 sps:$4 sm:$0xff]  }
 0x106   :  { %v220_v6 = vpop.f32.mrf.mxu1  ;;  %v5631_v1 = vld [vmem:[%s8699_s3 + $0x3f8] ss:$36 sps:$4 sm:$0xff]  }
 0x107   :  { %v221_v7 = vadd.f32 %v220_v6, %v121_v60  ;;  %v301_v8 = vmax.f32 %v219_v3, 0.0  ;;  %v5628_v60 = vld [vmem:[%s8699_s3 + $0x400] ss:$36 sps:$4 sm:$0xff]   ;;  %v5634_v2 = vld [vmem:[%s8699_s3 + $0x3b8] ss:$36 sps:$4 sm:$0xff]  }
 0x108   :  { %v5419_v9 = vpop.f32.mrf.mxu1  ;;  %v5639_v3 = vld [vmem:[%s8699_s3 + $0x3b4] ss:$36 sps:$4 sm:$0xff]  }
 0x109   :  { %v302_v11 = vmax.f32 %v221_v7, 0.0  ;;  %v295_v12 = vadd.f32 %v5419_v9, %v125_v4  ;;  %v6626_v18 = vpack.c.bf16 %v301_v8, %v298_v13  ;;  %v5640_v6 = vld [vmem:[%s8699_s3 + $0x370] ss:$36 sps:$4 sm:$0xff]   ;;  %v5643_v9 = vld [vmem:[%s8699_s3 + $0x368] ss:$36 sps:$4 sm:$0xff]  }
 0x10a   :  { %v289_v14 = vpop.f32.mrf.mxu1  ;;  %v5645_v7 = vld [vmem:[%s8699_s3 + $0x36c] ss:$36 sps:$4 sm:$0xff]   ;;  %v5649_v13 = vld [vmem:[%s8699_s3 + $0x320] ss:$36 sps:$4 sm:$0xff]  }
 0x10b   :  { %v6621_v15 = vpack.c.bf16 %v302_v11, %v299_v10  ;;  %v290_v16 = vadd.f32 %v289_v14, %v125_v4  ;;  %v303_v20 = vmax.f32 %v295_v12, 0.0  ;;  %v5642_v4 = vld [vmem:[%s8699_s3 + $0x374] ss:$36 sps:$4 sm:$0xff]   ;;  %v5648_v8 = vld [vmem:[%s8699_s3 + $0x32c] ss:$36 sps:$4 sm:$0xff]  }
 0x10c   :  { %v5646_v10 = vld [vmem:[%s8699_s3 + $0x328] ss:$36 sps:$4 sm:$0xff]   ;;  %v5652_v14 = vld [vmem:[%s8699_s3 + $0x2e0] ss:$36 sps:$4 sm:$0xff]  }
 0x10d   :  { %v300_v21 = vmax.f32 %v290_v16, 0.0  ;;  %1400 = vmatprep.mubr.bf16.mxu0 %v6621_v15  ;;  %v5651_v11 = vld [vmem:[%s8699_s3 + $0x324] ss:$36 sps:$4 sm:$0xff]   ;;  %v5657_v16 = vld [vmem:[%s8699_s3 + $0x2dc] ss:$36 sps:$4 sm:$0xff]  }
 0x10e   :  { %1401 = vmatmul.mubr.bf16.vlgmr.msra.gmra.mxu0 %v6626_v18  ;;  %v5654_v12 = vld [vmem:[%s8699_s3 + $0x2e4] ss:$36 sps:$4 sm:$0xff]  }
 0x10f   :  { %v6636_v23 = vpack.c.bf16 %v303_v20, %v300_v21  ;;  %1541 = vmatpush1.bf16.msra.mxu0 %v5574_v17  ;;  %1572 = vmatprep.mubr.bf16.mxu0 %v6621_v15  ;;  %v5660_v17 = vld [vmem:[%s8699_s3 + $0x29c] ss:$36 sps:$4 sm:$0xff]   ;;  %v5663_v21 = vld [vmem:[%s8699_s3 + $0x294] ss:$36 sps:$4 sm:$0xff]  }
 0x110   :  { %1542 = vmatprep.subr.bf16.mxu0 %v5582_v19  ;;  %v5655_v19 = vld [vmem:[%s8699_s3 + $0x2d8] ss:$36 sps:$4 sm:$0xff]  }
 0x111   :  { %5171 = vmatmul.mubr.msk.bf16.vlgmr.msra.gmra.mxu1 %vm1364_vm2, %v6636_v23  ;;  %v5658_v20 = vld [vmem:[%s8699_s3 + $0x298] ss:$36 sps:$4 sm:$0xff]  }
 0x112   :  { %1455 = vmatpush1.bf16.msra.mxu1 %v5577_v22  ;;  %1486 = vmatprep.mubr.bf16.mxu1 %v6621_v15  ;;  %v5666_v22 = vld [vmem:[%s8699_s3 + $0x254] ss:$36 sps:$4 sm:$0xff]  }
 0x113   :  { %1543 = vmatpush1.bf16.msra.mxu0 %v5580_v24  ;;  %1456 = vmatprep.subr.bf16.mxu1 %v5585_v25  ;;  %v5661_v24 = vld [vmem:[%s8699_s3 + $0x290] ss:$36 sps:$4 sm:$0xff]  }
 0x114   :  { %1544 = vmatprep.subr.bf16.mxu0 %v5588_v26  ;;  %v5664_v25 = vld [vmem:[%s8699_s3 + $0x250] ss:$36 sps:$4 sm:$0xff]  }
 0x115   :  { %v5669_v26 = vld [vmem:[%s8699_s3 + $0x24c] ss:$36 sps:$4 sm:$0xff]  }
 0x116   :  { %1457 = vmatpush1.bf16.msra.mxu1 %v5583_v27  ;;  %v5672_v27 = vld [vmem:[%s8699_s3 + $0x4e4] ss:$36 sps:$4 sm:$0xff]  }
 0x117   :  { %1545 = vmatpush1.bf16.msra.mxu0 %v5586_v28  ;;  %1458 = vmatprep.subr.bf16.mxu1 %v5591_v29  ;;  %v5667_v28 = vld [vmem:[%s8699_s3 + $0x248] ss:$36 sps:$4 sm:$0xff]   ;;  %v5670_v29 = vld [vmem:[%s8699_s3 + $0x4e0] ss:$36 sps:$4 sm:$0xff]  }
 0x118   :  { %1546 = vmatprep.subr.bf16.mxu0 %v5594_v30  ;;  %v5675_v30 = vld [vmem:[%s8699_s3 + $0x4d4] ss:$36 sps:$4 sm:$0xff]  }
 0x11a   :  { %1459 = vmatpush1.bf16.msra.mxu1 %v5589_v31  ;;  %v5678_v31 = vld [vmem:[%s8699_s3 + $0x49c] ss:$36 sps:$4 sm:$0xff]  }
 0x11b   :  { %1547 = vmatpush1.bf16.msra.mxu0 %v5592_v32  ;;  %1460 = vmatprep.subr.bf16.mxu1 %v5597_v33  ;;  %v5673_v32 = vld [vmem:[%s8699_s3 + $0x4d0] ss:$36 sps:$4 sm:$0xff]   ;;  %v5676_v33 = vld [vmem:[%s8699_s3 + $0x498] ss:$36 sps:$4 sm:$0xff]  }
 0x11c   :  { %1548 = vmatprep.subr.bf16.mxu0 %v5600_v34  ;;  %v5681_v34 = vld [vmem:[%s8699_s3 + $0x48c] ss:$36 sps:$4 sm:$0xff]  }
 0x11e   :  { %1461 = vmatpush1.bf16.msra.mxu1 %v5595_v35  ;;  %v5682_v35 = vld [vmem:[%s8699_s3 + $0x458] ss:$36 sps:$4 sm:$0xff]  }
 0x11f   :  { %1549 = vmatpush1.bf16.msra.mxu0 %v5598_v36  ;;  %1462 = vmatprep.subr.bf16.mxu1 %v5603_v37  ;;  %v5679_v36 = vld [vmem:[%s8699_s3 + $0x488] ss:$36 sps:$4 sm:$0xff]   ;;  %v5683_v37 = vld [vmem:[%s8699_s3 + $0x218] ss:$36 sps:$4 sm:$0xff]  }
 0x120   :  { %1550 = vmatprep.subr.bf16.mxu0 %v5606_v38  ;;  %v5686_v38 = vld [vmem:[%s8699_s3 + $0x4dc] ss:$36 sps:$4 sm:$0xff]  }
 0x122   :  { %1463 = vmatpush1.bf16.msra.mxu1 %v5601_v39  ;;  %v5687_v39 = vld [vmem:[%s8699_s3 + $0x410] ss:$36 sps:$4 sm:$0xff]  }
 0x123   :  { %1551 = vmatpush1.bf16.msra.mxu0 %v5604_v40  ;;  %1464 = vmatprep.subr.bf16.mxu1 %v5609_v41  ;;  %v5684_v40 = vld [vmem:[%s8699_s3 + $0x4d8] ss:$36 sps:$4 sm:$0xff]   ;;  %v5688_v41 = vld [vmem:[%s8699_s3 + $0x1d0] ss:$36 sps:$4 sm:$0xff]  }
 0x124   :  { %1552 = vmatprep.subr.bf16.mxu0 %v5612_v42  ;;  %v5691_v42 = vld [vmem:[%s8699_s3 + $0x494] ss:$36 sps:$4 sm:$0xff]  }
 0x126   :  { %1465 = vmatpush1.bf16.msra.mxu1 %v5607_v43  ;;  %v5692_v43 = vld [vmem:[%s8699_s3 + $0x3c8] ss:$36 sps:$4 sm:$0xff]  }
 0x127   :  { %1553 = vmatpush1.bf16.msra.mxu0 %v5610_v44  ;;  %1466 = vmatprep.subr.bf16.mxu1 %v5615_v45  ;;  %v5689_v44 = vld [vmem:[%s8699_s3 + $0x490] ss:$36 sps:$4 sm:$0xff]   ;;  %v5693_v45 = vld [vmem:[%s8699_s3 + $0x188] ss:$36 sps:$4 sm:$0xff]  }
 0x128   :  { %1554 = vmatprep.subr.bf16.mxu0 %v5618_v46  ;;  %v5696_v46 = vld [vmem:[%s8699_s3 + $0x214] ss:$36 sps:$4 sm:$0xff]  }
 0x12a   :  { %1467 = vmatpush1.bf16.msra.mxu1 %v5613_v47  ;;  %v5697_v47 = vld [vmem:[%s8699_s3 + $0x380] ss:$36 sps:$4 sm:$0xff]  }
 0x12b   :  { %1555 = vmatpush1.bf16.msra.mxu0 %v5616_v48  ;;  %1468 = vmatprep.subr.bf16.mxu1 %v5621_v49  ;;  %v5694_v48 = vld [vmem:[%s8699_s3 + $0x210] ss:$36 sps:$4 sm:$0xff]   ;;  %v5698_v49 = vld [vmem:[%s8699_s3 + $0x140] ss:$36 sps:$4 sm:$0xff]  }
 0x12c   :  { %1556 = vmatprep.subr.bf16.mxu0 %v5624_v50  ;;  %v5701_v50 = vld [vmem:[%s8699_s3 + $0x1cc] ss:$36 sps:$4 sm:$0xff]  }
 0x12e   :  { %1469 = vmatpush1.bf16.msra.mxu1 %v5619_v51  ;;  %v5702_v51 = vld [vmem:[%s8699_s3 + $0x338] ss:$36 sps:$4 sm:$0xff]  }
 0x12f   :  { %1557 = vmatpush2.bf16.msra.mxu0 %v5622_v52  ;;  %1470 = vmatprep.subr.bf16.mxu1 %v5627_v54  ;;  %v5699_v52 = vld [vmem:[%s8699_s3 + $0x1c8] ss:$36 sps:$4 sm:$0xff]   ;;  %v5703_v54 = vld [vmem:[%s8699_s3 + $0xf8] ss:$36 sps:$4 sm:$0xff]  }
 0x130   :  { %1558 = vmatprep.subr.bf16.mxu0 %v5630_v58  ;;  %v5706_v58 = vld [vmem:[%s8699_s3 + $0x184] ss:$36 sps:$4 sm:$0xff]  }
 0x132   :  { %1471 = vmatpush2.bf16.msra.mxu1 %v5625_v59  ;;  %v5707_v59 = vld [vmem:[%s8699_s3 + $0x2f0] ss:$36 sps:$4 sm:$0xff]  }
 0x133   :  { %1559 = vmatpush2.bf16.msra.mxu0 %v5628_v60  ;;  %1472 = vmatprep.subr.bf16.mxu1 %v5633_v62  ;;  %v5708_v60 = vld [vmem:[%s8699_s3 + $0xb0] ss:$36 sps:$4 sm:$0xff]   ;;  %v5711_v62 = vld [vmem:[%s8699_s3 + $0x13c] ss:$36 sps:$4 sm:$0xff]  }
 0x134   :  { %1560 = vmatprep.subr.bf16.mxu0 %v5636_v63  ;;  %v5712_v63 = vld [vmem:[%s8699_s3 + $0x2a8] ss:$36 sps:$4 sm:$0xff]  }
 0x136   :  { %1473 = vmatpush2.bf16.msra.mxu1 %v5631_v1  ;;  %v5709_v1 = vld [vmem:[%s8699_s3 + $0x138] ss:$36 sps:$4 sm:$0xff]  }
 0x137   :  { %1561 = vmatpush2.bf16.msra.mxu0 %v5634_v2  ;;  %1474 = vmatprep.subr.bf16.mxu1 %v5639_v3  ;;  %v5713_v2 = vld [vmem:[%s8699_s3 + $0x68] ss:$36 sps:$4 sm:$0xff]   ;;  %v5716_v3 = vld [vmem:[%s8699_s3 + $0xf4] ss:$36 sps:$4 sm:$0xff]  }
 0x138   :  { %1562 = vmatprep.subr.bf16.mxu0 %v5642_v4  ;;  %v5717_v4 = vld [vmem:[%s8699_s3 + $0x260] ss:$36 sps:$4 sm:$0xff]  }
 0x13a   :  { %1475 = vmatpush2.bf16.msra.mxu1 %v5637_v5  ;;  %v5714_v5 = vld [vmem:[%s8699_s3 + $0xf0] ss:$36 sps:$4 sm:$0xff]  }
 0x13b   :  { %1563 = vmatpush2.bf16.msra.mxu0 %v5640_v6  ;;  %1476 = vmatprep.subr.bf16.mxu1 %v5645_v7  ;;  %v5718_v6 = vld [vmem:[%s8699_s3 + $0x20] ss:$36 sps:$4 sm:$0xff]   ;;  %v5721_v7 = vld [vmem:[%s8699_s3 + $0xac] ss:$36 sps:$4 sm:$0xff]  }
 0x13c   :  { %1564 = vmatprep.subr.bf16.mxu0 %v5648_v8  ;;  %v5719_v8 = vld [vmem:[%s8699_s3 + $0xa8] ss:$36 sps:$4 sm:$0xff]  }
 0x13e   :  { %1477 = vmatpush2.bf16.msra.mxu1 %v5643_v9  ;;  %v5724_v9 = vld [vmem:[%s8699_s3 + $0x64] ss:$36 sps:$4 sm:$0xff]  }
 0x13f   :  { %1565 = vmatpush2.bf16.msra.mxu0 %v5646_v10  ;;  %1478 = vmatprep.subr.bf16.mxu1 %v5651_v11  ;;  %v5722_v10 = vld [vmem:[%s8699_s3 + $0x60] ss:$36 sps:$4 sm:$0xff]  }
 0x140   :  { %1566 = vmatprep.subr.bf16.mxu0 %v5654_v12  ;;  %v5727_v11 = vld [vmem:[%s8699_s3 + $0x1c] ss:$36 sps:$4 sm:$0xff]  }
 0x141   :  { %v5725_v12 = vld [vmem:[%s8699_s3 + $0x18] ss:$36 sps:$4 sm:$0xff]  }
 0x142   :  { %1479 = vmatpush2.bf16.msra.mxu1 %v5649_v13  ;;  %v5730_v13 = vld [vmem:[%s8699_s3 + $0x454] ss:$36 sps:$4 sm:$0xff]  }
 0x143   :  { %1567 = vmatpush2.bf16.msra.mxu0 %v5652_v14  ;;  %1480 = vmatprep.subr.bf16.mxu1 %v5657_v16  ;;  %v5728_v14 = vld [vmem:[%s8699_s3 + $0x450] ss:$36 sps:$4 sm:$0xff]  }
 0x144   :  { %1568 = vmatprep.subr.bf16.mxu0 %v5660_v17  ;;  %v5733_v16 = vld [vmem:[%s8699_s3 + $0x40c] ss:$36 sps:$4 sm:$0xff]  }
 0x145   :  { %v5731_v17 = vld [vmem:[%s8699_s3 + $0x408] ss:$36 sps:$4 sm:$0xff]  }
 0x146   :  { %1481 = vmatpush2.bf16.msra.mxu1 %v5655_v19  ;;  %v5736_v19 = vld [vmem:[%s8699_s3 + $0x3c4] ss:$36 sps:$4 sm:$0xff]  }
 0x147   :  { %1569 = vmatpush2.bf16.msra.mxu0 %v5658_v20  ;;  %1482 = vmatprep.subr.bf16.mxu1 %v5663_v21  ;;  %v5734_v20 = vld [vmem:[%s8699_s3 + $0x3c0] ss:$36 sps:$4 sm:$0xff]  }
 0x148   :  { %1570 = vmatprep.subr.bf16.mxu0 %v5666_v22  ;;  %v5739_v21 = vld [vmem:[%s8699_s3 + $0x37c] ss:$36 sps:$4 sm:$0xff]  }
 0x149   :  { %v5737_v22 = vld [vmem:[%s8699_s3 + $0x378] ss:$36 sps:$4 sm:$0xff]  }
 0x14a   :  { %1483 = vmatpush2.bf16.msra.mxu1 %v5661_v24  ;;  %v5742_v24 = vld [vmem:[%s8699_s3 + $0x334] ss:$36 sps:$4 sm:$0xff]  }
 0x14b   :  { %1571 = vmatpush2.bf16.msra.mxu0 %v5664_v25  ;;  %1484 = vmatprep.subr.bf16.mxu1 %v5669_v26  ;;  %v5740_v25 = vld [vmem:[%s8699_s3 + $0x330] ss:$36 sps:$4 sm:$0xff]  }
 0x14c   :  { %1681 = vmatprep.subr.bf16.mxu0 %v5672_v27  ;;  %v5745_v26 = vld [vmem:[%s8699_s3 + $0x2ec] ss:$36 sps:$4 sm:$0xff]  }
 0x14d   :  { %v5743_v27 = vld [vmem:[%s8699_s3 + $0x2e8] ss:$36 sps:$4 sm:$0xff]  }
 0x14e   :  { %1485 = vmatpush2.bf16.msra.mxu1 %v5667_v28  ;;  %1573 = vmatmul.mubr.bf16.vlgmr.msra.gmra.mxu0 %v6626_v18  ;;  %v5748_v28 = vld [vmem:[%s8699_s3 + $0x2a4] ss:$36 sps:$4 sm:$0xff]  }
 0x14f   :  { %1682 = vmatpush1.bf16.msra.mxu0 %v5670_v29  ;;  %1509 = vmatprep.subr.bf16.mxu1 %v5675_v30  ;;  %v5746_v29 = vld [vmem:[%s8699_s3 + $0x2a0] ss:$36 sps:$4 sm:$0xff]  }
 0x150   :  { %1683 = vmatprep.subr.bf16.mxu0 %v5678_v31  ;;  %1701 = vmatprep.mubr.bf16.mxu0 %v8711_v53  ;;  %v5751_v30 = vld [vmem:[%s8699_s3 + $0x25c] ss:$36 sps:$4 sm:$0xff]  }
 0x151   :  { %1487 = vmatmul.mubr.bf16.vlgmr.msra.gmra.mxu1 %v6626_v18  ;;  %v5749_v31 = vld [vmem:[%s8699_s3 + $0x258] ss:$36 sps:$4 sm:$0xff]  }
 0x152   :  { %1510 = vmatpush1.bf16.msra.mxu1 %v5673_v32  ;;  %1529 = vmatprep.mubr.bf16.mxu1 %v8711_v53  ;;  %v5752_v32 = vld [vmem:[%s8699_s3 + $0x4e8] ss:$36 sps:$4 sm:$0xff]  }
 0x153   :  { %1684 = vmatpush1.bf16.msra.mxu0 %v5676_v33  ;;  %1511 = vmatprep.subr.bf16.mxu1 %v5681_v34  ;;  %v7021_v33 = vld [vmem:[%s8701_s5 + $0xec] ss:$16 sps:$4 sm:$0xff]   ;;  %v7026_v34 = vld [vmem:[%s8701_s5 + $0xe8] ss:$16 sps:$4 sm:$0xff]  }
 0x154   :  { %5315 = vmatprep.subr.bf16.mxu0 %v5682_v35  ;;  %8831 = vst [vmem:[#allocation13_spill] sm:$0xff] %v7021_v33  ;;  %v5753_v35 = vld [vmem:[%s8699_s3 + $0x4a0] ss:$36 sps:$4 sm:$0xff]  }
 0x156   :  { %1512 = vmatpush1.bf16.msra.mxu1 %v5679_v36  ;;  %5174 = vmatmul.mubr.msk.bf16.vlgmr.msra.gmra.mxu0 %vm1364_vm2, %v6636_v23  ;;  %v7039_v36 = vld [vmem:[%s8701_s5 + $0xe4] ss:$16 sps:$4 sm:$0xff]  }
 0x157   :  { %5316 = vmatpush3.bf16.msra.mxu0 %v5683_v37  ;;  %1744 = vmatprep.mubr.bf16.mxu0 %v6621_v15  ;;  %v7050_v37 = vld [vmem:[%s8701_s5 + $0xc8] ss:$16 sps:$4 sm:$0xff]  }
 0x158   :  { %1595 = vmatprep.subr.bf16.mxu1 %v5686_v38  ;;  %5317 = vmatprep.subr.bf16.mxu0 %v5687_v39  ;;  %v7056_v38 = vld [vmem:[%s8701_s5 + $0xe0] ss:$16 sps:$4 sm:$0xff]   ;;  %v7062_v39 = vld [vmem:[%s8701_s5 + $0xc4] ss:$16 sps:$4 sm:$0xff]  }
 0x159   :  { %5172 = vmatmul.mubr.msk.bf16.vlgmr.msra.gmra.mxu1 %vm1364_vm2, %v6636_v23  ;;  %8832 = vst [vmem:[#allocation14_spill] sm:$0xff] %v7056_v38  ;;  %8833 = vst [vmem:[#allocation15_spill] sm:$0xff] %v7062_v39 }
 0x15a   :  { %1596 = vmatpush1.bf16.msra.mxu1 %v5684_v40  ;;  %1615 = vmatprep.mubr.bf16.mxu1 %v8711_v53  ;;  %v7068_v40 = vld [vmem:[%s8701_s5 + $0xac] ss:$16 sps:$4 sm:$0xff]  }
 0x15b   :  { %5318 = vmatpush3.bf16.msra.mxu0 %v5688_v41  ;;  %1597 = vmatprep.subr.bf16.mxu1 %v5691_v42  ;;  %v7073_v41 = vld [vmem:[%s8701_s5 + $0xa8] ss:$16 sps:$4 sm:$0xff]   ;;  %v7082_v42 = vld [vmem:[%s8701_s5 + $0xc0] ss:$16 sps:$4 sm:$0xff]  }
 0x15c   :  { %5319 = vmatprep.subr.bf16.mxu0 %v5692_v43  ;;  %8834 = vst [vmem:[#allocation16_spill] sm:$0xff] %v7082_v42  ;;  %v7089_v43 = vld [vmem:[%s8701_s5 + $0xa4] ss:$16 sps:$4 sm:$0xff]  }
 0x15d   :  { %8835 = vst [vmem:[#allocation17_spill] sm:$0xff] %v7089_v43 }
 0x15e   :  { %1598 = vmatpush1.bf16.msra.mxu1 %v5689_v44  ;;  %v7100_v44 = vld [vmem:[%s8701_s5 + $0x88] ss:$16 sps:$4 sm:$0xff]  }
 0x15f   :  { %5320 = vmatpush3.bf16.msra.mxu0 %v5693_v45  ;;  %1626 = vmatprep.subr.bf16.mxu1 %v5696_v46  ;;  %v7107_v45 = vld [vmem:[%s8701_s5 + $0xa0] ss:$16 sps:$4 sm:$0xff]   ;;  %v7113_v46 = vld [vmem:[%s8701_s5 + $0x84] ss:$16 sps:$4 sm:$0xff]  }
 0x160   :  { %5321 = vmatprep.subr.bf16.mxu0 %v5697_v47  ;;  %8836 = vst [vmem:[#allocation18_spill] sm:$0xff] %v7107_v45  ;;  %8837 = vst [vmem:[#allocation19_spill] sm:$0xff] %v7113_v46  ;;  %v7119_v47 = vld [vmem:[%s8701_s5 + $0x6c] ss:$16 sps:$4 sm:$0xff]  }
 0x161   :  { %5173 = vmatmul.mubr.msk.bf16.vlgmr.msra.gmra.mxu1 %vm1364_vm2, %v6636_v23 }
 0x162   :  { %1627 = vmatpush1.bf16.msra.mxu1 %v5694_v48  ;;  %1658 = vmatprep.mubr.bf16.mxu1 %v6621_v15  ;;  %v5704_v15 = vld [vmem:[%s8699_s3 + $0x180] ss:$36 sps:$4 sm:$0xff]   ;;  %v7124_v48 = vld [vmem:[%s8701_s5 + $0x68] ss:$16 sps:$4 sm:$0xff]  }
 0x163   :  { %5322 = vmatpush3.bf16.msra.mxu0 %v5698_v49  ;;  %1628 = vmatprep.subr.bf16.mxu1 %v5701_v50  ;;  %v7131_v49 = vld [vmem:[%s8701_s5 + $0x80] ss:$16 sps:$4 sm:$0xff]   ;;  %v7137_v50 = vld [vmem:[%s8701_s5 + $0x64] ss:$16 sps:$4 sm:$0xff]  }
 0x164   :  { %5323 = vmatprep.subr.bf16.mxu0 %v5702_v51  ;;  %8838 = vst [vmem:[#allocation20_spill] sm:$0xff] %v7131_v49  ;;  %8839 = vst [vmem:[#allocation21_spill] sm:$0xff] %v7137_v50  ;;  %v7143_v51 = vld [vmem:[%s8701_s5 + $0x4c] ss:$16 sps:$4 sm:$0xff]  }
 0x166   :  { %1629 = vmatpush1.bf16.msra.mxu1 %v5699_v52  ;;  %v7148_v52 = vld [vmem:[%s8701_s5 + $0x48] ss:$16 sps:$4 sm:$0xff]  }
 0x167   :  { %5324 = vmatpush3.bf16.msra.mxu0 %v5703_v54  ;;  %1630 = vmatprep.subr.bf16.mxu1 %v5706_v58  ;;  %v7155_v54 = vld [vmem:[%s8701_s5 + $0x60] ss:$16 sps:$4 sm:$0xff]   ;;  %v7161_v58 = vld [vmem:[%s8701_s5 + $0x44] ss:$16 sps:$4 sm:$0xff]  }
 0x168   :  { %5325 = vmatprep.subr.bf16.mxu0 %v5707_v59  ;;  %8840 = vst [vmem:[#allocation22_spill] sm:$0xff] %v7155_v54  ;;  %8841 = vst [vmem:[#allocation23_spill] sm:$0xff] %v7161_v58  ;;  %v7167_v59 = vld [vmem:[%s8701_s5 + $0x2c] ss:$16 sps:$4 sm:$0xff]  }
 0x16a   :  { %1631 = vmatpush1.bf16.msra.mxu1 %v5704_v15  ;;  %v7172_v15 = vld [vmem:[%s8701_s5 + $0x28] ss:$16 sps:$4 sm:$0xff]  }
 0x16b   :  { %5326 = vmatpush3.bf16.msra.mxu0 %v5708_v60  ;;  %1632 = vmatprep.subr.bf16.mxu1 %v5711_v62  ;;  %v7179_v60 = vld [vmem:[%s8701_s5 + $0x40] ss:$16 sps:$4 sm:$0xff]   ;;  %v7185_v62 = vld [vmem:[%s8701_s5 + $0x24] ss:$16 sps:$4 sm:$0xff]  }
 0x16c   :  { %5327 = vmatprep.subr.bf16.mxu0 %v5712_v63  ;;  %8842 = vst [vmem:[#allocation24_spill] sm:$0xff] %v7179_v60  ;;  %8843 = vst [vmem:[#allocation25_spill] sm:$0xff] %v7185_v62  ;;  %v7191_v63 = vld [vmem:[%s8701_s5 + $0xc] ss:$16 sps:$4 sm:$0xff]  }
 0x16e   :  { %1633 = vmatpush1.bf16.msra.mxu1 %v5709_v1  ;;  %v7196_v1 = vld [vmem:[%s8701_s5 + $0x8] ss:$16 sps:$4 sm:$0xff]  }
 0x16f   :  { %5328 = vmatpush3.bf16.msra.mxu0 %v5713_v2  ;;  %1634 = vmatprep.subr.bf16.mxu1 %v5716_v3  ;;  %v7203_v2 = vld [vmem:[%s8701_s5 + $0x20] ss:$16 sps:$4 sm:$0xff]   ;;  %v7209_v3 = vld [vmem:[%s8701_s5 + $0x4] ss:$16 sps:$4 sm:$0xff]  }
 0x170   :  { %5329 = vmatprep.subr.bf16.mxu0 %v5717_v4  ;;  %8844 = vst [vmem:[#allocation26_spill] sm:$0xff] %v7203_v2  ;;  %8845 = vst [vmem:[#allocation27_spill] sm:$0xff] %v7209_v3  ;;  %v7216_v4 = vld [vmem:[%s8701_s5] ss:$16 sps:$4 sm:$0xff]  }
 0x171   :  { %8846 = vst [vmem:[#allocation28_spill] sm:$0xff] %v7216_v4 }
 0x172   :  { %1635 = vmatpush1.bf16.msra.mxu1 %v5714_v5  ;;  %v7223_v5 = vld [vmem:[%s8700_s4] sm:$0xff] }
 0x173   :  { %5330 = vmatpush3.bf16.msra.mxu0 %v5718_v6  ;;  %1636 = vmatprep.subr.bf16.mxu1 %v5721_v7  ;;  %v498_v6 = vrot.slane %v7223_v5, %v120_v56 }
 0x174   :  { %2118 = vmatprep.subr.bf16.mxu0 %v7021_v33 }
 0x176   :  { %1637 = vmatpush1.bf16.msra.mxu1 %v5719_v8  ;;  %1745 = vmatmul.mubr.bf16.vlgmr.msra.gmra.mxu0 %v6626_v18 }
 0x177   :  { %1638 = vmatprep.subr.bf16.mxu1 %v5724_v9  ;;  %2150 = vmatprep.mubr.bf16.mxu0 %v8711_v53  ;;  %v494_v9 = vrot.slane %v7223_v5, %v116_v57 }
 0x178   :  { %2119 = vmatpush1.bf16.msra.mxu0 %v7026_v34 }
 0x17a   :  { %1639 = vmatpush1.bf16.msra.mxu1 %v5722_v10 }
 0x17b   :  { %1640 = vmatprep.subr.bf16.mxu1 %v5727_v11 }
 0x17e   :  { %1641 = vmatpush1.bf16.msra.mxu1 %v5725_v12 }
 0x17f   :  { %1642 = vmatprep.subr.bf16.mxu1 %v5730_v13 }
 0x182   :  { %1643 = vmatpush2.bf16.msra.mxu1 %v5728_v14 }
 0x183   :  { %1644 = vmatprep.subr.bf16.mxu1 %v5733_v16 }
 0x186   :  { %1645 = vmatpush2.bf16.msra.mxu1 %v5731_v17 }
 0x187   :  { %1646 = vmatprep.subr.bf16.mxu1 %v5736_v19 }
 0x18a   :  { %1647 = vmatpush2.bf16.msra.mxu1 %v5734_v20 }
 0x18b   :  { %1648 = vmatprep.subr.bf16.mxu1 %v5739_v21 }
 0x18e   :  { %1649 = vmatpush2.bf16.msra.mxu1 %v5737_v22 }
 0x18f   :  { %1650 = vmatprep.subr.bf16.mxu1 %v5742_v24  ;;  %v7237_v24 = vld [vmem:[#allocation5 + $0xe4] ss:$16 sps:$4 sm:$0xff]  }
 0x190   :  { %8849 = vst [vmem:[#allocation31_spill] sm:$0xff] %v7237_v24 }
 0x192   :  { %1651 = vmatpush2.bf16.msra.mxu1 %v5740_v25  ;;  %v7239_v25 = vld [vmem:[#allocation5 + $0xec] ss:$16 sps:$4 sm:$0xff]  }
 0x193   :  { %1652 = vmatprep.subr.bf16.mxu1 %v5745_v26 }
 0x196   :  { %1653 = vmatpush2.bf16.msra.mxu1 %v5743_v27 }
 0x197   :  { %1654 = vmatprep.subr.bf16.mxu1 %v5748_v28  ;;  %v509_v28 = vsub.s32 4, %v6607_v55 }
 0x19a   :  { %1655 = vmatpush2.bf16.msra.mxu1 %v5746_v29 }
 0x19b   :  { %1656 = vmatprep.subr.bf16.mxu1 %v5751_v30  ;;  %v513_v30 = vsub.s32 5, %v6607_v55 }
 0x19e   :  { %1657 = vmatpush2.bf16.msra.mxu1 %v5749_v31 }
 0x19f   :  { %5420 = vmatprep.subr.bf16.mxu1 %v8709_v0 }
 0x1a1   :  { %1659 = vmatmul.mubr.bf16.vlgmr.msra.gmra.mxu1 %v6626_v18  ;;  %v7045_v18 = vld [vmem:[%s8701_s5 + $0xcc] ss:$16 sps:$4 sm:$0xff]  }
 0x1a2   :  { %5421 = vmatpush3.bf16.msra.mxu1 %v5752_v32  ;;  %5424 = vmatprep.mubr.msk.bf16.mxu1 %vm6393_vm3, %v8709_v0  ;;  %v7251_v32 = vrot.slane %v7223_v5, %v509_v28 }
 0x1a3   :  { %5422 = vmatprep.subr.bf16.mxu1 %v8709_v0  ;;  %2120 = vmatprep.subr.bf16.mxu0 %v7045_v18 }
 0x1a4   :  { %2121 = vmatpush1.bf16.msra.mxu0 %v7050_v37 }
 0x1a5   :  { %2122 = vmatprep.subr.bf16.mxu0 %v7068_v40 }
 0x1a6   :  { %5423 = vmatpush3.bf16.msra.mxu1 %v5753_v35 }
 0x1a7   :  { %2077 = vmatprep.subr.bf16.mxu1 %v7039_v36 }
 0x1a8   :  { %2123 = vmatpush1.bf16.msra.mxu0 %v7073_v41 }
 0x1a9   :  { %5425 = vmatmul.mubr.msk.bf16.vlgmr.msra.gmra.mxu1 %vm1364_vm2, %v6636_v23  ;;  %v7095_v23 = vld [vmem:[%s8701_s5 + $0x8c] ss:$16 sps:$4 sm:$0xff]  }
 0x1aa   :  { %2078 = vmatpush1.bf16.msra.mxu1 %v7056_v38  ;;  %2109 = vmatprep.mubr.bf16.mxu1 %v8711_v53 }
 0x1ab   :  { %2079 = vmatprep.subr.bf16.mxu1 %v7062_v39  ;;  %2124 = vmatprep.subr.bf16.mxu0 %v7095_v23 }
 0x1ac   :  { %2125 = vmatpush1.bf16.msra.mxu0 %v7100_v44 }
 0x1ad   :  { %2126 = vmatprep.subr.bf16.mxu0 %v7119_v47 }
 0x1ae   :  { %2080 = vmatpush1.bf16.msra.mxu1 %v7082_v42 }
 0x1af   :  { %2081 = vmatprep.subr.bf16.mxu1 %v7089_v43 }
 0x1b0   :  { %2127 = vmatpush1.bf16.msra.mxu0 %v7124_v48 }
 0x1b1   :  { %2128 = vmatprep.subr.bf16.mxu0 %v7143_v51 }
 0x1b2   :  { %2082 = vmatpush1.bf16.msra.mxu1 %v7107_v45 }
 0x1b3   :  { %2083 = vmatprep.subr.bf16.mxu1 %v7113_v46 }
 0x1b4   :  { %2129 = vmatpush1.bf16.msra.mxu0 %v7148_v52 }
 0x1b5   :  { %2130 = vmatprep.subr.bf16.mxu0 %v7167_v59 }
 0x1b6   :  { %2084 = vmatpush1.bf16.msra.mxu1 %v7131_v49 }
 0x1b7   :  { %2085 = vmatprep.subr.bf16.mxu1 %v7137_v50 }
 0x1b8   :  { %2131 = vmatpush1.bf16.msra.mxu0 %v7172_v15 }
 0x1b9   :  { %2132 = vmatprep.subr.bf16.mxu0 %v7191_v63 }
 0x1ba   :  { %2086 = vmatpush1.bf16.msra.mxu1 %v7155_v54 }
 0x1bb   :  { %2087 = vmatprep.subr.bf16.mxu1 %v7161_v58  ;;  %v7395_v58 = vld [vmem:[#allocation5 + $0x8] ss:$16 sps:$4 sm:$0xff]  }
 0x1bc   :  { %2133 = vmatpush1.bf16.msra.mxu0 %v7196_v1  ;;  %8873 = vst [vmem:[#allocation54_spill] sm:$0xff] %v7395_v58 }
 0x1bd   :  { %2404 = vmatprep.subr.bf16.mxu0 %v7239_v25 }
 0x1be   :  { %2088 = vmatpush1.bf16.msra.mxu1 %v7179_v60  ;;  %v517_v60 = vsub.s32 6, %v6607_v55 }
 0x1bf   :  { %2089 = vmatprep.subr.bf16.mxu1 %v7185_v62  ;;  %v7382_v62 = vld [vmem:[#allocation5 + $0x28] ss:$16 sps:$4 sm:$0xff]  }
 0x1c0   :  { %v518_v54 = vrot.slane %v7223_v5, %v517_v60 }
 0x1c2   :  { %2090 = vmatpush1.bf16.msra.mxu1 %v7203_v2  ;;  %v7376_v2 = vld [vmem:[#allocation5 + $0x2c] ss:$16 sps:$4 sm:$0xff]  }
 0x1c3   :  { %2091 = vmatprep.subr.bf16.mxu1 %v7209_v3  ;;  %v7351_v3 = vld [vmem:[#allocation5 + $0x6c] ss:$16 sps:$4 sm:$0xff]  }
 0x1c6   :  { %2092 = vmatpush1.bf16.msra.mxu1 %v7216_v4 }
 0x1c7   :  { %2363 = vmatprep.subr.bf16.mxu1 %v7237_v24  ;;  %v7343_v24 = vld [vmem:[#allocation5 + $0x88] ss:$16 sps:$4 sm:$0xff]  }
 0x1ce   :  { %v1402_v7 = vpop.f32.mrf.mxu0 }
 0x1cf   :  { %v1403_v57 = vadd.f32 %v1402_v7, %v494_v9  ;;  %v514_v7 = vrot.slane %v7223_v5, %v513_v30 }
 0x1d0   :  { %v1404_v8 = vpop.f32.mrf.mxu0 }
 0x1d1   :  { %v1405_v10 = vadd.f32 %v1404_v8, %v498_v6  ;;  %v1445_v11 = vpop.f32.mrf.mxu1  ;;  %v505_v8 = vsub.s32 3, %v6607_v55 }
 0x1d2   :  { %v1406_v12 = vpop.f32.mrf.mxu0  ;;  %v7243_v26 = vadd.f32 %v1445_v11, %v1403_v57  ;;  %v502_v11 = vrot.slane %v7223_v5, %v124_v61 }
 0x1d3   :  { %v1407_v13 = vadd.f32 %v1406_v12, %v494_v9  ;;  %v1447_v14 = vpop.f32.mrf.mxu1 }
 0x1d4   :  { %v7231_v16 = vadd.f32 %v1447_v14, %v1405_v10  ;;  %v1408_v17 = vpop.f32.mrf.mxu0  ;;  %v5176_v27 = vmul.f32 -1.442695, %v7243_v26 }
 0x1d5   :  { %v1409_v19 = vadd.f32 %v1408_v17, %v498_v6  ;;  %v1449_v20 = vpop.f32.mrf.mxu1 }
 0x1d6   :  { %v7233_v21 = vadd.f32 %v1449_v20, %v1407_v13  ;;  %5852 = vpow2.f32 %v5176_v27 }
 0x1d7   :  { %v1451_v22 = vpop.f32.mrf.mxu1 }
 0x1d8   :  { %8847 = vst [vmem:[#allocation29_spill] sm:$0xff] %v7233_v21  ;;  %v7235_v56 = vadd.f32 %v1451_v22, %v1409_v19  ;;  %v506_v19 = vrot.slane %v7223_v5, %v505_v8 }
 0x1da   :  { %8848 = vst [vmem:[#allocation30_spill] sm:$0xff] %v7235_v56 }
 0x1e3   :  { %v5853_v17 = vpop.eup %5852 }
 0x1e4   :  { %v1868_v28 = vadd.f32 1.0, %v5853_v17 }
 0x1e6   :  { %5854 = vrcp.f32 %v1868_v28 }
 0x20e   :  { %v7247_v29 = vpop.f32.mrf.mxu0 }
 0x210   :  { %v1576_v31 = vpop.f32.mrf.mxu0 }
 0x211   :  { %v1488_v35 = vpop.f32.mrf.mxu1 }
 0x212   :  { %v1578_v6 = vpop.f32.mrf.mxu0  ;;  %v1489_v57 = vadd.f32 %v1488_v35, %v502_v11 }
 0x213   :  { %v1579_v9 = vadd.f32 %v1578_v6, %v7251_v32  ;;  %v1490_v10 = vpop.f32.mrf.mxu1 }
 0x214   :  { %v1580_v12 = vpop.f32.mrf.mxu0  ;;  %v1491_v30 = vadd.f32 %v1490_v10, %v506_v19 }
 0x215   :  { %v1581_v13 = vadd.f32 %v1580_v12, %v514_v7  ;;  %v1492_v14 = vpop.f32.mrf.mxu1 }
 0x216   :  { %v1493_v20 = vadd.f32 %v1492_v14, %v502_v11  ;;  %v1577_v14 = vadd.f32 %v1576_v31, %v514_v7 }
 0x217   :  { %v1494_v22 = vpop.f32.mrf.mxu1 }
 0x218   :  { %v1495_v27 = vadd.f32 %v1494_v22, %v506_v19 }
 0x219   :  { %v1531_v0 = vpop.f32.mrf.mxu1 }
 0x21a   :  { %v7260_v53 = vadd.f32 %v1531_v0, %v1489_v57  ;;  %v7274_v57 = vpop.f32.mrf.mxu0 }
 0x21b   :  { %v1533_v6 = vpop.f32.mrf.mxu1 }
 0x21c   :  { %v5177_v21 = vmul.f32 -1.442695, %v7260_v53  ;;  %v7263_v56 = vadd.f32 %v1533_v6, %v1491_v30  ;;  %v7278_v6 = vpop.f32.mrf.mxu0 }
 0x21d   :  { %v1535_v61 = vpop.f32.mrf.mxu1 }
 0x21e   :  { %5856 = vpow2.f32 %v5177_v21  ;;  %v7265_v12 = vadd.f32 %v1535_v61, %v1493_v20  ;;  %v5855_v21 = vpop.eup %5854  ;;  %v7283_v31 = vpop.f32.mrf.mxu0 }
 0x21f   :  { %5858 = vtanh.f32 %v7263_v56  ;;  %v1537_v8 = vpop.f32.mrf.mxu1  ;;  %8854 = vst [vmem:[#allocation36_spill] sm:$0xff] %v7283_v31 }
 0x220   :  { %8850 = vst [vmem:[#allocation32_spill] sm:$0xff] %v7265_v12  ;;  %v7268_v35 = vadd.f32 %v1537_v8, %v1495_v27  ;;  %v7285_v7 = vpop.f32.mrf.mxu0  ;;  %v8860_v12 = vmov 0  }
 0x221   :  { %v1617_v11 = vpop.f32.mrf.mxu1 }
 0x222   :  { %8851 = vst [vmem:[#allocation33_spill] sm:$0xff] %v7268_v35  ;;  %v7307_v35 = vld [vmem:[#allocation5 + $0xc4] ss:$16 sps:$4 sm:$0xff]  }
 0x223   :  { %v1619_v10 = vpop.f32.mrf.mxu1  ;;  %8857 = vst [vmem:[#allocation39_spill] sm:$0xff] %v7307_v35 }
 0x224   :  { %v7270_v0 = vadd.f32 %v1619_v10, %v1577_v14 }
 0x225   :  { %v1621_v17 = vpop.f32.mrf.mxu1 }
 0x226   :  { %v7272_v19 = vadd.f32 %v1621_v17, %v1579_v9 }
 0x227   :  { %v1623_v22 = vpop.f32.mrf.mxu1 }
 0x228   :  { %8852 = vst [vmem:[#allocation34_spill] sm:$0xff] %v7272_v19  ;;  %v7276_v28 = vadd.f32 %v1623_v22, %v1581_v13 }
 0x22a   :  { %8853 = vst [vmem:[#allocation35_spill] sm:$0xff] %v7276_v28  ;;  %v7329_v28 = vld [vmem:[#allocation5 + $0xa8] ss:$16 sps:$4 sm:$0xff]  }
 0x22b   :  { %v5857_v20 = vpop.eup %5856 }
 0x22c   :  { %v5859_v30 = vpop.eup %5858  ;;  %v1869_v27 = vadd.f32 1.0, %v5857_v20  ;;  %v7298_v20 = vld [vmem:[#allocation5 + $0xe0] ss:$16 sps:$4 sm:$0xff]  }
 0x22d   :  { %v7280_v61 = vmul.f32 %v5859_v30, %v5855_v21  ;;  %v7296_v21 = vld [vmem:[%s8700_s4 + $0x8] ss:$0 sm:$0xff]  ;;  %8856 = vst [vmem:[#allocation38_spill] sm:$0xff] %v7298_v20  ;;  %s6394_s4 = smov 32  }
 0x22e   :  { %5860 = vrcp.f32 %v1869_v27  ;;  %v7300_v30 = vld [vmem:[#allocation5 + $0xe8] ss:$16 sps:$4 sm:$0xff]  }
 0x22f   :  { %5862 = vtanh.f32 %v7280_v61 }
 0x236   :  { %v7287_v9 = vpop.f32.mrf.mxu0 }
 0x238   :  { %v7289_v8 = vpop.f32.mrf.mxu0 }
 0x23a   :  { %v5334_v13 = vpop.f32.mrf.mxu0 }
 0x23b   :  { %v5861_v14 = vpop.eup %5860 }
 0x23c   :  { %v5863_v10 = vpop.eup %5862  ;;  %v5335_v17 = vpop.f32.mrf.mxu0 }
 0x23d   :  { %v5336_v22 = vadd.f32 %v5335_v17, %v5334_v13  ;;  %v7291_v19 = vmul.f32 %v5863_v10, %v5861_v14  ;;  %v7309_v13 = vld [vmem:[#allocation5 + $0xcc] ss:$16 sps:$4 sm:$0xff]   ;;  %v7313_v14 = vld [vmem:[#allocation5 + $0xc0] ss:$16 sps:$4 sm:$0xff]   ;;  %v7315_v10 = vld [vmem:[#allocation5 + $0xc8] ss:$16 sps:$4 sm:$0xff]  }
 0x23e   :  { %8858 = vst [vmem:[#allocation40_spill] sm:$0xff] %v7313_v14  ;;  %v7319_v17 = vld [vmem:[#allocation5 + $0xa4] ss:$16 sps:$4 sm:$0xff]  }
 0x23f   :  { %8855 = vst [vmem:[#allocation37_spill] sm:$0xff] %v7291_v19  ;;  %v1916_v27 = vpack.c.bf16 %v7291_v19, %v7291_v19  ;;  %v7305_v31 = vadd.f32 %v5336_v22, %v7296_v21  ;;  %8859 = vst [vmem:[#allocation41_spill] sm:$0xff] %v7319_v17  ;;  %v7321_v22 = vld [vmem:[#allocation5 + $0xac] ss:$16 sps:$4 sm:$0xff]   ;;  %v7333_v19 = vld [vmem:[#allocation5 + $0x84] ss:$16 sps:$4 sm:$0xff]  }
 0x240   :  { %8862 = vst [vmem:[#allocation43_spill] sm:$0xff] %v7333_v19 }
 0x241   :  { %2110 = vmatmul.mubr.bf16.vlgmr.msra.gmra.mxu1 %v1916_v27  ;;  %2151 = vmatmul.mubr.bf16.vlgmr.msra.gmra.mxu0 %v1916_v27  ;;  %v7327_v27 = vld [vmem:[#allocation5 + $0xa0] ss:$16 sps:$4 sm:$0xff]  }
 0x242   :  { %2364 = vmatpush1.bf16.msra.mxu1 %v7298_v20  ;;  %2405 = vmatpush1.bf16.msra.mxu0 %v7300_v30  ;;  %8861 = vst [vmem:[#allocation42_spill] sm:$0xff] %v7327_v27  ;;  %v1575_v20 = vadd.f32 %v7247_v29, %v7251_v32  ;;  %v7355_v29 = vld [vmem:[#allocation5 + $0x60] ss:$16 sps:$4 sm:$0xff]   ;;  %v7357_v32 = vld [vmem:[#allocation5 + $0x68] ss:$16 sps:$4 sm:$0xff]  }
 0x243   :  { %2365 = vmatprep.subr.bf16.mxu1 %v7307_v35  ;;  %2406 = vmatprep.subr.bf16.mxu0 %v7309_v13  ;;  %v7335_v35 = vld [vmem:[#allocation5 + $0x8c] ss:$16 sps:$4 sm:$0xff]   ;;  %8865 = vst [vmem:[#allocation46_spill] sm:$0xff] %v7355_v29 }
 0x244   :  { %2395 = vmatprep.mubr.bf16.mxu1 %v8860_v12  ;;  %2436 = vmatprep.mubr.bf16.mxu0 %v8860_v12  ;;  %v7345_v4 = vadd.f32 %v1617_v11, %v1575_v20  ;;  %v7362_v11 = vld [vmem:[#allocation5 + $0x44] ss:$16 sps:$4 sm:$0xff]   ;;  %v7364_v20 = vld [vmem:[#allocation5 + $0x4c] ss:$16 sps:$4 sm:$0xff]  }
 0x245   :  { %8866 = vst [vmem:[#allocation47_spill] sm:$0xff] %v7362_v11 }
 0x246   :  { %2366 = vmatpush1.bf16.msra.mxu1 %v7313_v14  ;;  %2407 = vmatpush1.bf16.msra.mxu0 %v7315_v10  ;;  %v7341_v14 = vld [vmem:[#allocation5 + $0x80] ss:$16 sps:$4 sm:$0xff]  }
 0x247   :  { %2367 = vmatprep.subr.bf16.mxu1 %v7319_v17  ;;  %2408 = vmatprep.subr.bf16.mxu0 %v7321_v22  ;;  %8863 = vst [vmem:[#allocation44_spill] sm:$0xff] %v7341_v14  ;;  %v7349_v17 = vld [vmem:[#allocation5 + $0x64] ss:$16 sps:$4 sm:$0xff]  }
 0x248   :  { %8864 = vst [vmem:[#allocation45_spill] sm:$0xff] %v7349_v17 }
 0x24a   :  { %2368 = vmatpush1.bf16.msra.mxu1 %v7327_v27  ;;  %2409 = vmatpush1.bf16.msra.mxu0 %v7329_v28  ;;  %v5178_v27 = vmul.f32 -1.442695, %v7345_v4 }
 0x24b   :  { %2369 = vmatprep.subr.bf16.mxu1 %v7333_v19  ;;  %2410 = vmatprep.subr.bf16.mxu0 %v7335_v35  ;;  %v7370_v19 = vld [vmem:[#allocation5 + $0x48] ss:$16 sps:$4 sm:$0xff]  }
 0x24c   :  { %5864 = vpow2.f32 %v5178_v27  ;;  %v7386_v27 = vld [vmem:[#allocation5 + $0x4] ss:$16 sps:$4 sm:$0xff]  }
 0x24d   :  { %8870 = vst [vmem:[#allocation51_spill] sm:$0xff] %v7386_v27 }
 0x24e   :  { %2370 = vmatpush1.bf16.msra.mxu1 %v7341_v14  ;;  %2411 = vmatpush1.bf16.msra.mxu0 %v7343_v24  ;;  %v7368_v14 = vld [vmem:[#allocation5 + $0x40] ss:$16 sps:$4 sm:$0xff]  }
 0x24f   :  { %2371 = vmatprep.subr.bf16.mxu1 %v7349_v17  ;;  %2412 = vmatprep.subr.bf16.mxu0 %v7351_v3  ;;  %8867 = vst [vmem:[#allocation48_spill] sm:$0xff] %v7368_v14  ;;  %v7374_v17 = vld [vmem:[#allocation5 + $0x24] ss:$16 sps:$4 sm:$0xff]  }
 0x250   :  { %8868 = vst [vmem:[#allocation49_spill] sm:$0xff] %v7374_v17 }
 0x252   :  { %2372 = vmatpush1.bf16.msra.mxu1 %v7355_v29  ;;  %2413 = vmatpush1.bf16.msra.mxu0 %v7357_v32  ;;  %v7380_v29 = vld [vmem:[#allocation5 + $0x20] ss:$16 sps:$4 sm:$0xff]  }
 0x253   :  { %2373 = vmatprep.subr.bf16.mxu1 %v7362_v11  ;;  %2414 = vmatprep.subr.bf16.mxu0 %v7364_v20  ;;  %8869 = vst [vmem:[#allocation50_spill] sm:$0xff] %v7380_v29  ;;  %v7388_v11 = vld [vmem:[#allocation5 + $0xc] ss:$16 sps:$4 sm:$0xff]  }
 0x254   :  { %8871 = vst [vmem:[#allocation52_spill] sm:$0xff] %v7388_v11 }
 0x256   :  { %2374 = vmatpush1.bf16.msra.mxu1 %v7368_v14  ;;  %2415 = vmatpush1.bf16.msra.mxu0 %v7370_v19  ;;  %v7393_v14 = vld [vmem:[#allocation5] ss:$16 sps:$4 sm:$0xff]  }
 0x257   :  { %2375 = vmatprep.subr.bf16.mxu1 %v7374_v17  ;;  %2416 = vmatprep.subr.bf16.mxu0 %v7376_v2  ;;  %8872 = vst [vmem:[#allocation53_spill] sm:$0xff] %v7393_v14  ;;  %v521_v17 = vsub.s32 7, %v6607_v55  ;;  %v5333_v55 = vadd.f32 %v7289_v8, %v7287_v9 }
 0x259   :  { %v5865_v50 = vpop.eup %5864  ;;  %v522_v49 = vrot.slane %v7223_v5, %v521_v17 }
 0x25a   :  { %2376 = vmatpush1.bf16.msra.mxu1 %v7380_v29  ;;  %2417 = vmatpush1.bf16.msra.mxu0 %v7382_v62  ;;  %v8874_v29 = vmov 0.0  }
 0x25b   :  { %2377 = vmatprep.subr.bf16.mxu1 %v7386_v27  ;;  %2418 = vmatprep.subr.bf16.mxu0 %v7388_v11  ;;  %v1884_v27 = vadd.f32 1.0, %v5865_v50  ;;  %v1747_v50 = vadd.f32 %v5333_v55, %v7296_v21 }
 0x25d   :  { %5866 = vrcp.f32 %v1884_v27 }
 0x25e   :  { %2378 = vmatpush1.bf16.msra.mxu1 %v7393_v14  ;;  %2419 = vmatpush1.bf16.msra.mxu0 %v7395_v58 }
 0x25f   :  { %2629 = vmatprep.subr.bf16.mxu0 %v7021_v33  ;;  %5428 = vmatprep.subr.bf16.mxu1 %v8874_v29 }
 0x261   :  { %v1660_v46 = vpop.f32.mrf.mxu1 }
 0x262   :  { %v1661_v45 = vadd.f32 %v1660_v46, %v518_v54 }
 0x263   :  { %v1662_v43 = vpop.f32.mrf.mxu1 }
 0x264   :  { %v7409_v60 = vadd.f32 %v7274_v57, %v1661_v45  ;;  %v1663_v14 = vadd.f32 %v1662_v43, %v522_v49 }
 0x265   :  { %v1664_v42 = vpop.f32.mrf.mxu1 }
 0x266   :  { %v5179_v39 = vmul.f32 -1.442695, %v7409_v60  ;;  %v7413_v38 = vadd.f32 %v7278_v6, %v1663_v14  ;;  %v7415_v33 = vadd.f32 %v1664_v42, %v518_v54 }
 0x267   :  { %v1666_v5 = vpop.f32.mrf.mxu1 }
 0x268   :  { %8875 = vst [vmem:[#allocation55_spill] sm:$0xff] %v7415_v33  ;;  %5868 = vpow2.f32 %v5179_v39  ;;  %v1667_v46 = vadd.f32 %v1666_v5, %v522_v49 }
 0x269   :  { %5870 = vtanh.f32 %v7413_v38  ;;  %v1787_v9 = vpop.f32.mrf.mxu1 }
 0x26a   :  { %v7420_v45 = vadd.f32 %v7285_v7, %v1667_v46  ;;  %v7422_v43 = vadd.f32 %v1787_v9, %v1747_v50  ;;  %v5867_v39 = vpop.eup %5866 }
 0x26b   :  { %v5426_v57 = vpop.f32.mrf.mxu1 }
 0x26c   :  { %8876 = vst [vmem:[#allocation56_spill] sm:$0xff] %v7420_v45  ;;  %8877 = vst [vmem:[#allocation57_spill] sm:$0xff] %v7422_v43  ;;  %5872 = vtanh.f32 %v7422_v43  ;;  %v5180_v5 = vmul.f32 -1.442695, %v7422_v43 }
 0x26d   :  { %v1790_v6 = vpop.f32.mrf.mxu1 }
 0x26e   :  { %v7426_v42 = vadd.f32 %v1790_v6, %v7305_v31 }
 0x26f   :  { %v5427_v54 = vpop.f32.mrf.mxu1 }
 0x270   :  { %8878 = vst [vmem:[#allocation58_spill] sm:$0xff] %v7426_v42 }
 0x275   :  { %v5869_v49 = vpop.eup %5868 }
 0x276   :  { %v5871_v8 = vpop.eup %5870  ;;  %v1885_v21 = vadd.f32 1.0, %v5869_v49 }
 0x277   :  { %v7428_v14 = vmul.f32 %v5871_v8, %v5867_v39 }
 0x278   :  { %5874 = vrcp.f32 %v1885_v21 }
 0x279   :  { %v5873_v17 = vpop.eup %5872  ;;  %5876 = vtanh.f32 %v7428_v14 }
 0x27a   :  { %1902 = vrot.lane.b32.xlu0 %v5873_v17, %s6394_s4  ;;  %5878 = vpow2.f32 %v5180_v5 }
 0x285   :  { %v5875_v7 = vpop.eup %5874 }
 0x286   :  { %v5877_v27 = vpop.eup %5876 }
 0x287   :  { %v7432_v55 = vmul.f32 %v5877_v27, %v5875_v7  ;;  %v5879_v46 = vpop.eup %5878 }
 0x288   :  { %v1897_v50 = vadd.f32 1.0, %v5879_v46 }
 0x289   :  { %8879 = vst [vmem:[#allocation59_spill] sm:$0xff] %v7432_v55  ;;  %v2202_v31 = vpack.c.bf16 %v7432_v55, %v7432_v55 }
 0x28a   :  { %5880 = vrcp.f32 %v1897_v50 }
 0x28b   :  { %2396 = vmatmul.mubr.bf16.vlgmr.msra.gmra.mxu1 %v2202_v31  ;;  %2437 = vmatmul.mubr.bf16.vlgmr.msra.gmra.mxu0 %v2202_v31 }
 0x28c   :  { %2630 = vmatpush1.bf16.msra.mxu0 %v7026_v34  ;;  %2661 = vmatprep.mubr.bf16.mxu0 %v8860_v12 }
 0x28d   :  { %2631 = vmatprep.subr.bf16.mxu0 %v7045_v18  ;;  %5432 = vmatprep.mubr.msk.bf16.mxu1 %vm6393_vm3, %v8874_v29 }
 0x290   :  { %2632 = vmatpush1.bf16.msra.mxu0 %v7050_v37 }
 0x291   :  { %2633 = vmatprep.subr.bf16.mxu0 %v7068_v40 }
 0x294   :  { %2634 = vmatpush1.bf16.msra.mxu0 %v7073_v41 }
 0x295   :  { %2635 = vmatprep.subr.bf16.mxu0 %v7095_v23 }
 0x297   :  { %v7456_v9 = vpop.eup %5880 }
 0x298   :  { %2636 = vmatpush1.bf16.msra.mxu0 %v7100_v44 }
 0x299   :  { %2637 = vmatprep.subr.bf16.mxu0 %v7119_v47 }
 0x29c   :  { %2638 = vmatpush1.bf16.msra.mxu0 %v7124_v48 }
 0x29d   :  { %2639 = vmatprep.subr.bf16.mxu0 %v7143_v51 }
 0x2a0   :  { %2640 = vmatpush1.bf16.msra.mxu0 %v7148_v52 }
 0x2a1   :  { %2641 = vmatprep.subr.bf16.mxu0 %v7167_v59 }
 0x2a4   :  { %2642 = vmatpush1.bf16.msra.mxu0 %v7172_v15 }
 0x2a5   :  { %2643 = vmatprep.subr.bf16.mxu0 %v7191_v63 }
 0x2a8   :  { %2644 = vmatpush1.bf16.msra.mxu0 %v7196_v1 }
 0x2a9   :  { %2758 = vmatprep.subr.bf16.mxu0 %v7239_v25 }
 0x2ec   :  { %v1903_v57 = vpop.permute.xlu0 %1902 }
 0x2ed   :  { %v1905_v6 = vmul.f32 %v7456_v9, %v1903_v57 }
 0x2ef   :  { %5882 = vtanh.f32 %v1905_v6  ;;  %v2559_v39 = vrot.slane %v1905_v6, 6  ;;  %v7463_v6 = vld [vmem:[#allocation7 + $0x8] sm:$0xff]  }
 0x2f0   :  { %5429 = vmatpush3.bf16.msra.mxu1 %v7463_v6 }
 0x2f1   :  { %5430 = vmatprep.subr.bf16.mxu1 %v8874_v29 }
 0x2fc   :  { %v5883_v54 = vpop.eup %5882 }
 0x2fd   :  { %1908 = vrot.lane.b32.xlu0 %v5883_v54, %s6386_s19 }
 0x301   :  { %v2111_v49 = vpop.f32.mrf.mxu1  ;;  %v2152_v8 = vpop.f32.mrf.mxu0  ;;  %2560 = vrot.lane.b32.xlu0 %v2559_v39, %s6394_s4  ;;  %v7466_v39 = vld [vmem:[#allocation7] sm:$0xff]  }
 0x302   :  { %v2163_v21 = vrot.slane %v2111_v49, 6  ;;  %v2165_v33 = vrot.slane %v2152_v8, 6  ;;  %5431 = vmatpush3.bf16.msra.mxu1 %v7466_v39 }
 0x303   :  { %v2113_v17 = vpop.f32.mrf.mxu1  ;;  %v2154_v7 = vpop.f32.mrf.mxu0  ;;  %2588 = vmatprep.subr.bf16.mxu1 %v7039_v36 }
 0x304   :  { %v2171_v27 = vadd.f32 %v2163_v21, %v7243_v26  ;;  %v2164_v31 = vrot.slane %v2113_v17, 6  ;;  %v2173_v49 = vadd.f32 %v2165_v33, %v7260_v53  ;;  %v2166_v21 = vrot.slane %v2154_v7, 6 }
 0x305   :  { %v2115_v5 = vpop.f32.mrf.mxu1  ;;  %v2156_v46 = vpop.f32.mrf.mxu0  ;;  %v2195_v33 = vrot.slane %v7280_v61, 6 }
 0x306   :  { %v5213_v50 = vmul.f32 -1.442695, %v2171_v27  ;;  %v2172_v57 = vadd.f32 %v2164_v31, %v7231_v16  ;;  %v2174_v17 = vadd.f32 %v2166_v21, %v7263_v56 }
 0x307   :  { %v2116_v42 = vpop.f32.mrf.mxu1  ;;  %v2157_v45 = vpop.f32.mrf.mxu0 }
 0x308   :  { %5884 = vpow2.f32 %v5213_v50  ;;  %v5214_v54 = vmul.f32 -1.442695, %v2172_v57  ;;  %v5215_v45 = vmul.f32 -1.442695, %v2173_v49 }
 0x30a   :  { %5886 = vpow2.f32 %v5214_v54 }
 0x30b   :  { %5888 = vpow2.f32 %v5215_v45 }
 0x315   :  { %v5885_v42 = vpop.eup %5884 }
 0x316   :  { %v2184_v27 = vadd.f32 1.0, %v5885_v42 }
 0x317   :  { %v5887_v31 = vpop.eup %5886 }
 0x318   :  { %5890 = vrcp.f32 %v2184_v27  ;;  %v2185_v8 = vadd.f32 1.0, %v5887_v31  ;;  %v5889_v5 = vpop.eup %5888 }
 0x319   :  { %5892 = vtanh.f32 %v2174_v17  ;;  %v2186_v7 = vadd.f32 1.0, %v5889_v5 }
 0x31a   :  { %5894 = vrcp.f32 %v2185_v8 }
 0x31b   :  { %5896 = vrcp.f32 %v2186_v7 }
 0x325   :  { %v5891_v46 = vpop.eup %5890 }
 0x326   :  { %v5893_v50 = vpop.eup %5892 }
 0x327   :  { %v5895_v57 = vpop.eup %5894  ;;  %v2198_v55 = vmul.f32 %v5893_v50, %v5891_v46 }
 0x328   :  { %v2197_v54 = vmul.f32 %v5895_v57, %v2195_v33  ;;  %v5897_v21 = vpop.eup %5896 }
 0x32a   :  { %v7474_v49 = vadd.f32 %v2198_v55, %v2197_v54 }
 0x32c   :  { %5898 = vtanh.f32 %v7474_v49 }
 0x339   :  { %v5899_v45 = vpop.eup %5898 }
 0x33a   :  { %v7477_v42 = vmul.f32 %v5899_v45, %v5897_v21 }
 0x33c   :  { %v2584_v17 = vpack.c.bf16 %v7477_v42, %v7477_v42 }
 0x33e   :  { %v7481_v27 = vrot.slane %v2584_v17, 1 }
 0x340   :  { %2662 = vmatmul.mubr.bf16.vlgmr.msra.gmra.mxu0 %v7481_v27 }
 0x341   :  { %2759 = vmatpush1.bf16.msra.mxu0 %v7300_v30  ;;  %2790 = vmatprep.mubr.bf16.mxu0 %v8860_v12 }
 0x342   :  { %2760 = vmatprep.subr.bf16.mxu0 %v7309_v13 }
 0x345   :  { %2761 = vmatpush1.bf16.msra.mxu0 %v7315_v10 }
 0x346   :  { %2762 = vmatprep.subr.bf16.mxu0 %v7321_v22 }
 0x349   :  { %2763 = vmatpush1.bf16.msra.mxu0 %v7329_v28 }
 0x34a   :  { %2764 = vmatprep.subr.bf16.mxu0 %v7335_v35 }
 0x34b   :  { %v2397_v61 = vpop.f32.mrf.mxu1  ;;  %v2438_v55 = vpop.f32.mrf.mxu0 }
 0x34c   :  { %v2449_v31 = vrot.slane %v2397_v61, 6  ;;  %v2451_v61 = vrot.slane %v2438_v55, 6 }
 0x34d   :  { %v2399_v8 = vpop.f32.mrf.mxu1  ;;  %v2440_v5 = vpop.f32.mrf.mxu0  ;;  %2765 = vmatpush1.bf16.msra.mxu0 %v7343_v24 }
 0x34e   :  { %v2457_v46 = vadd.f32 %v2449_v31, %v7345_v4  ;;  %v2450_v50 = vrot.slane %v2399_v8, 6  ;;  %2766 = vmatprep.subr.bf16.mxu0 %v7351_v3  ;;  %v2459_v31 = vadd.f32 %v2451_v61, %v7409_v60  ;;  %v2452_v8 = vrot.slane %v2440_v5, 6 }
 0x34f   :  { %v2401_v33 = vpop.f32.mrf.mxu1  ;;  %v2442_v57 = vpop.f32.mrf.mxu0  ;;  %v2481_v5 = vrot.slane %v7428_v14, 6 }
 0x350   :  { %v5248_v7 = vmul.f32 -1.442695, %v2457_v46  ;;  %v2458_v54 = vadd.f32 %v2450_v50, %v7270_v0  ;;  %v5250_v46 = vmul.f32 -1.442695, %v2459_v31  ;;  %v8880_v50 = vld [vmem:[#allocation13_spill] sm:$0xff]  ;;  %v2460_v57 = vadd.f32 %v2452_v8, %v7413_v38 }
 0x351   :  { %v2402_v21 = vpop.f32.mrf.mxu1  ;;  %v2443_v45 = vpop.f32.mrf.mxu0  ;;  %2767 = vmatpush1.bf16.msra.mxu0 %v7357_v32 }
 0x352   :  { %5900 = vpow2.f32 %v5248_v7  ;;  %v5249_v17 = vmul.f32 -1.442695, %v2458_v54  ;;  %2768 = vmatprep.subr.bf16.mxu0 %v7364_v20 }
 0x354   :  { %5902 = vpow2.f32 %v5249_v17 }
 0x355   :  { %2769 = vmatpush1.bf16.msra.mxu0 %v7370_v19  ;;  %5904 = vpow2.f32 %v5250_v46 }
 0x356   :  { %2770 = vmatprep.subr.bf16.mxu0 %v7376_v2 }
 0x359   :  { %2771 = vmatpush1.bf16.msra.mxu0 %v7382_v62 }
 0x35a   :  { %2772 = vmatprep.subr.bf16.mxu0 %v7388_v11 }
 0x35d   :  { %2773 = vmatpush1.bf16.msra.mxu0 %v7395_v58 }
 0x35e   :  { %2970 = vmatprep.subr.bf16.mxu0 %v8880_v50 }
 0x35f   :  { %v5901_v33 = vpop.eup %5900 }
 0x360   :  { %v2470_v55 = vadd.f32 1.0, %v5901_v33 }
 0x361   :  { %v5903_v7 = vpop.eup %5902 }
 0x362   :  { %5906 = vrcp.f32 %v2470_v55  ;;  %v2471_v54 = vadd.f32 1.0, %v5903_v7  ;;  %v5905_v21 = vpop.eup %5904 }
 0x363   :  { %5908 = vtanh.f32 %v2460_v57  ;;  %v2472_v58 = vadd.f32 1.0, %v5905_v21  ;;  %v8897_v21 = vld [vmem:[#allocation31_spill] sm:$0xff] }
 0x364   :  { %5910 = vrcp.f32 %v2471_v54 }
 0x365   :  { %5912 = vrcp.f32 %v2472_v58  ;;  %v8892_v58 = vld [vmem:[#allocation24_spill] sm:$0xff] }
 0x36f   :  { %v5907_v45 = vpop.eup %5906  ;;  %v1909_v17 = vpop.permute.xlu0 %1908 }
 0x370   :  { %v5909_v61 = vpop.eup %5908  ;;  %v7507_v31 = vmul.f32 %v7456_v9, %v1909_v17  ;;  %v8898_v17 = vld [vmem:[#allocation38_spill] sm:$0xff] }
 0x371   :  { %v5911_v50 = vpop.eup %5910  ;;  %v2484_v8 = vmul.f32 %v5909_v61, %v5907_v45  ;;  %v8899_v61 = vld [vmem:[#allocation39_spill] sm:$0xff] }
 0x372   :  { %8881 = vst [vmem:[#allocation13_spill] sm:$0xff] %v7507_v31  ;;  %v2483_v11 = vmul.f32 %v5911_v50, %v2481_v5  ;;  %v2488_v46 = vpack.c.bf16 %v7507_v31, %v7507_v31  ;;  %v5913_v57 = vpop.eup %5912  ;;  %v8900_v5 = vld [vmem:[#allocation40_spill] sm:$0xff]  ;;  %v8901_v50 = vld [vmem:[#allocation41_spill] sm:$0xff] }
 0x374   :  { %v7511_v33 = vadd.f32 %v2484_v8, %v2483_v11  ;;  %2490 = vrot.lane.b32.xlu1 %v2488_v46, %s6386_s19  ;;  %v8896_v11 = vld [vmem:[#allocation28_spill] sm:$0xff]  ;;  %v8902_v8 = vld [vmem:[#allocation42_spill] sm:$0xff]  ;;  %v8903_v46 = vld [vmem:[#allocation43_spill] sm:$0xff] }
 0x376   :  { %5914 = vtanh.f32 %v7511_v33 }
 0x383   :  { %v5915_v55 = vpop.eup %5914 }
 0x384   :  { %v7515_v14 = vmul.f32 %v5915_v55, %v5913_v57  ;;  %v8904_v57 = vld [vmem:[#allocation44_spill] sm:$0xff]  ;;  %v8905_v55 = vld [vmem:[#allocation45_spill] sm:$0xff] }
 0x386   :  { %v2713_v9 = vpack.c.bf16 %v7515_v14, %v7515_v14 }
 0x388   :  { %v2715_v7 = vrot.slane %v2713_v9, 1  ;;  %v8906_v9 = vld [vmem:[#allocation46_spill] sm:$0xff] }
 0x38a   :  { %2791 = vmatmul.mubr.bf16.vlgmr.msra.gmra.mxu0 %v2715_v7 }
 0x38b   :  { %2971 = vmatpush1.bf16.msra.mxu0 %v7026_v34  ;;  %3002 = vmatprep.mubr.bf16.mxu0 %v8860_v12 }
 0x38c   :  { %2972 = vmatprep.subr.bf16.mxu0 %v7045_v18  ;;  %v8882_v18 = vld [vmem:[#allocation14_spill] sm:$0xff] }
 0x38f   :  { %2973 = vmatpush1.bf16.msra.mxu0 %v7050_v37  ;;  %v8883_v37 = vld [vmem:[#allocation15_spill] sm:$0xff] }
 0x390   :  { %2974 = vmatprep.subr.bf16.mxu0 %v7068_v40  ;;  %v8884_v40 = vld [vmem:[#allocation16_spill] sm:$0xff] }
 0x393   :  { %2975 = vmatpush1.bf16.msra.mxu0 %v7073_v41  ;;  %v8885_v41 = vld [vmem:[#allocation17_spill] sm:$0xff] }
 0x394   :  { %2976 = vmatprep.subr.bf16.mxu0 %v7095_v23  ;;  %v8886_v23 = vld [vmem:[#allocation18_spill] sm:$0xff] }
 0x397   :  { %2977 = vmatpush1.bf16.msra.mxu0 %v7100_v44  ;;  %v8887_v44 = vld [vmem:[#allocation19_spill] sm:$0xff] }
 0x398   :  { %2978 = vmatprep.subr.bf16.mxu0 %v7119_v47  ;;  %v8888_v47 = vld [vmem:[#allocation20_spill] sm:$0xff] }
 0x39b   :  { %2979 = vmatpush1.bf16.msra.mxu0 %v7124_v48  ;;  %v8889_v48 = vld [vmem:[#allocation21_spill] sm:$0xff] }
 0x39c   :  { %2980 = vmatprep.subr.bf16.mxu0 %v7143_v51  ;;  %v8890_v51 = vld [vmem:[#allocation22_spill] sm:$0xff] }
 0x39f   :  { %2981 = vmatpush1.bf16.msra.mxu0 %v7148_v52  ;;  %v8891_v52 = vld [vmem:[#allocation23_spill] sm:$0xff] }
 0x3a0   :  { %2982 = vmatprep.subr.bf16.mxu0 %v7167_v59  ;;  %v8893_v59 = vld [vmem:[#allocation25_spill] sm:$0xff] }
 0x3a3   :  { %2983 = vmatpush1.bf16.msra.mxu0 %v7172_v15  ;;  %v8894_v15 = vld [vmem:[#allocation26_spill] sm:$0xff] }
 0x3a4   :  { %2984 = vmatprep.subr.bf16.mxu0 %v7191_v63 }
 0x3a7   :  { %2985 = vmatpush1.bf16.msra.mxu0 %v7196_v1  ;;  %v8895_v1 = vld [vmem:[#allocation27_spill] sm:$0xff] }
 0x3a8   :  { %3099 = vmatprep.subr.bf16.mxu0 %v7239_v25 }
 0x3e6   :  { %v2491_v34 = vpop.permute.xlu1 %2490 }
 0x3e7   :  { %5433 = vmatmul.mubr.msk.bf16.vlgmr.msra.gmra.mxu1 %vm1364_vm2, %v2491_v34  ;;  %v8908_v34 = vld [vmem:[#allocation48_spill] sm:$0xff] }
 0x3e8   :  { %2589 = vmatpush1.bf16.msra.mxu1 %v8882_v18  ;;  %2620 = vmatprep.mubr.bf16.mxu1 %v8860_v12  ;;  %v8909_v18 = vld [vmem:[#allocation49_spill] sm:$0xff] }
 0x3e9   :  { %2590 = vmatprep.subr.bf16.mxu1 %v8883_v37  ;;  %v8910_v37 = vld [vmem:[#allocation50_spill] sm:$0xff] }
 0x3ec   :  { %2591 = vmatpush1.bf16.msra.mxu1 %v8884_v40  ;;  %v8911_v40 = vld [vmem:[#allocation51_spill] sm:$0xff] }
 0x3ed   :  { %2592 = vmatprep.subr.bf16.mxu1 %v8885_v41  ;;  %v8912_v41 = vld [vmem:[#allocation53_spill] sm:$0xff] }
 0x3f0   :  { %2593 = vmatpush1.bf16.msra.mxu1 %v8886_v23 }
 0x3f1   :  { %2594 = vmatprep.subr.bf16.mxu1 %v8887_v44 }
 0x3f4   :  { %2595 = vmatpush1.bf16.msra.mxu1 %v8888_v47 }
 0x3f5   :  { %2596 = vmatprep.subr.bf16.mxu1 %v8889_v48 }
 0x3f8   :  { %2597 = vmatpush1.bf16.msra.mxu1 %v8890_v51 }
 0x3f9   :  { %2598 = vmatprep.subr.bf16.mxu1 %v8891_v52 }
 0x3fc   :  { %2599 = vmatpush1.bf16.msra.mxu1 %v8892_v58 }
 0x3fd   :  { %2600 = vmatprep.subr.bf16.mxu1 %v8893_v59 }
 0x400   :  { %2601 = vmatpush1.bf16.msra.mxu1 %v8894_v15  ;;  %v2663_v63 = vpop.f32.mrf.mxu0 }
 0x401   :  { %2602 = vmatprep.subr.bf16.mxu1 %v8895_v1 }
 0x402   :  { %v2665_v25 = vpop.f32.mrf.mxu0 }
 0x404   :  { %2603 = vmatpush1.bf16.msra.mxu1 %v8896_v11  ;;  %v2667_v54 = vpop.f32.mrf.mxu0 }
 0x405   :  { %2717 = vmatprep.subr.bf16.mxu1 %v8897_v21 }
 0x406   :  { %v2668_v45 = vpop.f32.mrf.mxu0 }
 0x407   :  { %2621 = vmatmul.mubr.bf16.vlgmr.msra.gmra.mxu1 %v7481_v27  ;;  %v8907_v27 = vld [vmem:[#allocation47_spill] sm:$0xff] }
 0x408   :  { %2718 = vmatpush1.bf16.msra.mxu1 %v8898_v17  ;;  %2749 = vmatprep.mubr.bf16.mxu1 %v8860_v12 }
 0x409   :  { %2719 = vmatprep.subr.bf16.mxu1 %v8899_v61 }
 0x40c   :  { %2720 = vmatpush1.bf16.msra.mxu1 %v8900_v5 }
 0x40d   :  { %2721 = vmatprep.subr.bf16.mxu1 %v8901_v50 }
 0x410   :  { %2722 = vmatpush1.bf16.msra.mxu1 %v8902_v8 }
 0x411   :  { %2723 = vmatprep.subr.bf16.mxu1 %v8903_v46 }
 0x414   :  { %2724 = vmatpush1.bf16.msra.mxu1 %v8904_v57 }
 0x415   :  { %2725 = vmatprep.subr.bf16.mxu1 %v8905_v55 }
 0x418   :  { %2726 = vmatpush1.bf16.msra.mxu1 %v8906_v9 }
 0x419   :  { %2727 = vmatprep.subr.bf16.mxu1 %v8907_v27 }
 0x41c   :  { %2728 = vmatpush1.bf16.msra.mxu1 %v8908_v34 }
 0x41d   :  { %2729 = vmatprep.subr.bf16.mxu1 %v8909_v18 }
 0x420   :  { %2730 = vmatpush1.bf16.msra.mxu1 %v8910_v37 }
 0x421   :  { %2731 = vmatprep.subr.bf16.mxu1 %v8911_v40 }
 0x424   :  { %2732 = vmatpush1.bf16.msra.mxu1 %v8912_v41 }
 0x425   :  { %5436 = vmatprep.subr.bf16.mxu1 %v8874_v29 }
 0x427   :  { %2750 = vmatmul.mubr.bf16.vlgmr.msra.gmra.mxu1 %v2715_v7 }
 0x428   :  { %5437 = vmatpush3.bf16.msra.mxu1 %v7463_v6  ;;  %5440 = vmatprep.mubr.msk.bf16.mxu1 %vm6393_vm3, %v8874_v29 }
 0x429   :  { %5438 = vmatprep.subr.bf16.mxu1 %v8874_v29 }
 0x42c   :  { %5439 = vmatpush3.bf16.msra.mxu1 %v7466_v39 }
 0x42d   :  { %2929 = vmatprep.subr.bf16.mxu1 %v7039_v36 }
 0x44a   :  { %v7578_v23 = vpop.f32.mrf.mxu0 }
 0x44c   :  { %v7580_v44 = vpop.f32.mrf.mxu0 }
 0x44e   :  { %v2796_v47 = vpop.f32.mrf.mxu0 }
 0x450   :  { %v2797_v48 = vpop.f32.mrf.mxu0 }
 0x4a7   :  { %v2541_v51 = vpop.f32.mrf.mxu1 }
 0x4a8   :  { %v2548_v52 = vrot.slane %v2541_v51, 6 }
 0x4a9   :  { %v5434_v7 = vpop.f32.mrf.mxu1 }
 0x4aa   :  { %v7583_v58 = vadd.f32 %v2548_v52, %v7422_v43  ;;  %v2676_v52 = vrot.slane %v2663_v63, 4 }
 0x4ab   :  { %v2544_v59 = vpop.f32.mrf.mxu1 }
 0x4ac   :  { %5916 = vtanh.f32 %v7583_v58  ;;  %v2684_v7 = vadd.f32 %v2676_v52, %v7260_v53  ;;  %v2677_v59 = vrot.slane %v2665_v25, 4 }
 0x4ad   :  { %v5435_v15 = vpop.f32.mrf.mxu1 }
 0x4ae   :  { %v5257_v15 = vmul.f32 -1.442695, %v2684_v7 }
 0x4b9   :  { %v5917_v1 = vpop.eup %5916 }
 0x4ba   :  { %2565 = vrot.lane.b32.xlu1 %v5917_v1, %s6394_s4 }
 0x4c7   :  { %v2622_v36 = vpop.f32.mrf.mxu1 }
 0x4c8   :  { %v2674_v11 = vrot.slane %v2622_v36, 4  ;;  %v2685_v36 = vadd.f32 %v2677_v59, %v7263_v56 }
 0x4c9   :  { %v2624_v54 = vpop.f32.mrf.mxu1 }
 0x4ca   :  { %v2682_v21 = vadd.f32 %v2674_v11, %v7243_v26  ;;  %v2675_v45 = vrot.slane %v2624_v54, 4 }
 0x4cb   :  { %v2626_v17 = vpop.f32.mrf.mxu1 }
 0x4cc   :  { %v5255_v61 = vmul.f32 -1.442695, %v2682_v21  ;;  %v2683_v47 = vadd.f32 %v2675_v45, %v7231_v16 }
 0x4cd   :  { %v2627_v48 = vpop.f32.mrf.mxu1 }
 0x4ce   :  { %5918 = vpow2.f32 %v5255_v61  ;;  %v5256_v51 = vmul.f32 -1.442695, %v2683_v47 }
 0x4d0   :  { %5920 = vpow2.f32 %v5256_v51  ;;  %v2706_v51 = vrot.slane %v7474_v49, 6 }
 0x4d1   :  { %5922 = vpow2.f32 %v5257_v15 }
 0x4db   :  { %v5919_v1 = vpop.eup %5918 }
 0x4dc   :  { %v2695_v31 = vadd.f32 1.0, %v5919_v1 }
 0x4dd   :  { %v5921_v43 = vpop.eup %5920 }
 0x4de   :  { %5924 = vrcp.f32 %v2695_v31  ;;  %v2696_v11 = vadd.f32 1.0, %v5921_v43  ;;  %v5923_v17 = vpop.eup %5922 }
 0x4df   :  { %5926 = vtanh.f32 %v2685_v36  ;;  %v2697_v31 = vadd.f32 1.0, %v5923_v17 }
 0x4e0   :  { %5928 = vrcp.f32 %v2696_v11 }
 0x4e7   :  { %v2751_v54 = vpop.f32.mrf.mxu1 }
 0x4e8   :  { %v2803_v21 = vrot.slane %v2751_v54, 4  ;;  %v2805_v54 = vrot.slane %v7578_v23, 4 }
 0x4e9   :  { %v2753_v45 = vpop.f32.mrf.mxu1 }
 0x4ea   :  { %v2811_v63 = vadd.f32 %v2803_v21, %v7345_v4  ;;  %v2804_v61 = vrot.slane %v2753_v45, 4  ;;  %v2813_v49 = vadd.f32 %v2805_v54, %v7409_v60  ;;  %v2806_v21 = vrot.slane %v7580_v44, 4 }
 0x4eb   :  { %v5925_v47 = vpop.eup %5924  ;;  %v2755_v25 = vpop.f32.mrf.mxu1 }
 0x4ec   :  { %v5927_v48 = vpop.eup %5926  ;;  %v5258_v52 = vmul.f32 -1.442695, %v2811_v63  ;;  %v2812_v7 = vadd.f32 %v2804_v61, %v7270_v0  ;;  %v5260_v45 = vmul.f32 -1.442695, %v2813_v49  ;;  %v2814_v17 = vadd.f32 %v2806_v21, %v7413_v38 }
 0x4ed   :  { %v5929_v59 = vpop.eup %5928  ;;  %v2756_v43 = vpop.f32.mrf.mxu1  ;;  %v2709_v15 = vmul.f32 %v5927_v48, %v5925_v47 }
 0x4ee   :  { %v2708_v1 = vmul.f32 %v5929_v59, %v2706_v51  ;;  %5930 = vpow2.f32 %v5258_v52  ;;  %v5259_v36 = vmul.f32 -1.442695, %v2812_v7  ;;  %v8913_v52 = vld [vmem:[#allocation37_spill] sm:$0xff]  ;;  %v5254_v43 = vmul.f32 -1.442695, %v7583_v58 }
 0x4ef   :  { %v4597_v44 = vsel %vm4596_vm4, %v8913_v52, %v7477_v42  ;;  %v7693_v52 = vld [vmem:[%s8701_s5 + $0x64] ss:$16 sps:$4 sm:$0xff]  }
 0x4f0   :  { %v7594_v11 = vadd.f32 %v2709_v15, %v2708_v1  ;;  %5932 = vpow2.f32 %v5259_v36  ;;  %v2835_v36 = vrot.slane %v7511_v33, 6  ;;  %8924 = vst [vmem:[#allocation21_spill] sm:$0xff] %v7693_v52 }
 0x4f1   :  { %5934 = vrcp.f32 %v2697_v31 }
 0x4f2   :  { %5936 = vtanh.f32 %v7594_v11 }
 0x4f3   :  { %5938 = vpow2.f32 %v5260_v45  ;;  %v8916_v45 = vld [vmem:[#allocation54_spill] sm:$0xff] }
 0x4fb   :  { %v5931_v63 = vpop.eup %5930 }
 0x4fc   :  { %v2824_v61 = vadd.f32 1.0, %v5931_v63  ;;  %v7662_v63 = vld [vmem:[%s8701_s5 + $0xc0] ss:$16 sps:$4 sm:$0xff]  }
 0x4fd   :  { %v5933_v47 = vpop.eup %5932  ;;  %8919 = vst [vmem:[#allocation16_spill] sm:$0xff] %v7662_v63 }
 0x4fe   :  { %v5935_v25 = vpop.eup %5934  ;;  %5940 = vrcp.f32 %v2824_v61  ;;  %v2825_v48 = vadd.f32 1.0, %v5933_v47  ;;  %v7668_v47 = vld [vmem:[%s8701_s5 + $0xa4] ss:$16 sps:$4 sm:$0xff]  }
 0x4ff   :  { %v5937_v51 = vpop.eup %5936  ;;  %5942 = vtanh.f32 %v2814_v17  ;;  %8920 = vst [vmem:[#allocation17_spill] sm:$0xff] %v7668_v47 }
 0x500   :  { %5944 = vrcp.f32 %v2825_v48  ;;  %v2712_v23 = vmul.f32 %v5937_v51, %v5935_v25  ;;  %v5939_v15 = vpop.eup %5938  ;;  %v7675_v48 = vld [vmem:[%s8701_s5 + $0xa0] ss:$16 sps:$4 sm:$0xff]   ;;  %v7681_v51 = vld [vmem:[%s8701_s5 + $0x84] ss:$16 sps:$4 sm:$0xff]  }
 0x501   :  { %5946 = vpow2.f32 %v5254_v43  ;;  %v2826_v49 = vadd.f32 1.0, %v5939_v15  ;;  %8921 = vst [vmem:[#allocation18_spill] sm:$0xff] %v7675_v48  ;;  %8922 = vst [vmem:[#allocation19_spill] sm:$0xff] %v7681_v51  ;;  %v7711_v43 = vld [vmem:[%s8701_s5 + $0x40] ss:$16 sps:$4 sm:$0xff]  }
 0x502   :  { %v2925_v7 = vpack.c.bf16 %v2712_v23, %v2712_v23  ;;  %v7605_v59 = vsel %vm4600_vm5, %v4597_v44, %v2712_v23  ;;  %v7687_v23 = vld [vmem:[%s8701_s5 + $0x80] ss:$16 sps:$4 sm:$0xff]   ;;  %8927 = vst [vmem:[#allocation24_spill] sm:$0xff] %v7711_v43  ;;  %v7717_v15 = vld [vmem:[%s8701_s5 + $0x24] ss:$16 sps:$4 sm:$0xff]  }
 0x503   :  { %5948 = vrcp.f32 %v2826_v49  ;;  %8923 = vst [vmem:[#allocation20_spill] sm:$0xff] %v7687_v23  ;;  %v7699_v44 = vld [vmem:[%s8701_s5 + $0x60] ss:$16 sps:$4 sm:$0xff]   ;;  %8928 = vst [vmem:[#allocation25_spill] sm:$0xff] %v7717_v15  ;;  %v2561_v49 = vpop.permute.xlu0 %2560 }
 0x504   :  { %v7607_v31 = vrot.slane %v2925_v7, 2  ;;  %8925 = vst [vmem:[#allocation22_spill] sm:$0xff] %v7699_v44  ;;  %v7705_v7 = vld [vmem:[%s8701_s5 + $0x44] ss:$16 sps:$4 sm:$0xff]  }
 0x505   :  { %8926 = vst [vmem:[#allocation23_spill] sm:$0xff] %v7705_v7 }
 0x506   :  { %3003 = vmatmul.mubr.bf16.vlgmr.msra.gmra.mxu0 %v7607_v31 }
 0x507   :  { %3100 = vmatpush1.bf16.msra.mxu0 %v7300_v30  ;;  %3131 = vmatprep.mubr.bf16.mxu0 %v8860_v12 }
 0x508   :  { %3101 = vmatprep.subr.bf16.mxu0 %v7309_v13 }
 0x50b   :  { %v5941_v1 = vpop.eup %5940  ;;  %3102 = vmatpush1.bf16.msra.mxu0 %v7315_v10 }
 0x50c   :  { %v5943_v42 = vpop.eup %5942  ;;  %3103 = vmatprep.subr.bf16.mxu0 %v7321_v22 }
 0x50d   :  { %v5945_v54 = vpop.eup %5944  ;;  %v2838_v21 = vmul.f32 %v5943_v42, %v5941_v1  ;;  %v7723_v1 = vld [vmem:[%s8701_s5 + $0x20] ss:$16 sps:$4 sm:$0xff]   ;;  %v7729_v42 = vld [vmem:[%s8701_s5 + $0x4] ss:$16 sps:$4 sm:$0xff]  }
 0x50e   :  { %v2837_v58 = vmul.f32 %v5945_v54, %v2835_v36  ;;  %v5947_v13 = vpop.eup %5946  ;;  %8929 = vst [vmem:[#allocation26_spill] sm:$0xff] %v7723_v1  ;;  %8930 = vst [vmem:[#allocation27_spill] sm:$0xff] %v7729_v42  ;;  %v7735_v36 = vld [vmem:[%s8701_s5] ss:$16 sps:$4 sm:$0xff]   ;;  %v7738_v54 = vld [vmem:[#allocation5 + $0xe4] ss:$16 sps:$4 sm:$0xff]  }
 0x50f   :  { %3104 = vmatpush1.bf16.msra.mxu0 %v7329_v28  ;;  %v2554_v10 = vadd.f32 1.0, %v5947_v13  ;;  %8931 = vst [vmem:[#allocation28_spill] sm:$0xff] %v7735_v36  ;;  %8932 = vst [vmem:[#allocation31_spill] sm:$0xff] %v7738_v54 }
 0x510   :  { %v7618_v30 = vadd.f32 %v2838_v21, %v2837_v58  ;;  %3105 = vmatprep.subr.bf16.mxu0 %v7335_v35  ;;  %v5949_v28 = vpop.eup %5948  ;;  %v8914_v35 = vld [vmem:[#allocation52_spill] sm:$0xff] }
 0x512   :  { %5950 = vtanh.f32 %v7618_v30 }
 0x513   :  { %3106 = vmatpush1.bf16.msra.mxu0 %v7343_v24  ;;  %5952 = vrcp.f32 %v2554_v10 }
 0x514   :  { %3107 = vmatprep.subr.bf16.mxu0 %v7351_v3  ;;  %v8915_v3 = vld [vmem:[#allocation59_spill] sm:$0xff] }
 0x517   :  { %3108 = vmatpush1.bf16.msra.mxu0 %v7357_v32  ;;  %v4598_v32 = vsel %vm4596_vm4, %v8915_v3, %v7515_v14  ;;  %v7656_v14 = vld [vmem:[%s8701_s5 + $0xc4] ss:$16 sps:$4 sm:$0xff]  }
 0x518   :  { %3109 = vmatprep.subr.bf16.mxu0 %v7364_v20  ;;  %8918 = vst [vmem:[#allocation15_spill] sm:$0xff] %v7656_v14 }
 0x51b   :  { %3110 = vmatpush1.bf16.msra.mxu0 %v7370_v19 }
 0x51c   :  { %3111 = vmatprep.subr.bf16.mxu0 %v7376_v2  ;;  %v7642_v2 = vld [vmem:[%s8701_s5 + $0xe4] ss:$16 sps:$4 sm:$0xff]  }
 0x51f   :  { %v5951_v22 = vpop.eup %5950  ;;  %3112 = vmatpush1.bf16.msra.mxu0 %v7382_v62  ;;  %v7649_v62 = vld [vmem:[%s8701_s5 + $0xe0] ss:$16 sps:$4 sm:$0xff]  }
 0x520   :  { %3113 = vmatprep.subr.bf16.mxu0 %v8914_v35  ;;  %v2841_v24 = vmul.f32 %v5951_v22, %v5949_v28  ;;  %8917 = vst [vmem:[#allocation14_spill] sm:$0xff] %v7649_v62  ;;  %v5953_v17 = vpop.eup %5952 }
 0x521   :  { %v2563_v21 = vmul.f32 %v5953_v17, %v2561_v49 }
 0x522   :  { %v3054_v33 = vpack.c.bf16 %v2841_v24, %v2841_v24  ;;  %v7634_v20 = vsel %vm4600_vm5, %v4598_v32, %v2841_v24 }
 0x523   :  { %3114 = vmatpush1.bf16.msra.mxu0 %v8916_v45 }
 0x524   :  { %v7637_v19 = vrot.slane %v3054_v33, 2  ;;  %3270 = vmatprep.subr.bf16.mxu0 %v7642_v2 }
 0x526   :  { %3132 = vmatmul.mubr.bf16.vlgmr.msra.gmra.mxu0 %v7637_v19 }
 0x527   :  { %3271 = vmatpush1.bf16.msra.mxu0 %v7649_v62  ;;  %3302 = vmatprep.mubr.bf16.mxu0 %v8860_v12 }
 0x528   :  { %3272 = vmatprep.subr.bf16.mxu0 %v7656_v14 }
 0x52b   :  { %3273 = vmatpush1.bf16.msra.mxu0 %v7662_v63 }
 0x52c   :  { %v2566_v61 = vpop.permute.xlu1 %2565  ;;  %3274 = vmatprep.subr.bf16.mxu0 %v7668_v47 }
 0x52d   :  { %v2568_v25 = vmul.f32 %v5953_v17, %v2566_v61 }
 0x52f   :  { %2570 = vrot.lane.b32.xlu1 %v2568_v25, %s6394_s4  ;;  %3275 = vmatpush1.bf16.msra.mxu0 %v7675_v48 }
 0x530   :  { %3276 = vmatprep.subr.bf16.mxu0 %v7681_v51 }
 0x533   :  { %3277 = vmatpush1.bf16.msra.mxu0 %v7687_v23 }
 0x534   :  { %3278 = vmatprep.subr.bf16.mxu0 %v7693_v52 }
 0x537   :  { %3279 = vmatpush1.bf16.msra.mxu0 %v7699_v44 }
 0x538   :  { %3280 = vmatprep.subr.bf16.mxu0 %v7705_v7 }
 0x53b   :  { %3281 = vmatpush1.bf16.msra.mxu0 %v7711_v43 }
 0x53c   :  { %3282 = vmatprep.subr.bf16.mxu0 %v7717_v15 }
 0x53f   :  { %3283 = vmatpush1.bf16.msra.mxu0 %v7723_v1 }
 0x540   :  { %3284 = vmatprep.subr.bf16.mxu0 %v7729_v42 }
 0x543   :  { %3285 = vmatpush1.bf16.msra.mxu0 %v7735_v36 }
 0x544   :  { %3387 = vmatprep.subr.bf16.mxu0 %v7738_v54 }
 0x5a1   :  { %v2571_v58 = vpop.permute.xlu1 %2570 }
 0x5a2   :  { %v7741_v13 = vadd.f32 %v2571_v58, %v2563_v21 }
 0x5a4   :  { %5954 = vtanh.f32 %v7741_v13 }
 0x5b1   :  { %v5955_v10 = vpop.eup %5954 }
 0x5b2   :  { %2576 = vrot.lane.b32.xlu0 %v5955_v10, %s6394_s4  ;;  %v7781_v10 = vld [vmem:[#allocation5 + $0xc4] ss:$16 sps:$4 sm:$0xff]  }
 0x5c6   :  { %v7745_v28 = vpop.f32.mrf.mxu0 }
 0x5c8   :  { %v7747_v22 = vpop.f32.mrf.mxu0 }
 0x5ca   :  { %v3008_v35 = vpop.f32.mrf.mxu0 }
 0x5cc   :  { %v3009_v24 = vpop.f32.mrf.mxu0 }
 0x5e6   :  { %v7749_v3 = vpop.f32.mrf.mxu0 }
 0x5e8   :  { %v7751_v32 = vpop.f32.mrf.mxu0 }
 0x5ea   :  { %v3137_v33 = vpop.f32.mrf.mxu0 }
 0x5ec   :  { %v3138_v45 = vpop.f32.mrf.mxu0 }
 0x624   :  { %v2577_v61 = vpop.permute.xlu0 %2576 }
 0x625   :  { %v7753_v25 = vmul.f32 %v5953_v17, %v2577_v61  ;;  %v7777_v17 = vld [vmem:[#allocation5 + $0xe0] ss:$16 sps:$4 sm:$0xff]   ;;  %v3017_v61 = vrot.slane %v7745_v28, 2 }
 0x627   :  { %8933 = vst [vmem:[#allocation38_spill] sm:$0xff] %v7753_v25  ;;  %v2842_v49 = vpack.c.bf16 %v7753_v25, %v7753_v25  ;;  %v8018_v25 = vld [vmem:[#allocation5 + $0xe8] ss:$16 sps:$4 sm:$0xff]  }
 0x628   :  { %8945 = vst [vmem:[#allocation47_spill] sm:$0xff] %v8018_v25 }
 0x629   :  { %v2844_v21 = vrot.slane %v2842_v49, 1  ;;  %v3025_v49 = vadd.f32 %v3017_v61, %v7260_v53 }
 0x62b   :  { %2845 = vrot.lane.b32.xlu1 %v2844_v21, %s6386_s19  ;;  %v3018_v21 = vrot.slane %v7747_v22, 2 }
 0x69d   :  { %v2846_v58 = vpop.permute.xlu1 %2845 }
 0x69e   :  { %5441 = vmatmul.mubr.msk.bf16.vlgmr.msra.gmra.mxu1 %vm1364_vm2, %v2846_v58  ;;  %v5265_v58 = vmul.f32 -1.442695, %v3025_v49 }
 0x69f   :  { %2930 = vmatpush1.bf16.msra.mxu1 %v7649_v62  ;;  %2961 = vmatprep.mubr.bf16.mxu1 %v8860_v12 }
 0x6a0   :  { %2931 = vmatprep.subr.bf16.mxu1 %v7656_v14 }
 0x6a3   :  { %2932 = vmatpush1.bf16.msra.mxu1 %v7662_v63 }
 0x6a4   :  { %2933 = vmatprep.subr.bf16.mxu1 %v7668_v47 }
 0x6a7   :  { %2934 = vmatpush1.bf16.msra.mxu1 %v7675_v48 }
 0x6a8   :  { %2935 = vmatprep.subr.bf16.mxu1 %v7681_v51 }
 0x6ab   :  { %2936 = vmatpush1.bf16.msra.mxu1 %v7687_v23 }
 0x6ac   :  { %2937 = vmatprep.subr.bf16.mxu1 %v7693_v52 }
 0x6af   :  { %2938 = vmatpush1.bf16.msra.mxu1 %v7699_v44 }
 0x6b0   :  { %2939 = vmatprep.subr.bf16.mxu1 %v7705_v7 }
 0x6b3   :  { %2940 = vmatpush1.bf16.msra.mxu1 %v7711_v43 }
 0x6b4   :  { %2941 = vmatprep.subr.bf16.mxu1 %v7717_v15 }
 0x6b7   :  { %2942 = vmatpush1.bf16.msra.mxu1 %v7723_v1 }
 0x6b8   :  { %2943 = vmatprep.subr.bf16.mxu1 %v7729_v42 }
 0x6bb   :  { %2944 = vmatpush1.bf16.msra.mxu1 %v7735_v36 }
 0x6bc   :  { %3058 = vmatprep.subr.bf16.mxu1 %v7738_v54 }
 0x6be   :  { %2962 = vmatmul.mubr.bf16.vlgmr.msra.gmra.mxu1 %v7607_v31 }
 0x6bf   :  { %3059 = vmatpush1.bf16.msra.mxu1 %v7777_v17  ;;  %3090 = vmatprep.mubr.bf16.mxu1 %v8860_v12 }
 0x6c0   :  { %3060 = vmatprep.subr.bf16.mxu1 %v7781_v10 }
 0x6c3   :  { %3061 = vmatpush1.bf16.msra.mxu1 %v8900_v5  ;;  %v7807_v5 = vld [vmem:[%s8701_s5 + $0xec] ss:$16 sps:$4 sm:$0xff]  }
 0x6c4   :  { %3062 = vmatprep.subr.bf16.mxu1 %v8901_v50  ;;  %8934 = vst [vmem:[#allocation39_spill] sm:$0xff] %v7807_v5 }
 0x6c7   :  { %3063 = vmatpush1.bf16.msra.mxu1 %v8902_v8 }
 0x6c8   :  { %3064 = vmatprep.subr.bf16.mxu1 %v8903_v46 }
 0x6cb   :  { %3065 = vmatpush1.bf16.msra.mxu1 %v8904_v57  ;;  %v8935_v57 = vld [vmem:[#allocation57_spill] sm:$0xff] }
 0x6cc   :  { %3066 = vmatprep.subr.bf16.mxu1 %v8905_v55 }
 0x6cf   :  { %3067 = vmatpush1.bf16.msra.mxu1 %v8906_v9 }
 0x6d0   :  { %3068 = vmatprep.subr.bf16.mxu1 %v8907_v27 }
 0x6d3   :  { %3069 = vmatpush1.bf16.msra.mxu1 %v8908_v34 }
 0x6d4   :  { %3070 = vmatprep.subr.bf16.mxu1 %v8909_v18 }
 0x6d7   :  { %3071 = vmatpush1.bf16.msra.mxu1 %v8910_v37 }
 0x6d8   :  { %3072 = vmatprep.subr.bf16.mxu1 %v8911_v40 }
 0x6db   :  { %3073 = vmatpush1.bf16.msra.mxu1 %v8912_v41 }
 0x6dc   :  { %5444 = vmatprep.subr.bf16.mxu1 %v8874_v29 }
 0x6de   :  { %3091 = vmatmul.mubr.bf16.vlgmr.msra.gmra.mxu1 %v7637_v19 }
 0x6df   :  { %5445 = vmatpush3.bf16.msra.mxu1 %v7463_v6  ;;  %5448 = vmatprep.mubr.msk.bf16.mxu1 %vm6393_vm3, %v8874_v29 }
 0x6e0   :  { %5446 = vmatprep.subr.bf16.mxu1 %v8874_v29 }
 0x6e3   :  { %5447 = vmatpush3.bf16.msra.mxu1 %v7466_v39 }
 0x6e4   :  { %3311 = vmatprep.subr.bf16.mxu1 %v7807_v5 }
 0x75e   :  { %v2884_v50 = vpop.f32.mrf.mxu1 }
 0x75f   :  { %v2891_v8 = vrot.slane %v2884_v50, 4 }
 0x760   :  { %v5442_v46 = vpop.f32.mrf.mxu1 }
 0x761   :  { %v7811_v55 = vadd.f32 %v2891_v8, %v8935_v57  ;;  %v3026_v8 = vadd.f32 %v3018_v21, %v7263_v56  ;;  %v3147_v21 = vrot.slane %v7751_v32, 2 }
 0x762   :  { %v2887_v9 = vpop.f32.mrf.mxu1 }
 0x763   :  { %5956 = vtanh.f32 %v7811_v55 }
 0x764   :  { %v5443_v27 = vpop.f32.mrf.mxu1 }
 0x770   :  { %v5957_v34 = vpop.eup %5956 }
 0x771   :  { %2906 = vrot.lane.b32.xlu0 %v5957_v34, %s6394_s4 }
 0x77e   :  { %v2963_v18 = vpop.f32.mrf.mxu1 }
 0x77f   :  { %v3015_v37 = vrot.slane %v2963_v18, 2 }
 0x780   :  { %v2965_v40 = vpop.f32.mrf.mxu1 }
 0x781   :  { %v3023_v41 = vadd.f32 %v3015_v37, %v7243_v26  ;;  %v3016_v31 = vrot.slane %v2965_v40, 2 }
 0x782   :  { %v2967_v19 = vpop.f32.mrf.mxu1 }
 0x783   :  { %v5263_v35 = vmul.f32 -1.442695, %v3023_v41  ;;  %v3024_v24 = vadd.f32 %v3016_v31, %v7231_v16  ;;  %v3047_v41 = vrot.slane %v7594_v11, 6 }
 0x784   :  { %v2968_v33 = vpop.f32.mrf.mxu1 }
 0x785   :  { %5958 = vpow2.f32 %v5263_v35  ;;  %v5264_v45 = vmul.f32 -1.442695, %v3024_v24 }
 0x787   :  { %5960 = vpow2.f32 %v5264_v45 }
 0x788   :  { %5962 = vpow2.f32 %v5265_v58 }
 0x792   :  { %v5959_v50 = vpop.eup %5958 }
 0x793   :  { %v3036_v26 = vadd.f32 1.0, %v5959_v50  ;;  %v3155_v50 = vadd.f32 %v3147_v21, %v7413_v38  ;;  %v5262_v38 = vmul.f32 -1.442695, %v7811_v55 }
 0x794   :  { %v5961_v46 = vpop.eup %5960 }
 0x795   :  { %5964 = vrcp.f32 %v3036_v26  ;;  %v3037_v9 = vadd.f32 1.0, %v5961_v46  ;;  %v5963_v18 = vpop.eup %5962 }
 0x796   :  { %5966 = vtanh.f32 %v3026_v8  ;;  %v3038_v35 = vadd.f32 1.0, %v5963_v18 }
 0x797   :  { %5968 = vrcp.f32 %v3037_v9 }
 0x79e   :  { %v3092_v16 = vpop.f32.mrf.mxu1 }
 0x79f   :  { %v3144_v27 = vrot.slane %v3092_v16, 2 }
 0x7a0   :  { %v3094_v34 = vpop.f32.mrf.mxu1 }
 0x7a1   :  { %v3152_v28 = vadd.f32 %v3144_v27, %v7345_v4  ;;  %v3145_v53 = vrot.slane %v3094_v34, 2  ;;  %v3146_v4 = vrot.slane %v7749_v3, 2 }
 0x7a2   :  { %v5965_v37 = vpop.eup %5964  ;;  %v3096_v22 = vpop.f32.mrf.mxu1 }
 0x7a3   :  { %v5967_v40 = vpop.eup %5966  ;;  %v5266_v56 = vmul.f32 -1.442695, %v3152_v28  ;;  %v3153_v31 = vadd.f32 %v3145_v53, %v7270_v0  ;;  %v3154_v11 = vadd.f32 %v3146_v4, %v7409_v60  ;;  %v7842_v28 = vld [vmem:[#allocation5 + $0xc0] ss:$16 sps:$4 sm:$0xff]   ;;  %v3176_v53 = vrot.slane %v7618_v30, 6 }
 0x7a4   :  { %v5969_v19 = vpop.eup %5968  ;;  %v3097_v24 = vpop.f32.mrf.mxu1  ;;  %v3050_v33 = vmul.f32 %v5967_v40, %v5965_v37  ;;  %v7846_v37 = vld [vmem:[#allocation5 + $0xa4] ss:$16 sps:$4 sm:$0xff]   ;;  %v7858_v30 = vld [vmem:[#allocation5 + $0x80] ss:$16 sps:$4 sm:$0xff]  }
 0x7a5   :  { %v3049_v45 = vmul.f32 %v5969_v19, %v3047_v41  ;;  %5970 = vpow2.f32 %v5266_v56  ;;  %v5267_v61 = vmul.f32 -1.442695, %v3153_v31  ;;  %v5268_v0 = vmul.f32 -1.442695, %v3154_v11  ;;  %v7849_v56 = vld [vmem:[#allocation5 + $0xa0] ss:$16 sps:$4 sm:$0xff]  }
 0x7a6   :  { %v7854_v19 = vld [vmem:[#allocation5 + $0x84] ss:$16 sps:$4 sm:$0xff]   ;;  %v7864_v24 = vld [vmem:[#allocation5 + $0x60] ss:$16 sps:$4 sm:$0xff]  }
 0x7a7   :  { %v7824_v49 = vadd.f32 %v3050_v33, %v3049_v45  ;;  %5972 = vpow2.f32 %v5267_v61  ;;  %v7867_v45 = vld [vmem:[#allocation5 + $0x44] ss:$16 sps:$4 sm:$0xff]   ;;  %v7870_v4 = vld [vmem:[#allocation5 + $0x40] ss:$16 sps:$4 sm:$0xff]  }
 0x7a8   :  { %5974 = vrcp.f32 %v3038_v35  ;;  %v7861_v35 = vld [vmem:[#allocation5 + $0x64] ss:$16 sps:$4 sm:$0xff]  }
 0x7a9   :  { %5976 = vtanh.f32 %v7824_v49  ;;  %v7873_v11 = vld [vmem:[#allocation5 + $0x24] ss:$16 sps:$4 sm:$0xff]  }
 0x7aa   :  { %5978 = vpow2.f32 %v5268_v0 }
 0x7b2   :  { %v5971_v58 = vpop.eup %5970 }
 0x7b3   :  { %v3165_v8 = vadd.f32 1.0, %v5971_v58  ;;  %v7876_v58 = vld [vmem:[#allocation5 + $0x20] ss:$16 sps:$4 sm:$0xff]  }
 0x7b4   :  { %v5973_v26 = vpop.eup %5972 }
 0x7b5   :  { %v5975_v46 = vpop.eup %5974  ;;  %5980 = vrcp.f32 %v3165_v8  ;;  %v3166_v9 = vadd.f32 1.0, %v5973_v26 }
 0x7b6   :  { %v5977_v16 = vpop.eup %5976  ;;  %5982 = vtanh.f32 %v3155_v50  ;;  %v7879_v50 = vld [vmem:[#allocation5 + $0x4] ss:$16 sps:$4 sm:$0xff]  }
 0x7b7   :  { %5984 = vrcp.f32 %v3166_v9  ;;  %v3053_v3 = vmul.f32 %v5977_v16, %v5975_v46  ;;  %v5979_v34 = vpop.eup %5978  ;;  %8937 = vst [vmem:[#allocation41_spill] sm:$0xff] %v7879_v50  ;;  %v7886_v9 = vld [vmem:[#allocation5] ss:$16 sps:$4 sm:$0xff]  }
 0x7b8   :  { %5986 = vpow2.f32 %v5262_v38  ;;  %v3167_v22 = vadd.f32 1.0, %v5979_v34  ;;  %8939 = vst [vmem:[#allocation43_spill] sm:$0xff] %v7886_v9  ;;  %v2902_v38 = vrot.slane %v7741_v13, 6 }
 0x7b9   :  { %v3266_v27 = vpack.c.bf16 %v3053_v3, %v3053_v3  ;;  %v7833_v60 = vsel %vm4604_vm6, %v7605_v59, %v3053_v3 }
 0x7ba   :  { %8936 = vst [vmem:[#allocation40_spill] sm:$0xff] %v7833_v60  ;;  %5988 = vrcp.f32 %v3167_v22  ;;  %v8022_v60 = vld [vmem:[#allocation5 + $0xcc] ss:$16 sps:$4 sm:$0xff]  }
 0x7bb   :  { %v7835_v32 = vrot.slane %v3266_v27, 3  ;;  %8946 = vst [vmem:[#allocation48_spill] sm:$0xff] %v8022_v60 }
 0x7bd   :  { %3303 = vmatmul.mubr.bf16.vlgmr.msra.gmra.mxu0 %v7835_v32 }
 0x7be   :  { %3388 = vmatpush1.bf16.msra.mxu0 %v7777_v17  ;;  %3419 = vmatprep.mubr.bf16.mxu0 %v8860_v12 }
 0x7bf   :  { %3389 = vmatprep.subr.bf16.mxu0 %v7781_v10 }
 0x7c2   :  { %v5981_v18 = vpop.eup %5980  ;;  %3390 = vmatpush1.bf16.msra.mxu0 %v7842_v28 }
 0x7c3   :  { %v5983_v59 = vpop.eup %5982  ;;  %3391 = vmatprep.subr.bf16.mxu0 %v7846_v37 }
 0x7c4   :  { %v5985_v55 = vpop.eup %5984  ;;  %v3179_v40 = vmul.f32 %v5983_v59, %v5981_v18 }
 0x7c5   :  { %v3178_v41 = vmul.f32 %v5985_v55, %v3176_v53  ;;  %v5987_v33 = vpop.eup %5986  ;;  %v8940_v55 = vld [vmem:[#allocation30_spill] sm:$0xff] }
 0x7c6   :  { %3392 = vmatpush1.bf16.msra.mxu0 %v7849_v56  ;;  %v2897_v61 = vadd.f32 1.0, %v5987_v33 }
 0x7c7   :  { %v7852_v31 = vadd.f32 %v3179_v40, %v3178_v41  ;;  %3393 = vmatprep.subr.bf16.mxu0 %v7854_v19  ;;  %v5989_v21 = vpop.eup %5988 }
 0x7c9   :  { %5990 = vtanh.f32 %v7852_v31 }
 0x7ca   :  { %3394 = vmatpush1.bf16.msra.mxu0 %v7858_v30  ;;  %5992 = vrcp.f32 %v2897_v61 }
 0x7cb   :  { %3395 = vmatprep.subr.bf16.mxu0 %v7861_v35 }
 0x7ce   :  { %3396 = vmatpush1.bf16.msra.mxu0 %v7864_v24 }
 0x7cf   :  { %3397 = vmatprep.subr.bf16.mxu0 %v7867_v45 }
 0x7d2   :  { %3398 = vmatpush1.bf16.msra.mxu0 %v7870_v4 }
 0x7d3   :  { %3399 = vmatprep.subr.bf16.mxu0 %v7873_v11 }
 0x7d6   :  { %v5991_v0 = vpop.eup %5990  ;;  %3400 = vmatpush1.bf16.msra.mxu0 %v7876_v58 }
 0x7d7   :  { %3401 = vmatprep.subr.bf16.mxu0 %v7879_v50  ;;  %v3182_v8 = vmul.f32 %v5991_v0, %v5989_v21 }
 0x7d9   :  { %v3383_v26 = vpack.c.bf16 %v3182_v8, %v3182_v8  ;;  %v7884_v46 = vsel %vm4604_vm6, %v7634_v20, %v3182_v8  ;;  %v5993_v20 = vpop.eup %5992  ;;  %v8941_v8 = vld [vmem:[#allocation35_spill] sm:$0xff] }
 0x7da   :  { %8938 = vst [vmem:[#allocation42_spill] sm:$0xff] %v7884_v46  ;;  %3402 = vmatpush1.bf16.msra.mxu0 %v7886_v9  ;;  %v2904_v34 = vmul.f32 %v5993_v20, %v2902_v38  ;;  %v8025_v46 = vld [vmem:[#allocation5 + $0xc8] ss:$16 sps:$4 sm:$0xff]  }
 0x7db   :  { %v7889_v16 = vrot.slane %v3383_v26, 3  ;;  %5452 = vmatprep.subr.bf16.mxu0 %v8874_v29  ;;  %8947 = vst [vmem:[#allocation49_spill] sm:$0xff] %v8025_v46 }
 0x7dd   :  { %3420 = vmatmul.mubr.bf16.vlgmr.msra.gmra.mxu0 %v7889_v16 }
 0x7de   :  { %5453 = vmatpush3.bf16.msra.mxu0 %v7463_v6  ;;  %5456 = vmatprep.mubr.msk.bf16.mxu0 %vm6393_vm3, %v8874_v29 }
 0x7df   :  { %5454 = vmatprep.subr.bf16.mxu0 %v8874_v29 }
 0x7e2   :  { %5455 = vmatpush3.bf16.msra.mxu0 %v7466_v39 }
 0x7e3   :  { %v2907_v3 = vpop.permute.xlu0 %2906  ;;  %3622 = vmatprep.subr.bf16.mxu0 %v7807_v5 }
 0x7e4   :  { %v2909_v27 = vmul.f32 %v5993_v20, %v2907_v3  ;;  %v3376_v3 = vrot.slane %v7824_v49, 6 }
 0x7e6   :  { %2911 = vrot.lane.b32.xlu1 %v2909_v27, %s6394_s4 }
 0x858   :  { %v2912_v18 = vpop.permute.xlu1 %2911 }
 0x859   :  { %v7901_v59 = vadd.f32 %v2912_v18, %v2904_v34 }
 0x85b   :  { %5994 = vtanh.f32 %v7901_v59 }
 0x868   :  { %v5995_v6 = vpop.eup %5994 }
 0x869   :  { %2917 = vrot.lane.b32.xlu0 %v5995_v6, %s6394_s4 }
 0x87d   :  { %v7905_v53 = vpop.f32.mrf.mxu0 }
 0x87f   :  { %v3306_v39 = vpop.f32.mrf.mxu0 }
 0x880   :  { %v3353_v22 = vadd.f32 %v3306_v39, %v8940_v55 }
 0x881   :  { %v3308_v40 = vpop.f32.mrf.mxu0 }
 0x882   :  { %v5272_v41 = vmul.f32 -1.442695, %v3353_v22  ;;  %v3493_v40 = vrot.slane %v7852_v31, 6  ;;  %v7933_v31 = vld [vmem:[%s8701_s5 + $0xcc] ss:$16 sps:$4 sm:$0xff]  }
 0x883   :  { %v3309_v33 = vpop.f32.mrf.mxu0 }
 0x884   :  { %5996 = vpow2.f32 %v5272_v41 }
 0x891   :  { %v5997_v61 = vpop.eup %5996 }
 0x892   :  { %v3366_v13 = vadd.f32 1.0, %v5997_v61 }
 0x894   :  { %5998 = vrcp.f32 %v3366_v13 }
 0x89d   :  { %v7908_v21 = vpop.f32.mrf.mxu0 }
 0x89f   :  { %v3423_v0 = vpop.f32.mrf.mxu0 }
 0x8a0   :  { %v3470_v26 = vadd.f32 %v3423_v0, %v8941_v8 }
 0x8a1   :  { %v5999_v27 = vpop.eup %5998  ;;  %v3425_v38 = vpop.f32.mrf.mxu0 }
 0x8a2   :  { %v5275_v34 = vmul.f32 -1.442695, %v3470_v26  ;;  %v7912_v18 = vmul.f32 %v5999_v27, %v3376_v3  ;;  %v7926_v3 = vld [vmem:[%s8701_s5 + $0xe8] ss:$16 sps:$4 sm:$0xff]   ;;  %v7945_v27 = vld [vmem:[%s8701_s5 + $0xac] ss:$16 sps:$4 sm:$0xff]  }
 0x8a3   :  { %v3426_v6 = vpop.f32.mrf.mxu0  ;;  %v7951_v38 = vld [vmem:[%s8701_s5 + $0xa8] ss:$16 sps:$4 sm:$0xff]  }
 0x8a4   :  { %6000 = vpow2.f32 %v5275_v34  ;;  %v7957_v34 = vld [vmem:[%s8701_s5 + $0x8c] ss:$16 sps:$4 sm:$0xff]   ;;  %v7963_v6 = vld [vmem:[%s8701_s5 + $0x88] ss:$16 sps:$4 sm:$0xff]  }
 0x8b1   :  { %v6001_v39 = vpop.eup %6000 }
 0x8b2   :  { %v3483_v22 = vadd.f32 1.0, %v6001_v39  ;;  %v7969_v39 = vld [vmem:[%s8701_s5 + $0x6c] ss:$16 sps:$4 sm:$0xff]  }
 0x8b4   :  { %6002 = vrcp.f32 %v3483_v22  ;;  %v7975_v22 = vld [vmem:[%s8701_s5 + $0x68] ss:$16 sps:$4 sm:$0xff]  }
 0x8c1   :  { %v6003_v41 = vpop.eup %6002 }
 0x8c2   :  { %v7915_v33 = vmul.f32 %v6003_v41, %v3493_v40  ;;  %v7981_v40 = vld [vmem:[%s8701_s5 + $0x4c] ss:$16 sps:$4 sm:$0xff]   ;;  %v7987_v41 = vld [vmem:[%s8701_s5 + $0x48] ss:$16 sps:$4 sm:$0xff]  }
 0x8db   :  { %v2918_v61 = vpop.permute.xlu0 %2917 }
 0x8dc   :  { %v7917_v13 = vmul.f32 %v5993_v20, %v2918_v61  ;;  %v7939_v20 = vld [vmem:[%s8701_s5 + $0xc8] ss:$16 sps:$4 sm:$0xff]   ;;  %v7993_v61 = vld [vmem:[%s8701_s5 + $0x2c] ss:$16 sps:$4 sm:$0xff]  }
 0x8de   :  { %8942 = vst [vmem:[#allocation44_spill] sm:$0xff] %v7917_v13  ;;  %v3183_v49 = vpack.c.bf16 %v7917_v13, %v7917_v13  ;;  %v8014_v13 = vld [vmem:[#allocation5 + $0xec] ss:$16 sps:$4 sm:$0xff]  }
 0x8df   :  { %8944 = vst [vmem:[#allocation46_spill] sm:$0xff] %v8014_v13 }
 0x8e0   :  { %v3185_v0 = vrot.slane %v3183_v49, 2  ;;  %v7999_v49 = vld [vmem:[%s8701_s5 + $0x28] ss:$16 sps:$4 sm:$0xff]  }
 0x8e2   :  { %3186 = vrot.lane.b32.xlu1 %v3185_v0, %s6386_s19  ;;  %v8005_v0 = vld [vmem:[%s8701_s5 + $0xc] ss:$16 sps:$4 sm:$0xff]  }
 0x954   :  { %v3187_v26 = vpop.permute.xlu1 %3186 }
 0x955   :  { %5449 = vmatmul.mubr.msk.bf16.vlgmr.msra.gmra.mxu1 %vm1364_vm2, %v3187_v26  ;;  %v8011_v26 = vld [vmem:[%s8701_s5 + $0x8] ss:$16 sps:$4 sm:$0xff]  }
 0x956   :  { %3312 = vmatpush1.bf16.msra.mxu1 %v7926_v3  ;;  %3343 = vmatprep.mubr.bf16.mxu1 %v8860_v12  ;;  %8943 = vst [vmem:[#allocation45_spill] sm:$0xff] %v8011_v26 }
 0x957   :  { %3313 = vmatprep.subr.bf16.mxu1 %v7933_v31 }
 0x95a   :  { %3314 = vmatpush1.bf16.msra.mxu1 %v7939_v20 }
 0x95b   :  { %3315 = vmatprep.subr.bf16.mxu1 %v7945_v27 }
 0x95e   :  { %3316 = vmatpush1.bf16.msra.mxu1 %v7951_v38 }
 0x95f   :  { %3317 = vmatprep.subr.bf16.mxu1 %v7957_v34 }
 0x962   :  { %3318 = vmatpush1.bf16.msra.mxu1 %v7963_v6 }
 0x963   :  { %3319 = vmatprep.subr.bf16.mxu1 %v7969_v39 }
 0x966   :  { %3320 = vmatpush1.bf16.msra.mxu1 %v7975_v22 }
 0x967   :  { %3321 = vmatprep.subr.bf16.mxu1 %v7981_v40 }
 0x96a   :  { %3322 = vmatpush1.bf16.msra.mxu1 %v7987_v41 }
 0x96b   :  { %3323 = vmatprep.subr.bf16.mxu1 %v7993_v61 }
 0x96e   :  { %3324 = vmatpush1.bf16.msra.mxu1 %v7999_v49 }
 0x96f   :  { %3325 = vmatprep.subr.bf16.mxu1 %v8005_v0 }
 0x972   :  { %3326 = vmatpush1.bf16.msra.mxu1 %v8011_v26  ;;  %v8028_v26 = vld [vmem:[#allocation5 + $0xac] ss:$16 sps:$4 sm:$0xff]  }
 0x973   :  { %3428 = vmatprep.subr.bf16.mxu1 %v8014_v13  ;;  %8948 = vst [vmem:[#allocation50_spill] sm:$0xff] %v8028_v26  ;;  %v8031_v13 = vld [vmem:[#allocation5 + $0xa8] ss:$16 sps:$4 sm:$0xff]  }
 0x974   :  { %8949 = vst [vmem:[#allocation51_spill] sm:$0xff] %v8031_v13 }
 0x975   :  { %3344 = vmatmul.mubr.bf16.vlgmr.msra.gmra.mxu1 %v7835_v32  ;;  %v8034_v32 = vld [vmem:[#allocation5 + $0x8c] ss:$16 sps:$4 sm:$0xff]  }
 0x976   :  { %3429 = vmatpush1.bf16.msra.mxu1 %v8018_v25  ;;  %3460 = vmatprep.mubr.bf16.mxu1 %v8860_v12  ;;  %8950 = vst [vmem:[#allocation53_spill] sm:$0xff] %v8034_v32  ;;  %v8037_v25 = vld [vmem:[#allocation5 + $0x88] ss:$16 sps:$4 sm:$0xff]  }
 0x977   :  { %3430 = vmatprep.subr.bf16.mxu1 %v8022_v60  ;;  %8951 = vst [vmem:[#allocation37_spill] sm:$0xff] %v8037_v25  ;;  %v8040_v60 = vld [vmem:[#allocation5 + $0x6c] ss:$16 sps:$4 sm:$0xff]  }
 0x978   :  { %8952 = vst [vmem:[#allocation52_spill] sm:$0xff] %v8040_v60 }
 0x97a   :  { %3431 = vmatpush1.bf16.msra.mxu1 %v8025_v46  ;;  %v8043_v46 = vld [vmem:[#allocation5 + $0x68] ss:$16 sps:$4 sm:$0xff]  }
 0x97b   :  { %3432 = vmatprep.subr.bf16.mxu1 %v8028_v26  ;;  %8953 = vst [vmem:[#allocation59_spill] sm:$0xff] %v8043_v46  ;;  %v8046_v26 = vld [vmem:[#allocation5 + $0x4c] ss:$16 sps:$4 sm:$0xff]  }
 0x97c   :  { %8954 = vst [vmem:[#allocation54_spill] sm:$0xff] %v8046_v26 }
 0x97e   :  { %3433 = vmatpush1.bf16.msra.mxu1 %v8031_v13  ;;  %v8049_v13 = vld [vmem:[#allocation5 + $0x48] ss:$16 sps:$4 sm:$0xff]  }
 0x97f   :  { %3434 = vmatprep.subr.bf16.mxu1 %v8034_v32  ;;  %8955 = vst [vmem:[#allocation57_spill] sm:$0xff] %v8049_v13  ;;  %v8052_v32 = vld [vmem:[#allocation5 + $0x2c] ss:$16 sps:$4 sm:$0xff]  }
 0x980   :  { %8956 = vst [vmem:[#allocation30_spill] sm:$0xff] %v8052_v32 }
 0x982   :  { %3435 = vmatpush1.bf16.msra.mxu1 %v8037_v25  ;;  %v8055_v25 = vld [vmem:[#allocation5 + $0x28] ss:$16 sps:$4 sm:$0xff]  }
 0x983   :  { %3436 = vmatprep.subr.bf16.mxu1 %v8040_v60  ;;  %8957 = vst [vmem:[#allocation35_spill] sm:$0xff] %v8055_v25  ;;  %v8058_v60 = vld [vmem:[#allocation5 + $0xc] ss:$16 sps:$4 sm:$0xff]  }
 0x984   :  { %8958 = vst [vmem:[#allocation60_spill] sm:$0xff] %v8058_v60 }
 0x986   :  { %3437 = vmatpush1.bf16.msra.mxu1 %v8043_v46  ;;  %v8061_v46 = vld [vmem:[#allocation5 + $0x8] ss:$16 sps:$4 sm:$0xff]  }
 0x987   :  { %3438 = vmatprep.subr.bf16.mxu1 %v8046_v26  ;;  %8959 = vst [vmem:[#allocation61_spill] sm:$0xff] %v8061_v46 }
 0x98a   :  { %3439 = vmatpush1.bf16.msra.mxu1 %v8049_v13 }
 0x98b   :  { %3440 = vmatprep.subr.bf16.mxu1 %v8052_v32 }
 0x98e   :  { %3441 = vmatpush1.bf16.msra.mxu1 %v8055_v25 }
 0x98f   :  { %3442 = vmatprep.subr.bf16.mxu1 %v8058_v60 }
 0x992   :  { %3443 = vmatpush1.bf16.msra.mxu1 %v8061_v46 }
 0x993   :  { %3581 = vmatprep.subr.bf16.mxu1 %v7642_v2 }
 0x995   :  { %3461 = vmatmul.mubr.bf16.vlgmr.msra.gmra.mxu1 %v7889_v16 }
 0x996   :  { %3582 = vmatpush1.bf16.msra.mxu1 %v7649_v62  ;;  %3613 = vmatprep.mubr.bf16.mxu1 %v8860_v12 }
 0x997   :  { %3583 = vmatprep.subr.bf16.mxu1 %v7656_v14 }
 0x99a   :  { %3584 = vmatpush1.bf16.msra.mxu1 %v7662_v63 }
 0x99b   :  { %3585 = vmatprep.subr.bf16.mxu1 %v7668_v47 }
 0x99e   :  { %3586 = vmatpush1.bf16.msra.mxu1 %v7675_v48 }
 0x99f   :  { %3587 = vmatprep.subr.bf16.mxu1 %v7681_v51 }
 0x9a2   :  { %3588 = vmatpush1.bf16.msra.mxu1 %v7687_v23 }
 0x9a3   :  { %3589 = vmatprep.subr.bf16.mxu1 %v7693_v52 }
 0x9a6   :  { %3590 = vmatpush1.bf16.msra.mxu1 %v7699_v44 }
 0x9a7   :  { %3591 = vmatprep.subr.bf16.mxu1 %v7705_v7  ;;  %v8960_v7 = vld [vmem:[#allocation29_spill] sm:$0xff] }
 0x9aa   :  { %3592 = vmatpush1.bf16.msra.mxu1 %v7711_v43 }
 0x9ab   :  { %3593 = vmatprep.subr.bf16.mxu1 %v7717_v15  ;;  %v3352_v15 = vadd.f32 %v7905_v53, %v8960_v7  ;;  %v8963_v53 = vld [vmem:[#allocation34_spill] sm:$0xff] }
 0x9ae   :  { %3594 = vmatpush1.bf16.msra.mxu1 %v7723_v1  ;;  %v5271_v1 = vmul.f32 -1.442695, %v3352_v15  ;;  %v3469_v15 = vadd.f32 %v7908_v21, %v8963_v53 }
 0x9af   :  { %3595 = vmatprep.subr.bf16.mxu1 %v7729_v42 }
 0x9b2   :  { %3596 = vmatpush1.bf16.msra.mxu1 %v7735_v36 }
 0x9b3   :  { %3707 = vmatprep.subr.bf16.mxu1 %v7738_v54 }
 0xa15   :  { %v3225_v16 = vpop.f32.mrf.mxu1 }
 0xa16   :  { %v3232_v23 = vrot.slane %v3225_v16, 2  ;;  %v8961_v16 = vld [vmem:[#allocation32_spill] sm:$0xff] }
 0xa17   :  { %v5450_v51 = vpop.f32.mrf.mxu1 }
 0xa18   :  { %v8084_v52 = vadd.f32 %v3232_v23, %v8935_v57  ;;  %v8962_v57 = vld [vmem:[#allocation33_spill] sm:$0xff] }
 0xa19   :  { %v3228_v44 = vpop.f32.mrf.mxu1 }
 0xa1a   :  { %6004 = vtanh.f32 %v8084_v52 }
 0xa1b   :  { %v5451_v43 = vpop.f32.mrf.mxu1  ;;  %6006 = vpow2.f32 %v5271_v1  ;;  %v5274_v1 = vmul.f32 -1.442695, %v3469_v15 }
 0xa27   :  { %v6005_v42 = vpop.eup %6004 }
 0xa28   :  { %3247 = vrot.lane.b32.xlu0 %v6005_v42, %s6394_s4  ;;  %v6007_v36 = vpop.eup %6006 }
 0xa29   :  { %v3365_v54 = vadd.f32 1.0, %v6007_v36 }
 0xa2b   :  { %6008 = vrcp.f32 %v3365_v54  ;;  %v8965_v54 = vld [vmem:[#allocation36_spill] sm:$0xff] }
 0xa35   :  { %v3345_v48 = vpop.f32.mrf.mxu1 }
 0xa36   :  { %v3354_v51 = vadd.f32 %v3345_v48, %v8961_v16 }
 0xa37   :  { %v3347_v47 = vpop.f32.mrf.mxu1 }
 0xa38   :  { %v5273_v23 = vmul.f32 -1.442695, %v3354_v51  ;;  %v3355_v44 = vadd.f32 %v3347_v47, %v8962_v57  ;;  %v6009_v42 = vpop.eup %6008  ;;  %v8964_v47 = vld [vmem:[#allocation55_spill] sm:$0xff] }
 0xa39   :  { %v3349_v63 = vpop.f32.mrf.mxu1  ;;  %v8100_v51 = vadd.f32 %v8965_v54, %v8964_v47 }
 0xa3a   :  { %6010 = vpow2.f32 %v5273_v23 }
 0xa3b   :  { %6012 = vtanh.f32 %v3355_v44  ;;  %v3350_v43 = vpop.f32.mrf.mxu1 }
 0xa3c   :  { %6014 = vpow2.f32 %v5274_v1  ;;  %v8966_v1 = vld [vmem:[#allocation56_spill] sm:$0xff] }
 0xa47   :  { %v6011_v7 = vpop.eup %6010 }
 0xa48   :  { %v6013_v36 = vpop.eup %6012  ;;  %v3367_v14 = vadd.f32 1.0, %v6011_v7 }
 0xa49   :  { %v3379_v62 = vmul.f32 %v6013_v36, %v6009_v42  ;;  %v6015_v63 = vpop.eup %6014 }
 0xa4a   :  { %6016 = vrcp.f32 %v3367_v14  ;;  %v3482_v23 = vadd.f32 1.0, %v6015_v63 }
 0xa4b   :  { %v8095_v48 = vadd.f32 %v3379_v62, %v7912_v18 }
 0xa4d   :  { %6018 = vtanh.f32 %v8095_v48 }
 0xa4e   :  { %6020 = vrcp.f32 %v3482_v23 }
 0xa55   :  { %v3462_v21 = vpop.f32.mrf.mxu1 }
 0xa56   :  { %v3471_v44 = vadd.f32 %v3462_v21, %v8100_v51 }
 0xa57   :  { %v3464_v43 = vpop.f32.mrf.mxu1  ;;  %v6017_v42 = vpop.eup %6016 }
 0xa58   :  { %v5276_v15 = vmul.f32 -1.442695, %v3471_v44  ;;  %v3472_v7 = vadd.f32 %v3464_v43, %v8966_v1 }
 0xa59   :  { %v3466_v62 = vpop.f32.mrf.mxu1 }
 0xa5a   :  { %v6019_v18 = vpop.eup %6018  ;;  %6022 = vpow2.f32 %v5276_v15  ;;  %v5270_v15 = vmul.f32 -1.442695, %v8084_v52  ;;  %v8140_v52 = vld [vmem:[#allocation7 + $0x8] sm:$0xff]  }
 0xa5b   :  { %6024 = vtanh.f32 %v3472_v7  ;;  %v3467_v14 = vpop.f32.mrf.mxu1  ;;  %v8104_v36 = vmul.f32 %v6019_v18, %v6017_v42  ;;  %v6021_v63 = vpop.eup %6020  ;;  %8969 = vst [vmem:[#allocation34_spill] sm:$0xff] %v8140_v52  ;;  %v8146_v18 = vld [vmem:[#allocation7] sm:$0xff]  }
 0xa5c   :  { %8970 = vst [vmem:[#allocation55_spill] sm:$0xff] %v8146_v18 }
 0xa5d   :  { %8967 = vst [vmem:[#allocation32_spill] sm:$0xff] %v8104_v36  ;;  %v8108_v47 = vpack.c.bf16 %v8104_v36, %v8104_v36 }
 0xa5f   :  { %3614 = vmatmul.mubr.bf16.vlgmr.msra.gmra.mxu1 %v8108_v47 }
 0xa60   :  { %3708 = vmatpush1.bf16.msra.mxu1 %v7777_v17  ;;  %3739 = vmatprep.mubr.bf16.mxu1 %v8860_v12 }
 0xa61   :  { %3709 = vmatprep.subr.bf16.mxu1 %v7781_v10 }
 0xa64   :  { %3710 = vmatpush1.bf16.msra.mxu1 %v7842_v28 }
 0xa65   :  { %3711 = vmatprep.subr.bf16.mxu1 %v7846_v37 }
 0xa67   :  { %v6023_v54 = vpop.eup %6022 }
 0xa68   :  { %v6025_v23 = vpop.eup %6024  ;;  %v3484_v21 = vadd.f32 1.0, %v6023_v54  ;;  %3712 = vmatpush1.bf16.msra.mxu1 %v7849_v56 }
 0xa69   :  { %v3496_v44 = vmul.f32 %v6025_v23, %v6021_v63  ;;  %3713 = vmatprep.subr.bf16.mxu1 %v7854_v19 }
 0xa6a   :  { %6026 = vrcp.f32 %v3484_v21 }
 0xa6b   :  { %v8119_v43 = vadd.f32 %v3496_v44, %v7915_v33  ;;  %v3243_v44 = vrot.slane %v7901_v59, 6 }
 0xa6c   :  { %3714 = vmatpush1.bf16.msra.mxu1 %v7858_v30 }
 0xa6d   :  { %6028 = vtanh.f32 %v8119_v43  ;;  %3715 = vmatprep.subr.bf16.mxu1 %v7861_v35 }
 0xa6e   :  { %6030 = vpow2.f32 %v5270_v15 }
 0xa70   :  { %3716 = vmatpush1.bf16.msra.mxu1 %v7864_v24 }
 0xa71   :  { %3717 = vmatprep.subr.bf16.mxu1 %v7867_v45 }
 0xa74   :  { %3718 = vmatpush1.bf16.msra.mxu1 %v7870_v4 }
 0xa75   :  { %3719 = vmatprep.subr.bf16.mxu1 %v7873_v11 }
 0xa77   :  { %v6027_v33 = vpop.eup %6026 }
 0xa78   :  { %3720 = vmatpush1.bf16.msra.mxu1 %v7876_v58 }
 0xa79   :  { %3721 = vmatprep.subr.bf16.mxu1 %v7879_v50 }
 0xa7a   :  { %v6029_v7 = vpop.eup %6028 }
 0xa7b   :  { %v8131_v42 = vmul.f32 %v6029_v7, %v6027_v33  ;;  %v6031_v14 = vpop.eup %6030 }
 0xa7c   :  { %3722 = vmatpush1.bf16.msra.mxu1 %v7886_v9  ;;  %v3238_v63 = vadd.f32 1.0, %v6031_v14 }
 0xa7d   :  { %8968 = vst [vmem:[#allocation33_spill] sm:$0xff] %v8131_v42  ;;  %v8136_v62 = vpack.c.bf16 %v8131_v42, %v8131_v42  ;;  %5460 = vmatprep.subr.bf16.mxu1 %v8874_v29 }
 0xa7e   :  { %6032 = vrcp.f32 %v3238_v63 }
 0xa7f   :  { %3740 = vmatmul.mubr.bf16.vlgmr.msra.gmra.mxu1 %v8136_v62 }
 0xa80   :  { %5461 = vmatpush3.bf16.msra.mxu1 %v8140_v52  ;;  %5464 = vmatprep.mubr.msk.bf16.mxu1 %vm6393_vm3, %v8874_v29 }
 0xa81   :  { %5462 = vmatprep.subr.bf16.mxu1 %v8874_v29  ;;  %v3699_v29 = vrot.slane %v8095_v48, 6 }
 0xa84   :  { %5463 = vmatpush3.bf16.msra.mxu1 %v8146_v18 }
 0xa85   :  { %3959 = vmatprep.subr.bf16.mxu1 %v7807_v5 }
 0xa8b   :  { %v6033_v54 = vpop.eup %6032 }
 0xa8c   :  { %v3245_v15 = vmul.f32 %v6033_v54, %v3243_v44 }
 0xa9a   :  { %v3248_v23 = vpop.permute.xlu0 %3247 }
 0xa9b   :  { %v3250_v21 = vmul.f32 %v6033_v54, %v3248_v23 }
 0xa9d   :  { %3252 = vrot.lane.b32.xlu1 %v3250_v21, %s6394_s4 }
 0xb0f   :  { %v3253_v33 = vpop.permute.xlu1 %3252 }
 0xb10   :  { %v8152_v7 = vadd.f32 %v3253_v33, %v3245_v15 }
 0xb12   :  { %8971 = vst [vmem:[#allocation36_spill] sm:$0xff] %v8152_v7  ;;  %6034 = vtanh.f32 %v8152_v7 }
 0xb1f   :  { %v6035_v42 = vpop.eup %6034  ;;  %v8155_v36 = vpop.f32.mrf.mxu1 }
 0xb20   :  { %3258 = vrot.lane.b32.xlu0 %v6035_v42, %s6394_s4 }
 0xb21   :  { %v3617_v14 = vpop.f32.mrf.mxu1 }
 0xb22   :  { %v3668_v63 = vrot.slane %v3617_v14, 6 }
 0xb23   :  { %v3619_v5 = vpop.f32.mrf.mxu1 }
 0xb24   :  { %v3676_v23 = vadd.f32 %v3668_v63, %v8940_v55 }
 0xb25   :  { %v3620_v18 = vpop.f32.mrf.mxu1 }
 0xb26   :  { %v5280_v21 = vmul.f32 -1.442695, %v3676_v23  ;;  %v3825_v23 = vrot.slane %v8119_v43, 6  ;;  %v8974_v43 = vld [vmem:[#allocation46_spill] sm:$0xff] }
 0xb28   :  { %6036 = vpow2.f32 %v5280_v21 }
 0xb35   :  { %v6037_v59 = vpop.eup %6036 }
 0xb36   :  { %v3689_v44 = vadd.f32 1.0, %v6037_v59 }
 0xb38   :  { %6038 = vrcp.f32 %v3689_v44 }
 0xb3f   :  { %v8159_v15 = vpop.f32.mrf.mxu1 }
 0xb41   :  { %v3743_v33 = vpop.f32.mrf.mxu1 }
 0xb42   :  { %v3794_v7 = vrot.slane %v3743_v33, 6  ;;  %v8976_v33 = vld [vmem:[#allocation48_spill] sm:$0xff] }
 0xb43   :  { %v3745_v52 = vpop.f32.mrf.mxu1 }
 0xb44   :  { %v3802_v42 = vadd.f32 %v3794_v7, %v8941_v8 }
 0xb45   :  { %v6039_v9 = vpop.eup %6038  ;;  %v3746_v14 = vpop.f32.mrf.mxu1 }
 0xb46   :  { %v5283_v5 = vmul.f32 -1.442695, %v3802_v42  ;;  %v8163_v50 = vmul.f32 %v6039_v9, %v3699_v29  ;;  %v8973_v9 = vld [vmem:[#allocation45_spill] sm:$0xff]  ;;  %v8978_v14 = vld [vmem:[#allocation50_spill] sm:$0xff] }
 0xb47   :  { %v8977_v42 = vld [vmem:[#allocation49_spill] sm:$0xff] }
 0xb48   :  { %6040 = vpow2.f32 %v5283_v5  ;;  %v8979_v5 = vld [vmem:[#allocation51_spill] sm:$0xff] }
 0xb55   :  { %v6041_v18 = vpop.eup %6040 }
 0xb56   :  { %v3815_v63 = vadd.f32 1.0, %v6041_v18  ;;  %v8980_v18 = vld [vmem:[#allocation53_spill] sm:$0xff] }
 0xb58   :  { %6042 = vrcp.f32 %v3815_v63  ;;  %v8981_v63 = vld [vmem:[#allocation37_spill] sm:$0xff] }
 0xb65   :  { %v6043_v21 = vpop.eup %6042 }
 0xb66   :  { %v8166_v59 = vmul.f32 %v6043_v21, %v3825_v23  ;;  %v8982_v23 = vld [vmem:[#allocation52_spill] sm:$0xff]  ;;  %v8983_v21 = vld [vmem:[#allocation59_spill] sm:$0xff] }
 0xb92   :  { %v3259_v44 = vpop.permute.xlu0 %3258 }
 0xb93   :  { %v8168_v52 = vmul.f32 %v6033_v54, %v3259_v44  ;;  %v8975_v54 = vld [vmem:[#allocation47_spill] sm:$0xff] }
 0xb94   :  { %v8985_v44 = vld [vmem:[#allocation15_spill] sm:$0xff] }
 0xb95   :  { %8972 = vst [vmem:[#allocation56_spill] sm:$0xff] %v8168_v52  ;;  %v3500_v48 = vpack.c.bf16 %v8168_v52, %v8168_v52  ;;  %v8989_v52 = vld [vmem:[#allocation19_spill] sm:$0xff] }
 0xb97   :  { %v3502_v7 = vrot.slane %v3500_v48, 3  ;;  %v8986_v48 = vld [vmem:[#allocation16_spill] sm:$0xff] }
 0xb99   :  { %3503 = vrot.lane.b32.xlu1 %v3502_v7, %s6386_s19  ;;  %v8987_v7 = vld [vmem:[#allocation17_spill] sm:$0xff] }
 0xc0b   :  { %v3504_v29 = vpop.permute.xlu1 %3503 }
 0xc0c   :  { %5457 = vmatmul.mubr.msk.bf16.vlgmr.msra.gmra.mxu0 %vm1364_vm2, %v3504_v29  ;;  %v8988_v29 = vld [vmem:[#allocation18_spill] sm:$0xff] }
 0xc0d   :  { %3623 = vmatpush1.bf16.msra.mxu0 %v7926_v3  ;;  %3654 = vmatprep.mubr.bf16.mxu0 %v8860_v12 }
 0xc0e   :  { %3624 = vmatprep.subr.bf16.mxu0 %v7933_v31 }
 0xc11   :  { %3625 = vmatpush1.bf16.msra.mxu0 %v7939_v20 }
 0xc12   :  { %3626 = vmatprep.subr.bf16.mxu0 %v7945_v27 }
 0xc15   :  { %3627 = vmatpush1.bf16.msra.mxu0 %v7951_v38 }
 0xc16   :  { %3628 = vmatprep.subr.bf16.mxu0 %v7957_v34 }
 0xc19   :  { %3629 = vmatpush1.bf16.msra.mxu0 %v7963_v6 }
 0xc1a   :  { %3630 = vmatprep.subr.bf16.mxu0 %v7969_v39 }
 0xc1d   :  { %3631 = vmatpush1.bf16.msra.mxu0 %v7975_v22 }
 0xc1e   :  { %3632 = vmatprep.subr.bf16.mxu0 %v7981_v40 }
 0xc21   :  { %3633 = vmatpush1.bf16.msra.mxu0 %v7987_v41 }
 0xc22   :  { %3634 = vmatprep.subr.bf16.mxu0 %v7993_v61 }
 0xc25   :  { %3635 = vmatpush1.bf16.msra.mxu0 %v7999_v49 }
 0xc26   :  { %3636 = vmatprep.subr.bf16.mxu0 %v8005_v0 }
 0xc29   :  { %3637 = vmatpush1.bf16.msra.mxu0 %v8973_v9 }
 0xc2a   :  { %3748 = vmatprep.subr.bf16.mxu0 %v8974_v43 }
 0xc2c   :  { %3655 = vmatmul.mubr.bf16.vlgmr.msra.gmra.mxu0 %v8108_v47  ;;  %v8984_v47 = vld [vmem:[#allocation14_spill] sm:$0xff] }
 0xc2d   :  { %3749 = vmatpush1.bf16.msra.mxu0 %v8975_v54  ;;  %3780 = vmatprep.mubr.bf16.mxu0 %v8860_v12 }
 0xc2e   :  { %3750 = vmatprep.subr.bf16.mxu0 %v8976_v33 }
 0xc31   :  { %3751 = vmatpush1.bf16.msra.mxu0 %v8977_v42 }
 0xc32   :  { %3752 = vmatprep.subr.bf16.mxu0 %v8978_v14 }
 0xc35   :  { %3753 = vmatpush1.bf16.msra.mxu0 %v8979_v5 }
 0xc36   :  { %3754 = vmatprep.subr.bf16.mxu0 %v8980_v18 }
 0xc39   :  { %3755 = vmatpush1.bf16.msra.mxu0 %v8981_v63 }
 0xc3a   :  { %3756 = vmatprep.subr.bf16.mxu0 %v8982_v23 }
 0xc3d   :  { %3757 = vmatpush1.bf16.msra.mxu0 %v8983_v21 }
 0xc3e   :  { %3758 = vmatprep.subr.bf16.mxu0 %v8046_v26 }
 0xc41   :  { %3759 = vmatpush1.bf16.msra.mxu0 %v8049_v13 }
 0xc42   :  { %3760 = vmatprep.subr.bf16.mxu0 %v8052_v32 }
 0xc45   :  { %3761 = vmatpush1.bf16.msra.mxu0 %v8055_v25  ;;  %v8995_v25 = vld [vmem:[#allocation25_spill] sm:$0xff] }
 0xc46   :  { %3762 = vmatprep.subr.bf16.mxu0 %v8058_v60  ;;  %v8990_v60 = vld [vmem:[#allocation20_spill] sm:$0xff] }
 0xc49   :  { %3763 = vmatpush1.bf16.msra.mxu0 %v8061_v46  ;;  %v8991_v46 = vld [vmem:[#allocation21_spill] sm:$0xff] }
 0xc4a   :  { %3918 = vmatprep.subr.bf16.mxu0 %v7642_v2  ;;  %v8992_v2 = vld [vmem:[#allocation22_spill] sm:$0xff] }
 0xc4c   :  { %3781 = vmatmul.mubr.bf16.vlgmr.msra.gmra.mxu0 %v8136_v62  ;;  %v8993_v62 = vld [vmem:[#allocation23_spill] sm:$0xff] }
 0xc4d   :  { %3919 = vmatpush1.bf16.msra.mxu0 %v8984_v47  ;;  %3950 = vmatprep.mubr.bf16.mxu0 %v8860_v12  ;;  %v8994_v47 = vld [vmem:[#allocation24_spill] sm:$0xff] }
 0xc4e   :  { %3920 = vmatprep.subr.bf16.mxu0 %v8985_v44  ;;  %v8996_v44 = vld [vmem:[#allocation26_spill] sm:$0xff] }
 0xc51   :  { %3921 = vmatpush1.bf16.msra.mxu0 %v8986_v48  ;;  %v8997_v48 = vld [vmem:[#allocation27_spill] sm:$0xff] }
 0xc52   :  { %3922 = vmatprep.subr.bf16.mxu0 %v8987_v7  ;;  %v8998_v7 = vld [vmem:[#allocation28_spill] sm:$0xff] }
 0xc55   :  { %3923 = vmatpush1.bf16.msra.mxu0 %v8988_v29  ;;  %v8999_v29 = vld [vmem:[#allocation31_spill] sm:$0xff] }
 0xc56   :  { %3924 = vmatprep.subr.bf16.mxu0 %v8989_v52 }
 0xc59   :  { %3925 = vmatpush1.bf16.msra.mxu0 %v8990_v60  ;;  %v9000_v60 = vld [vmem:[#allocation58_spill] sm:$0xff] }
 0xc5a   :  { %3926 = vmatprep.subr.bf16.mxu0 %v8991_v46 }
 0xc5d   :  { %3927 = vmatpush1.bf16.msra.mxu0 %v8992_v2 }
 0xc5e   :  { %3928 = vmatprep.subr.bf16.mxu0 %v8993_v62  ;;  %v3667_v62 = vrot.slane %v8155_v36, 6 }
 0xc61   :  { %3929 = vmatpush1.bf16.msra.mxu0 %v8994_v47 }
 0xc62   :  { %3930 = vmatprep.subr.bf16.mxu0 %v8995_v25  ;;  %v9001_v25 = vld [vmem:[#allocation29_spill] sm:$0xff] }
 0xc63   :  { %v3675_v13 = vadd.f32 %v3667_v62, %v9001_v25  ;;  %v3793_v62 = vrot.slane %v8159_v15, 6 }
 0xc65   :  { %3931 = vmatpush1.bf16.msra.mxu0 %v8996_v44  ;;  %v5279_v44 = vmul.f32 -1.442695, %v3675_v13 }
 0xc66   :  { %3932 = vmatprep.subr.bf16.mxu0 %v8997_v48 }
 0xc69   :  { %3933 = vmatpush1.bf16.msra.mxu0 %v8998_v7 }
 0xc6a   :  { %4047 = vmatprep.subr.bf16.mxu0 %v8999_v29 }
 0xccc   :  { %v3542_v52 = vpop.f32.mrf.mxu0 }
 0xccd   :  { %v8228_v32 = vadd.f32 %v3542_v52, %v9000_v60 }
 0xcce   :  { %v5458_v46 = vpop.f32.mrf.mxu0 }
 0xccf   :  { %6044 = vtanh.f32 %v8228_v32 }
 0xcd0   :  { %v3545_v2 = vpop.f32.mrf.mxu0  ;;  %6046 = vpow2.f32 %v5279_v44 }
 0xcd2   :  { %v5459_v47 = vpop.f32.mrf.mxu0 }
 0xcdc   :  { %v6045_v26 = vpop.eup %6044 }
 0xcdd   :  { %3561 = vrot.lane.b32.xlu0 %v6045_v26, %s6394_s4  ;;  %v6047_v48 = vpop.eup %6046  ;;  %v3801_v26 = vadd.f32 %v3793_v62, %v8963_v53 }
 0xcde   :  { %v3688_v21 = vadd.f32 1.0, %v6047_v48 }
 0xcdf   :  { %v5282_v47 = vmul.f32 -1.442695, %v3801_v26 }
 0xce0   :  { %6048 = vrcp.f32 %v3688_v21 }
 0xcec   :  { %v3656_v7 = vpop.f32.mrf.mxu0 }
 0xced   :  { %v3669_v29 = vrot.slane %v3656_v7, 6  ;;  %v6049_v44 = vpop.eup %6048 }
 0xcee   :  { %v3658_v52 = vpop.f32.mrf.mxu0 }
 0xcef   :  { %v3677_v46 = vadd.f32 %v3669_v29, %v8961_v16  ;;  %v3670_v60 = vrot.slane %v3658_v52, 6 }
 0xcf0   :  { %v3660_v23 = vpop.f32.mrf.mxu0 }
 0xcf1   :  { %v5281_v2 = vmul.f32 -1.442695, %v3677_v46  ;;  %v3678_v36 = vadd.f32 %v3670_v60, %v8962_v57 }
 0xcf2   :  { %v3661_v13 = vpop.f32.mrf.mxu0 }
 0xcf3   :  { %6050 = vpow2.f32 %v5281_v2 }
 0xcf4   :  { %6052 = vtanh.f32 %v3678_v36 }
 0xcf5   :  { %6054 = vpow2.f32 %v5282_v47 }
 0xd00   :  { %v6051_v48 = vpop.eup %6050 }
 0xd01   :  { %v6053_v7 = vpop.eup %6052  ;;  %v3690_v25 = vadd.f32 1.0, %v6051_v48 }
 0xd02   :  { %v3702_v29 = vmul.f32 %v6053_v7, %v6049_v44  ;;  %v6055_v21 = vpop.eup %6054 }
 0xd03   :  { %6056 = vrcp.f32 %v3690_v25  ;;  %v3814_v52 = vadd.f32 1.0, %v6055_v21 }
 0xd04   :  { %v8239_v23 = vadd.f32 %v3702_v29, %v8163_v50 }
 0xd06   :  { %6058 = vtanh.f32 %v8239_v23 }
 0xd07   :  { %6060 = vrcp.f32 %v3814_v52 }
 0xd0c   :  { %v3782_v15 = vpop.f32.mrf.mxu0 }
 0xd0d   :  { %v3795_v60 = vrot.slane %v3782_v15, 6 }
 0xd0e   :  { %v3784_v46 = vpop.f32.mrf.mxu0 }
 0xd0f   :  { %v3803_v2 = vadd.f32 %v3795_v60, %v8100_v51  ;;  %v3796_v36 = vrot.slane %v3784_v46, 6 }
 0xd10   :  { %v3786_v62 = vpop.f32.mrf.mxu0  ;;  %v6057_v47 = vpop.eup %6056 }
 0xd11   :  { %v5284_v13 = vmul.f32 -1.442695, %v3803_v2  ;;  %v3804_v26 = vadd.f32 %v3796_v36, %v8966_v1  ;;  %v9008_v62 = vld [vmem:[#allocation36_spill] sm:$0xff] }
 0xd12   :  { %v3787_v44 = vpop.f32.mrf.mxu0 }
 0xd13   :  { %v6059_v50 = vpop.eup %6058  ;;  %6062 = vpow2.f32 %v5284_v13  ;;  %v3557_v13 = vrot.slane %v9008_v62, 6 }
 0xd14   :  { %6064 = vtanh.f32 %v3804_v26  ;;  %v8244_v25 = vmul.f32 %v6059_v50, %v6057_v47  ;;  %v6061_v29 = vpop.eup %6060 }
 0xd16   :  { %v3914_v48 = vpack.c.bf16 %v8244_v25, %v8244_v25 }
 0xd18   :  { %v8248_v7 = vrot.slane %v3914_v48, 1 }
 0xd1a   :  { %3951 = vmatmul.mubr.bf16.vlgmr.msra.gmra.mxu0 %v8248_v7 }
 0xd1b   :  { %4048 = vmatpush1.bf16.msra.mxu0 %v7777_v17  ;;  %4079 = vmatprep.mubr.bf16.mxu0 %v8860_v12  ;;  %v5278_v17 = vmul.f32 -1.442695, %v8228_v32  ;;  %v9007_v32 = vld [vmem:[#allocation39_spill] sm:$0xff] }
 0xd1c   :  { %4049 = vmatprep.subr.bf16.mxu0 %v7781_v10 }
 0xd1f   :  { %4050 = vmatpush1.bf16.msra.mxu0 %v7842_v28 }
 0xd20   :  { %v6063_v21 = vpop.eup %6062  ;;  %4051 = vmatprep.subr.bf16.mxu0 %v7846_v37  ;;  %v9002_v37 = vld [vmem:[#allocation41_spill] sm:$0xff] }
 0xd21   :  { %v6065_v15 = vpop.eup %6064  ;;  %v3816_v60 = vadd.f32 1.0, %v6063_v21 }
 0xd22   :  { %v3828_v52 = vmul.f32 %v6065_v15, %v6061_v29 }
 0xd23   :  { %4052 = vmatpush1.bf16.msra.mxu0 %v7849_v56  ;;  %6066 = vrcp.f32 %v3816_v60 }
 0xd24   :  { %v8258_v46 = vadd.f32 %v3828_v52, %v8166_v59  ;;  %4053 = vmatprep.subr.bf16.mxu0 %v7854_v19 }
 0xd26   :  { %6068 = vtanh.f32 %v8258_v46 }
 0xd27   :  { %4054 = vmatpush1.bf16.msra.mxu0 %v7858_v30  ;;  %6070 = vpow2.f32 %v5278_v17  ;;  %v9003_v30 = vld [vmem:[#allocation43_spill] sm:$0xff] }
 0xd28   :  { %4055 = vmatprep.subr.bf16.mxu0 %v7861_v35 }
 0xd2b   :  { %4056 = vmatpush1.bf16.msra.mxu0 %v7864_v24  ;;  %v9004_v24 = vmov 0.0  }
 0xd2c   :  { %4057 = vmatprep.subr.bf16.mxu0 %v7867_v45 }
 0xd2f   :  { %4058 = vmatpush1.bf16.msra.mxu0 %v7870_v4  ;;  %v9005_v4 = vld [vmem:[#allocation34_spill] sm:$0xff] }
 0xd30   :  { %4059 = vmatprep.subr.bf16.mxu0 %v7873_v11  ;;  %v6067_v10 = vpop.eup %6066 }
 0xd33   :  { %v6069_v28 = vpop.eup %6068  ;;  %4060 = vmatpush1.bf16.msra.mxu0 %v7876_v58  ;;  %v9006_v58 = vld [vmem:[#allocation55_spill] sm:$0xff] }
 0xd34   :  { %4061 = vmatprep.subr.bf16.mxu0 %v9002_v37  ;;  %v8271_v56 = vmul.f32 %v6069_v28, %v6067_v10  ;;  %v6071_v45 = vpop.eup %6070 }
 0xd35   :  { %v3552_v11 = vadd.f32 1.0, %v6071_v45 }
 0xd36   :  { %v4043_v19 = vpack.c.bf16 %v8271_v56, %v8271_v56 }
 0xd37   :  { %4062 = vmatpush1.bf16.msra.mxu0 %v9003_v30  ;;  %6072 = vrcp.f32 %v3552_v11  ;;  %v4036_v11 = vrot.slane %v8239_v23, 6 }
 0xd38   :  { %v8276_v35 = vrot.slane %v4043_v19, 1  ;;  %5468 = vmatprep.subr.bf16.mxu0 %v9004_v24 }
 0xd3a   :  { %4080 = vmatmul.mubr.bf16.vlgmr.msra.gmra.mxu0 %v8276_v35 }
 0xd3b   :  { %5469 = vmatpush3.bf16.msra.mxu0 %v9005_v4  ;;  %5472 = vmatprep.mubr.msk.bf16.mxu0 %vm6393_vm3, %v9004_v24 }
 0xd3c   :  { %5470 = vmatprep.subr.bf16.mxu0 %v9004_v24 }
 0xd3f   :  { %5471 = vmatpush3.bf16.msra.mxu0 %v9006_v58 }
 0xd40   :  { %4300 = vmatprep.subr.bf16.mxu0 %v9007_v32 }
 0xd44   :  { %v6073_v59 = vpop.eup %6072 }
 0xd45   :  { %v3559_v26 = vmul.f32 %v6073_v59, %v3557_v13 }
 0xd4f   :  { %v3562_v2 = vpop.permute.xlu0 %3561 }
 0xd50   :  { %v3564_v36 = vmul.f32 %v6073_v59, %v3562_v2 }
 0xd52   :  { %3566 = vrot.lane.b32.xlu1 %v3564_v36, %s6394_s4 }
 0xdc4   :  { %v3567_v47 = vpop.permute.xlu1 %3566 }
 0xdc5   :  { %v8288_v44 = vadd.f32 %v3567_v47, %v3559_v26 }
 0xdc7   :  { %6074 = vtanh.f32 %v8288_v44 }
 0xdd4   :  { %v6075_v50 = vpop.eup %6074 }
 0xdd5   :  { %3572 = vrot.lane.b32.xlu0 %v6075_v50, %s6394_s4  ;;  %v4165_v50 = vrot.slane %v8258_v46, 6  ;;  %v6246_v46 = vld [vmem:[#allocation5 + $0xe4] ss:$16 sps:$4 sm:$0xff]  }
 0xdda   :  { %v8292_v48 = vpop.f32.mrf.mxu0 }
 0xddc   :  { %v3954_v29 = vpop.f32.mrf.mxu0 }
 0xddd   :  { %v4005_v21 = vrot.slane %v3954_v29, 4 }
 0xdde   :  { %v3956_v15 = vpop.f32.mrf.mxu0 }
 0xddf   :  { %v4013_v60 = vadd.f32 %v4005_v21, %v8940_v55 }
 0xde0   :  { %v3957_v52 = vpop.f32.mrf.mxu0 }
 0xde1   :  { %v5288_v17 = vmul.f32 -1.442695, %v4013_v60 }
 0xde3   :  { %6076 = vpow2.f32 %v5288_v17 }
 0xdf0   :  { %v6077_v10 = vpop.eup %6076 }
 0xdf1   :  { %v4026_v28 = vadd.f32 1.0, %v6077_v10  ;;  %v9017_v10 = vld [vmem:[#allocation58_spill] sm:$0xff] }
 0xdf3   :  { %6078 = vrcp.f32 %v4026_v28 }
 0xdfa   :  { %v8295_v37 = vpop.f32.mrf.mxu0 }
 0xdfc   :  { %v4083_v19 = vpop.f32.mrf.mxu0 }
 0xdfd   :  { %v4134_v30 = vrot.slane %v4083_v19, 4 }
 0xdfe   :  { %v4085_v45 = vpop.f32.mrf.mxu0 }
 0xdff   :  { %v4142_v32 = vadd.f32 %v4134_v30, %v8941_v8  ;;  %v4004_v30 = vrot.slane %v8292_v48, 4 }
 0xe00   :  { %v6079_v2 = vpop.eup %6078  ;;  %v4086_v36 = vpop.f32.mrf.mxu0 }
 0xe01   :  { %v5291_v62 = vmul.f32 -1.442695, %v4142_v32  ;;  %v8299_v13 = vmul.f32 %v6079_v2, %v4036_v11  ;;  %v9018_v11 = vld [vmem:[#allocation29_spill] sm:$0xff] }
 0xe02   :  { %v4012_v32 = vadd.f32 %v4004_v30, %v9018_v11  ;;  %v6248_v30 = vld [vmem:[#allocation5 + $0xc4] ss:$16 sps:$4 sm:$0xff]  }
 0xe03   :  { %6080 = vpow2.f32 %v5291_v62 }
 0xe04   :  { %v5287_v2 = vmul.f32 -1.442695, %v4012_v32  ;;  %v6249_v32 = vld [vmem:[#allocation5 + $0xc0] ss:$16 sps:$4 sm:$0xff]  }
 0xe10   :  { %v6081_v26 = vpop.eup %6080 }
 0xe11   :  { %v4155_v47 = vadd.f32 1.0, %v6081_v26 }
 0xe13   :  { %6082 = vrcp.f32 %v4155_v47 }
 0xe20   :  { %v6083_v29 = vpop.eup %6082 }
 0xe21   :  { %v8302_v21 = vmul.f32 %v6083_v29, %v4165_v50 }
 0xe47   :  { %v3573_v15 = vpop.permute.xlu0 %3572 }
 0xe48   :  { %v8304_v60 = vmul.f32 %v6073_v59, %v3573_v15 }
 0xe4a   :  { %v3832_v23 = vpack.c.bf16 %v8304_v60, %v8304_v60 }
 0xe4c   :  { %3834 = vrot.lane.b32.xlu1 %v3832_v23, %s6386_s19 }
 0xebe   :  { %v3835_v52 = vpop.permute.xlu1 %3834 }
 0xebf   :  { %5465 = vmatmul.mubr.msk.bf16.vlgmr.msra.gmra.mxu1 %vm1364_vm2, %v3835_v52 }
 0xec0   :  { %3960 = vmatpush1.bf16.msra.mxu1 %v7926_v3  ;;  %3991 = vmatprep.mubr.bf16.mxu1 %v8860_v12  ;;  %v9009_v3 = vld [vmem:[#allocation52_spill] sm:$0xff] }
 0xec1   :  { %3961 = vmatprep.subr.bf16.mxu1 %v7933_v31  ;;  %v9010_v31 = vld [vmem:[#allocation59_spill] sm:$0xff] }
 0xec4   :  { %3962 = vmatpush1.bf16.msra.mxu1 %v7939_v20  ;;  %v9011_v20 = vld [vmem:[#allocation54_spill] sm:$0xff] }
 0xec5   :  { %3963 = vmatprep.subr.bf16.mxu1 %v7945_v27  ;;  %v9012_v27 = vld [vmem:[#allocation57_spill] sm:$0xff] }
 0xec8   :  { %3964 = vmatpush1.bf16.msra.mxu1 %v7951_v38  ;;  %v9013_v38 = vld [vmem:[#allocation30_spill] sm:$0xff] }
 0xec9   :  { %3965 = vmatprep.subr.bf16.mxu1 %v7957_v34  ;;  %v9014_v34 = vld [vmem:[#allocation35_spill] sm:$0xff] }
 0xecc   :  { %3966 = vmatpush1.bf16.msra.mxu1 %v7963_v6  ;;  %v9015_v6 = vld [vmem:[#allocation60_spill] sm:$0xff] }
 0xecd   :  { %3967 = vmatprep.subr.bf16.mxu1 %v7969_v39  ;;  %v9016_v39 = vld [vmem:[#allocation61_spill] sm:$0xff] }
 0xed0   :  { %3968 = vmatpush1.bf16.msra.mxu1 %v7975_v22  ;;  %v6230_v22 = vld [vmem:[%s8701_s5 + $0xe4] ss:$16 sps:$4 sm:$0xff]  }
 0xed1   :  { %3969 = vmatprep.subr.bf16.mxu1 %v7981_v40  ;;  %v6231_v40 = vld [vmem:[%s8701_s5 + $0xe0] ss:$16 sps:$4 sm:$0xff]  }
 0xed4   :  { %3970 = vmatpush1.bf16.msra.mxu1 %v7987_v41  ;;  %v6232_v41 = vld [vmem:[%s8701_s5 + $0xc4] ss:$16 sps:$4 sm:$0xff]  }
 0xed5   :  { %3971 = vmatprep.subr.bf16.mxu1 %v7993_v61  ;;  %v6233_v61 = vld [vmem:[%s8701_s5 + $0xc0] ss:$16 sps:$4 sm:$0xff]  }
 0xed8   :  { %3972 = vmatpush1.bf16.msra.mxu1 %v7999_v49  ;;  %v6234_v49 = vld [vmem:[%s8701_s5 + $0xa4] ss:$16 sps:$4 sm:$0xff]  }
 0xed9   :  { %3973 = vmatprep.subr.bf16.mxu1 %v8005_v0  ;;  %v6235_v0 = vld [vmem:[%s8701_s5 + $0xa0] ss:$16 sps:$4 sm:$0xff]  }
 0xedc   :  { %3974 = vmatpush1.bf16.msra.mxu1 %v8973_v9  ;;  %v6236_v9 = vld [vmem:[%s8701_s5 + $0x84] ss:$16 sps:$4 sm:$0xff]  }
 0xedd   :  { %4088 = vmatprep.subr.bf16.mxu1 %v8974_v43  ;;  %v6237_v43 = vld [vmem:[%s8701_s5 + $0x80] ss:$16 sps:$4 sm:$0xff]  }
 0xedf   :  { %3992 = vmatmul.mubr.bf16.vlgmr.msra.gmra.mxu1 %v8248_v7  ;;  %v6245_v7 = vld [vmem:[%s8701_s5] ss:$16 sps:$4 sm:$0xff]  }
 0xee0   :  { %4089 = vmatpush1.bf16.msra.mxu1 %v8975_v54  ;;  %4120 = vmatprep.mubr.bf16.mxu1 %v8860_v12  ;;  %v6238_v54 = vld [vmem:[%s8701_s5 + $0x64] ss:$16 sps:$4 sm:$0xff]  }
 0xee1   :  { %4090 = vmatprep.subr.bf16.mxu1 %v8976_v33  ;;  %v6239_v33 = vld [vmem:[%s8701_s5 + $0x60] ss:$16 sps:$4 sm:$0xff]  }
 0xee4   :  { %4091 = vmatpush1.bf16.msra.mxu1 %v8977_v42  ;;  %v6240_v42 = vld [vmem:[%s8701_s5 + $0x44] ss:$16 sps:$4 sm:$0xff]  }
 0xee5   :  { %4092 = vmatprep.subr.bf16.mxu1 %v8978_v14  ;;  %v6241_v14 = vld [vmem:[%s8701_s5 + $0x40] ss:$16 sps:$4 sm:$0xff]  }
 0xee8   :  { %4093 = vmatpush1.bf16.msra.mxu1 %v8979_v5  ;;  %v6242_v5 = vld [vmem:[%s8701_s5 + $0x24] ss:$16 sps:$4 sm:$0xff]  }
 0xee9   :  { %4094 = vmatprep.subr.bf16.mxu1 %v8980_v18  ;;  %v6243_v18 = vld [vmem:[%s8701_s5 + $0x20] ss:$16 sps:$4 sm:$0xff]  }
 0xeec   :  { %4095 = vmatpush1.bf16.msra.mxu1 %v8981_v63  ;;  %v6244_v63 = vld [vmem:[%s8701_s5 + $0x4] ss:$16 sps:$4 sm:$0xff]  }
 0xeed   :  { %4096 = vmatprep.subr.bf16.mxu1 %v9009_v3 }
 0xef0   :  { %4097 = vmatpush1.bf16.msra.mxu1 %v9010_v31  ;;  %v4133_v31 = vrot.slane %v8295_v37, 4 }
 0xef1   :  { %4098 = vmatprep.subr.bf16.mxu1 %v9011_v20 }
 0xef4   :  { %4099 = vmatpush1.bf16.msra.mxu1 %v9012_v27  ;;  %v4141_v27 = vadd.f32 %v4133_v31, %v8963_v53  ;;  %v6257_v31 = vld [vmem:[#allocation5 + $0x40] ss:$16 sps:$4 sm:$0xff]  }
 0xef5   :  { %4100 = vmatprep.subr.bf16.mxu1 %v9013_v38 }
 0xef6   :  { %v5290_v38 = vmul.f32 -1.442695, %v4141_v27 }
 0xef8   :  { %4101 = vmatpush1.bf16.msra.mxu1 %v9014_v34 }
 0xef9   :  { %4102 = vmatprep.subr.bf16.mxu1 %v9015_v6 }
 0xefc   :  { %4103 = vmatpush1.bf16.msra.mxu1 %v9016_v39 }
 0xefd   :  { %4259 = vmatprep.subr.bf16.mxu1 %v6230_v22 }
 0xeff   :  { %4121 = vmatmul.mubr.bf16.vlgmr.msra.gmra.mxu1 %v8276_v35 }
 0xf00   :  { %4260 = vmatpush1.bf16.msra.mxu1 %v6231_v40  ;;  %4291 = vmatprep.mubr.bf16.mxu1 %v8860_v12 }
 0xf01   :  { %4261 = vmatprep.subr.bf16.mxu1 %v6232_v41 }
 0xf04   :  { %4262 = vmatpush1.bf16.msra.mxu1 %v6233_v61 }
 0xf05   :  { %4263 = vmatprep.subr.bf16.mxu1 %v6234_v49 }
 0xf08   :  { %4264 = vmatpush1.bf16.msra.mxu1 %v6235_v0 }
 0xf09   :  { %4265 = vmatprep.subr.bf16.mxu1 %v6236_v9 }
 0xf0c   :  { %4266 = vmatpush1.bf16.msra.mxu1 %v6237_v43 }
 0xf0d   :  { %4267 = vmatprep.subr.bf16.mxu1 %v6238_v54 }
 0xf10   :  { %4268 = vmatpush1.bf16.msra.mxu1 %v6239_v33 }
 0xf11   :  { %4269 = vmatprep.subr.bf16.mxu1 %v6240_v42 }
 0xf14   :  { %4270 = vmatpush1.bf16.msra.mxu1 %v6241_v14 }
 0xf15   :  { %4271 = vmatprep.subr.bf16.mxu1 %v6242_v5 }
 0xf18   :  { %4272 = vmatpush1.bf16.msra.mxu1 %v6243_v18 }
 0xf19   :  { %4273 = vmatprep.subr.bf16.mxu1 %v6244_v63 }
 0xf1c   :  { %4274 = vmatpush1.bf16.msra.mxu1 %v6245_v7  ;;  %v9019_v7 = vld [vmem:[#allocation32_spill] sm:$0xff] }
 0xf1d   :  { %4388 = vmatprep.subr.bf16.mxu1 %v6246_v46  ;;  %v4608_v46 = vsel %vm4596_vm4, %v9019_v7, %v8244_v25 }
 0xf7f   :  { %v3873_v35 = vpop.f32.mrf.mxu1 }
 0xf80   :  { %v3880_v59 = vrot.slane %v3873_v35, 6 }
 0xf81   :  { %v5466_v17 = vpop.f32.mrf.mxu1 }
 0xf82   :  { %v8395_v28 = vadd.f32 %v3880_v59, %v9017_v10 }
 0xf83   :  { %v3876_v19 = vpop.f32.mrf.mxu1 }
 0xf84   :  { %6084 = vtanh.f32 %v8395_v28  ;;  %v6247_v19 = vld [vmem:[#allocation5 + $0xe0] ss:$16 sps:$4 sm:$0xff]  }
 0xf85   :  { %v5467_v45 = vpop.f32.mrf.mxu1  ;;  %6086 = vpow2.f32 %v5287_v2 }
 0xf91   :  { %v6085_v36 = vpop.eup %6084 }
 0xf92   :  { %3895 = vrot.lane.b32.xlu0 %v6085_v36, %s6394_s4  ;;  %v6087_v62 = vpop.eup %6086  ;;  %v6250_v36 = vld [vmem:[#allocation5 + $0xa4] ss:$16 sps:$4 sm:$0xff]  }
 0xf93   :  { %v4025_v50 = vadd.f32 1.0, %v6087_v62 }
 0xf95   :  { %6088 = vrcp.f32 %v4025_v50 }
 0xf9f   :  { %v3993_v26 = vpop.f32.mrf.mxu1 }
 0xfa0   :  { %v4006_v47 = vrot.slane %v3993_v26, 4 }
 0xfa1   :  { %v3995_v29 = vpop.f32.mrf.mxu1 }
 0xfa2   :  { %v4014_v15 = vadd.f32 %v4006_v47, %v8961_v16  ;;  %v4007_v23 = vrot.slane %v3995_v29, 4  ;;  %v6089_v34 = vpop.eup %6088  ;;  %v6251_v47 = vld [vmem:[#allocation5 + $0xa0] ss:$16 sps:$4 sm:$0xff]   ;;  %v6252_v29 = vld [vmem:[#allocation5 + $0x84] ss:$16 sps:$4 sm:$0xff]  }
 0xfa3   :  { %v3997_v52 = vpop.f32.mrf.mxu1 }
 0xfa4   :  { %v5289_v3 = vmul.f32 -1.442695, %v4014_v15  ;;  %v4015_v48 = vadd.f32 %v4007_v23, %v8962_v57  ;;  %v6253_v15 = vld [vmem:[#allocation5 + $0x80] ss:$16 sps:$4 sm:$0xff]   ;;  %v6254_v23 = vld [vmem:[#allocation5 + $0x64] ss:$16 sps:$4 sm:$0xff]  }
 0xfa5   :  { %v3998_v20 = vpop.f32.mrf.mxu1  ;;  %v6255_v52 = vld [vmem:[#allocation5 + $0x60] ss:$16 sps:$4 sm:$0xff]  }
 0xfa6   :  { %6090 = vpow2.f32 %v5289_v3  ;;  %v5286_v3 = vmul.f32 -1.442695, %v8395_v28 }
 0xfa7   :  { %6092 = vtanh.f32 %v4015_v48  ;;  %v6256_v48 = vld [vmem:[#allocation5 + $0x44] ss:$16 sps:$4 sm:$0xff]  }
 0xfa8   :  { %6094 = vpow2.f32 %v5290_v38  ;;  %v6259_v38 = vld [vmem:[#allocation5 + $0x20] ss:$16 sps:$4 sm:$0xff]  }
 0xfb3   :  { %v6091_v6 = vpop.eup %6090 }
 0xfb4   :  { %v6093_v39 = vpop.eup %6092  ;;  %v4027_v22 = vadd.f32 1.0, %v6091_v6 }
 0xfb5   :  { %v4039_v40 = vmul.f32 %v6093_v39, %v6089_v34  ;;  %v6095_v61 = vpop.eup %6094  ;;  %v6260_v34 = vld [vmem:[#allocation5 + $0x4] ss:$16 sps:$4 sm:$0xff]  }
 0xfb6   :  { %6096 = vrcp.f32 %v4027_v22  ;;  %v4154_v0 = vadd.f32 1.0, %v6095_v61  ;;  %v9020_v39 = vld [vmem:[#allocation33_spill] sm:$0xff] }
 0xfb7   :  { %v8406_v41 = vadd.f32 %v4039_v40, %v8299_v13  ;;  %v4609_v22 = vsel %vm4596_vm4, %v9020_v39, %v8271_v56  ;;  %v6261_v61 = vld [vmem:[#allocation5] ss:$16 sps:$4 sm:$0xff]   ;;  %v6269_v39 = vld [vmem:[%s8701_s5 + $0x6c] ss:$16 sps:$4 sm:$0xff]  }
 0xfb9   :  { %6098 = vtanh.f32 %v8406_v41 }
 0xfba   :  { %6100 = vrcp.f32 %v4154_v0 }
 0xfbf   :  { %v4122_v37 = vpop.f32.mrf.mxu1 }
 0xfc0   :  { %v4135_v49 = vrot.slane %v4122_v37, 4 }
 0xfc1   :  { %v4124_v9 = vpop.f32.mrf.mxu1 }
 0xfc2   :  { %v4143_v43 = vadd.f32 %v4135_v49, %v8100_v51  ;;  %v4136_v54 = vrot.slane %v4124_v9, 4 }
 0xfc3   :  { %v4126_v33 = vpop.f32.mrf.mxu1  ;;  %v6097_v5 = vpop.eup %6096 }
 0xfc4   :  { %v5292_v42 = vmul.f32 -1.442695, %v4143_v43  ;;  %v4144_v14 = vadd.f32 %v4136_v54, %v8966_v1  ;;  %v3891_v54 = vrot.slane %v8288_v44, 6 }
 0xfc5   :  { %v4127_v18 = vpop.f32.mrf.mxu1 }
 0xfc6   :  { %v6099_v13 = vpop.eup %6098  ;;  %6102 = vpow2.f32 %v5292_v42 }
 0xfc7   :  { %6104 = vtanh.f32 %v4144_v14  ;;  %v4042_v63 = vmul.f32 %v6099_v13, %v6097_v5  ;;  %v6101_v45 = vpop.eup %6100 }
 0xfc9   :  { %v4255_v35 = vpack.c.bf16 %v4042_v63, %v4042_v63  ;;  %v8415_v59 = vsel %vm4600_vm5, %v4608_v46, %v4042_v63 }
 0xfcb   :  { %v8417_v17 = vrot.slane %v4255_v35, 2 }
 0xfcd   :  { %4292 = vmatmul.mubr.bf16.vlgmr.msra.gmra.mxu1 %v8417_v17 }
 0xfce   :  { %4389 = vmatpush1.bf16.msra.mxu1 %v6247_v19  ;;  %4420 = vmatprep.mubr.bf16.mxu1 %v8860_v12 }
 0xfcf   :  { %4390 = vmatprep.subr.bf16.mxu1 %v6248_v30 }
 0xfd2   :  { %4391 = vmatpush1.bf16.msra.mxu1 %v6249_v32 }
 0xfd3   :  { %v6103_v2 = vpop.eup %6102  ;;  %4392 = vmatprep.subr.bf16.mxu1 %v6250_v36 }
 0xfd4   :  { %v6105_v25 = vpop.eup %6104  ;;  %v4156_v62 = vadd.f32 1.0, %v6103_v2  ;;  %v4377_v2 = vrot.slane %v8406_v41, 6 }
 0xfd5   :  { %v4168_v26 = vmul.f32 %v6105_v25, %v6101_v45 }
 0xfd6   :  { %4393 = vmatpush1.bf16.msra.mxu1 %v6251_v47  ;;  %6106 = vrcp.f32 %v4156_v62 }
 0xfd7   :  { %v8422_v50 = vadd.f32 %v4168_v26, %v8302_v21  ;;  %4394 = vmatprep.subr.bf16.mxu1 %v6252_v29  ;;  %v6258_v21 = vld [vmem:[#allocation5 + $0x24] ss:$16 sps:$4 sm:$0xff]  }
 0xfd9   :  { %6108 = vtanh.f32 %v8422_v50 }
 0xfda   :  { %4395 = vmatpush1.bf16.msra.mxu1 %v6253_v15  ;;  %6110 = vpow2.f32 %v5286_v3  ;;  %v4506_v15 = vrot.slane %v8422_v50, 6  ;;  %v6263_v50 = vld [vmem:[%s8701_s5 + $0xcc] ss:$16 sps:$4 sm:$0xff]  }
 0xfdb   :  { %4396 = vmatprep.subr.bf16.mxu1 %v6254_v23 }
 0xfde   :  { %4397 = vmatpush1.bf16.msra.mxu1 %v6255_v52 }
 0xfdf   :  { %4398 = vmatprep.subr.bf16.mxu1 %v6256_v48 }
 0xfe2   :  { %4399 = vmatpush1.bf16.msra.mxu1 %v6257_v31 }
 0xfe3   :  { %4400 = vmatprep.subr.bf16.mxu1 %v6258_v21  ;;  %v6107_v20 = vpop.eup %6106  ;;  %v6262_v21 = vld [vmem:[%s8701_s5 + $0xe8] ss:$16 sps:$4 sm:$0xff]  }
 0xfe6   :  { %v6109_v27 = vpop.eup %6108  ;;  %4401 = vmatpush1.bf16.msra.mxu1 %v6259_v38  ;;  %v6266_v38 = vld [vmem:[%s8701_s5 + $0xa8] ss:$16 sps:$4 sm:$0xff]  }
 0xfe7   :  { %4402 = vmatprep.subr.bf16.mxu1 %v6260_v34  ;;  %v4171_v6 = vmul.f32 %v6109_v27, %v6107_v20  ;;  %v6111_v56 = vpop.eup %6110  ;;  %v6264_v20 = vld [vmem:[%s8701_s5 + $0xc8] ss:$16 sps:$4 sm:$0xff]   ;;  %v6265_v27 = vld [vmem:[%s8701_s5 + $0xac] ss:$16 sps:$4 sm:$0xff]  }
 0xfe8   :  { %v3886_v49 = vadd.f32 1.0, %v6111_v56  ;;  %v6267_v34 = vld [vmem:[%s8701_s5 + $0x8c] ss:$16 sps:$4 sm:$0xff]  }
 0xfe9   :  { %v4384_v40 = vpack.c.bf16 %v4171_v6, %v4171_v6  ;;  %v8430_v28 = vsel %vm4600_vm5, %v4609_v22, %v4171_v6  ;;  %v6268_v6 = vld [vmem:[%s8701_s5 + $0x88] ss:$16 sps:$4 sm:$0xff]   ;;  %v6273_v56 = vld [vmem:[%s8701_s5 + $0x2c] ss:$16 sps:$4 sm:$0xff]  }
 0xfea   :  { %4403 = vmatpush1.bf16.msra.mxu1 %v6261_v61  ;;  %6112 = vrcp.f32 %v3886_v49  ;;  %v6270_v22 = vld [vmem:[%s8701_s5 + $0x68] ss:$16 sps:$4 sm:$0xff]  }
 0xfeb   :  { %v8432_v37 = vrot.slane %v4384_v40, 2  ;;  %5476 = vmatprep.subr.bf16.mxu1 %v9004_v24  ;;  %v6271_v40 = vld [vmem:[%s8701_s5 + $0x4c] ss:$16 sps:$4 sm:$0xff]   ;;  %v6272_v61 = vld [vmem:[%s8701_s5 + $0x48] ss:$16 sps:$4 sm:$0xff]  }
 0xfec   :  { %v6274_v49 = vld [vmem:[%s8701_s5 + $0x28] ss:$16 sps:$4 sm:$0xff]  }
 0xfed   :  { %4421 = vmatmul.mubr.bf16.vlgmr.msra.gmra.mxu1 %v8432_v37 }
 0xfee   :  { %5477 = vmatpush3.bf16.msra.mxu1 %v9005_v4  ;;  %5480 = vmatprep.mubr.msk.bf16.mxu1 %vm6393_vm3, %v9004_v24 }
 0xfef   :  { %5478 = vmatprep.subr.bf16.mxu1 %v9004_v24 }
 0xff2   :  { %5479 = vmatpush3.bf16.msra.mxu1 %v9006_v58 }
 0xff7   :  { %v6113_v0 = vpop.eup %6112 }
 0xff8   :  { %v3893_v33 = vmul.f32 %v6113_v0, %v3891_v54  ;;  %v6278_v54 = vld [vmem:[#allocation5 + $0xe8] ss:$16 sps:$4 sm:$0xff]  }
0x1004   :  { %v3896_v9 = vpop.permute.xlu0 %3895 }
0x1005   :  { %v3898_v43 = vmul.f32 %v6113_v0, %v3896_v9  ;;  %v6276_v9 = vld [vmem:[%s8701_s5 + $0x8] ss:$16 sps:$4 sm:$0xff]  }
0x1007   :  { %3900 = vrot.lane.b32.xlu1 %v3898_v43, %s6394_s4  ;;  %v6277_v43 = vld [vmem:[#allocation5 + $0xec] ss:$16 sps:$4 sm:$0xff]  }
0x1079   :  { %v3901_v42 = vpop.permute.xlu1 %3900 }
0x107a   :  { %v8443_v4 = vadd.f32 %v3901_v42, %v3893_v33  ;;  %v6279_v33 = vld [vmem:[#allocation5 + $0xcc] ss:$16 sps:$4 sm:$0xff]   ;;  %v6280_v42 = vld [vmem:[#allocation5 + $0xc8] ss:$16 sps:$4 sm:$0xff]  }
0x107c   :  { %6114 = vtanh.f32 %v8443_v4 }
0x1089   :  { %v6115_v14 = vpop.eup %6114 }
0x108a   :  { %3906 = vrot.lane.b32.xlu0 %v6115_v14, %s6394_s4  ;;  %v6281_v14 = vld [vmem:[#allocation5 + $0xac] ss:$16 sps:$4 sm:$0xff]  }
0x108d   :  { %v8447_v5 = vpop.f32.mrf.mxu1 }
0x108f   :  { %v4295_v58 = vpop.f32.mrf.mxu1 }
0x1090   :  { %v4346_v18 = vrot.slane %v4295_v58, 2  ;;  %v6282_v58 = vld [vmem:[#allocation5 + $0xa8] ss:$16 sps:$4 sm:$0xff]  }
0x1091   :  { %v4297_v13 = vpop.f32.mrf.mxu1 }
0x1092   :  { %v4354_v63 = vadd.f32 %v4346_v18, %v8940_v55  ;;  %v6283_v18 = vld [vmem:[#allocation5 + $0x8c] ss:$16 sps:$4 sm:$0xff]   ;;  %v6284_v13 = vld [vmem:[#allocation5 + $0x88] ss:$16 sps:$4 sm:$0xff]  }
0x1093   :  { %v4298_v7 = vpop.f32.mrf.mxu1 }
0x1094   :  { %v5296_v46 = vmul.f32 -1.442695, %v4354_v63  ;;  %v6285_v63 = vld [vmem:[#allocation5 + $0x6c] ss:$16 sps:$4 sm:$0xff]   ;;  %v6286_v7 = vld [vmem:[#allocation5 + $0x68] ss:$16 sps:$4 sm:$0xff]  }
0x1096   :  { %6116 = vpow2.f32 %v5296_v46  ;;  %v6288_v46 = vld [vmem:[#allocation5 + $0x48] ss:$16 sps:$4 sm:$0xff]  }
0x10a3   :  { %v6117_v44 = vpop.eup %6116 }
0x10a4   :  { %v4367_v35 = vadd.f32 1.0, %v6117_v44  ;;  %v6290_v44 = vld [vmem:[#allocation5 + $0x28] ss:$16 sps:$4 sm:$0xff]  }
0x10a6   :  { %6118 = vrcp.f32 %v4367_v35  ;;  %v6291_v35 = vld [vmem:[#allocation5 + $0xc] ss:$16 sps:$4 sm:$0xff]  }
0x10ad   :  { %v8450_v19 = vpop.f32.mrf.mxu1 }
0x10af   :  { %v4424_v30 = vpop.f32.mrf.mxu1 }
0x10b0   :  { %v4475_v45 = vrot.slane %v4424_v30, 2  ;;  %v6292_v30 = vld [vmem:[#allocation5 + $0x8] ss:$16 sps:$4 sm:$0xff]  }
0x10b1   :  { %v4426_v32 = vpop.f32.mrf.mxu1 }
0x10b2   :  { %v4483_v36 = vadd.f32 %v4475_v45, %v8941_v8 }
0x10b3   :  { %v6119_v25 = vpop.eup %6118  ;;  %v4427_v62 = vpop.f32.mrf.mxu1 }
0x10b4   :  { %v5299_v26 = vmul.f32 -1.442695, %v4483_v36  ;;  %v8454_v47 = vmul.f32 %v6119_v25, %v4377_v2  ;;  %v4345_v62 = vrot.slane %v8447_v5, 2 }
0x10b6   :  { %6120 = vpow2.f32 %v5299_v26 }
0x10c3   :  { %v6121_v55 = vpop.eup %6120 }
0x10c4   :  { %v4496_v29 = vadd.f32 1.0, %v6121_v55  ;;  %v4353_v55 = vadd.f32 %v4345_v62, %v9018_v11  ;;  %v4474_v11 = vrot.slane %v8450_v19, 2 }
0x10c6   :  { %6122 = vrcp.f32 %v4496_v29  ;;  %v5295_v29 = vmul.f32 -1.442695, %v4353_v55 }
0x10d3   :  { %v6123_v23 = vpop.eup %6122 }
0x10d4   :  { %v8457_v52 = vmul.f32 %v6123_v23, %v4506_v15 }
0x10fc   :  { %v3907_v3 = vpop.permute.xlu0 %3906 }
0x10fd   :  { %v8459_v48 = vmul.f32 %v6113_v0, %v3907_v3  ;;  %v6275_v0 = vld [vmem:[%s8701_s5 + $0xc] ss:$16 sps:$4 sm:$0xff]  }
0x10ff   :  { %v4172_v8 = vpack.c.bf16 %v8459_v48, %v8459_v48 }
0x1101   :  { %v4174_v41 = vrot.slane %v4172_v8, 1 }
0x1103   :  { %4175 = vrot.lane.b32.xlu1 %v4174_v41, %s6386_s19 }
0x1175   :  { %v4176_v31 = vpop.permute.xlu1 %4175 }
0x1176   :  { %5473 = vmatmul.mubr.msk.bf16.vlgmr.msra.gmra.mxu0 %vm1364_vm2, %v4176_v31 }
0x1177   :  { %4301 = vmatpush1.bf16.msra.mxu0 %v6262_v21  ;;  %4332 = vmatprep.mubr.bf16.mxu0 %v8860_v12 }
0x1178   :  { %4302 = vmatprep.subr.bf16.mxu0 %v6263_v50 }
0x117b   :  { %4303 = vmatpush1.bf16.msra.mxu0 %v6264_v20 }
0x117c   :  { %4304 = vmatprep.subr.bf16.mxu0 %v6265_v27 }
0x117f   :  { %4305 = vmatpush1.bf16.msra.mxu0 %v6266_v38  ;;  %v4482_v38 = vadd.f32 %v4474_v11, %v8963_v53 }
0x1180   :  { %4306 = vmatprep.subr.bf16.mxu0 %v6267_v34 }
0x1181   :  { %v5298_v34 = vmul.f32 -1.442695, %v4482_v38 }
0x1183   :  { %4307 = vmatpush1.bf16.msra.mxu0 %v6268_v6 }
0x1184   :  { %4308 = vmatprep.subr.bf16.mxu0 %v6269_v39 }
0x1187   :  { %4309 = vmatpush1.bf16.msra.mxu0 %v6270_v22 }
0x1188   :  { %4310 = vmatprep.subr.bf16.mxu0 %v6271_v40 }
0x118b   :  { %4311 = vmatpush1.bf16.msra.mxu0 %v6272_v61 }
0x118c   :  { %4312 = vmatprep.subr.bf16.mxu0 %v6273_v56 }
0x118f   :  { %4313 = vmatpush1.bf16.msra.mxu0 %v6274_v49 }
0x1190   :  { %4314 = vmatprep.subr.bf16.mxu0 %v6275_v0 }
0x1193   :  { %4315 = vmatpush1.bf16.msra.mxu0 %v6276_v9 }
0x1194   :  { %4429 = vmatprep.subr.bf16.mxu0 %v6277_v43 }
0x1196   :  { %4333 = vmatmul.mubr.bf16.vlgmr.msra.gmra.mxu0 %v8417_v17  ;;  %v6287_v17 = vld [vmem:[#allocation5 + $0x4c] ss:$16 sps:$4 sm:$0xff]  }
0x1197   :  { %4430 = vmatpush1.bf16.msra.mxu0 %v6278_v54  ;;  %4461 = vmatprep.mubr.bf16.mxu0 %v8860_v12  ;;  %v6289_v12 = vld [vmem:[#allocation5 + $0x2c] ss:$16 sps:$4 sm:$0xff]  }
0x1198   :  { %4431 = vmatprep.subr.bf16.mxu0 %v6279_v33 }
0x119b   :  { %4432 = vmatpush1.bf16.msra.mxu0 %v6280_v42 }
0x119c   :  { %4433 = vmatprep.subr.bf16.mxu0 %v6281_v14 }
0x119f   :  { %4434 = vmatpush1.bf16.msra.mxu0 %v6282_v58 }
0x11a0   :  { %4435 = vmatprep.subr.bf16.mxu0 %v6283_v18 }
0x11a3   :  { %4436 = vmatpush1.bf16.msra.mxu0 %v6284_v13 }
0x11a4   :  { %4437 = vmatprep.subr.bf16.mxu0 %v6285_v63 }
0x11a7   :  { %4438 = vmatpush1.bf16.msra.mxu0 %v6286_v7 }
0x11a8   :  { %4439 = vmatprep.subr.bf16.mxu0 %v6287_v17 }
0x11ab   :  { %4440 = vmatpush1.bf16.msra.mxu0 %v6288_v46 }
0x11ac   :  { %4441 = vmatprep.subr.bf16.mxu0 %v6289_v12 }
0x11af   :  { %4442 = vmatpush1.bf16.msra.mxu0 %v6290_v44 }
0x11b0   :  { %4443 = vmatprep.subr.bf16.mxu0 %v6291_v35 }
0x11b3   :  { %4444 = vmatpush1.bf16.msra.mxu0 %v6292_v30 }
0x11b6   :  { %4462 = vmatmul.mubr.bf16.vlgmr.msra.gmra.mxu0 %v8432_v37 }
0x11b7   :  { %4702 = vmatprep.mubr.f32.mxu0 %v9004_v24 }
0x1236   :  { %v4214_v45 = vpop.f32.mrf.mxu0 }
0x1237   :  { %v4221_v32 = vrot.slane %v4214_v45, 4  ;;  %v9022_v45 = vld [vmem:[#allocation40_spill] sm:$0xff] }
0x1238   :  { %v5474_v2 = vpop.f32.mrf.mxu0 }
0x1239   :  { %v4223_v36 = vadd.f32 %v4221_v32, %v9017_v10 }
0x123a   :  { %v4217_v25 = vpop.f32.mrf.mxu0 }
0x123b   :  { %6124 = vtanh.f32 %v4223_v36 }
0x123c   :  { %v5475_v26 = vpop.f32.mrf.mxu0  ;;  %6126 = vpow2.f32 %v5295_v29 }
0x1248   :  { %v6125_v15 = vpop.eup %6124 }
0x1249   :  { %4236 = vrot.lane.b32.xlu0 %v6125_v15, %s6394_s4  ;;  %v6127_v37 = vpop.eup %6126 }
0x124a   :  { %v4366_v8 = vadd.f32 1.0, %v6127_v37 }
0x124c   :  { %6128 = vrcp.f32 %v4366_v8 }
0x1256   :  { %v4334_v23 = vpop.f32.mrf.mxu0 }
0x1257   :  { %v4347_v3 = vrot.slane %v4334_v23, 2 }
0x1258   :  { %v4336_v41 = vpop.f32.mrf.mxu0 }
0x1259   :  { %v4355_v31 = vadd.f32 %v4347_v3, %v8961_v16  ;;  %v4348_v21 = vrot.slane %v4336_v41, 2  ;;  %v6129_v6 = vpop.eup %6128 }
0x125a   :  { %v4338_v50 = vpop.f32.mrf.mxu0 }
0x125b   :  { %v5297_v20 = vmul.f32 -1.442695, %v4355_v31  ;;  %v4356_v5 = vadd.f32 %v4348_v21, %v8962_v57 }
0x125c   :  { %v4339_v27 = vpop.f32.mrf.mxu0 }
0x125d   :  { %6130 = vpow2.f32 %v5297_v20 }
0x125e   :  { %6132 = vtanh.f32 %v4356_v5 }
0x125f   :  { %6134 = vpow2.f32 %v5298_v34 }
0x126a   :  { %v6131_v39 = vpop.eup %6130 }
0x126b   :  { %v6133_v22 = vpop.eup %6132  ;;  %v4368_v40 = vadd.f32 1.0, %v6131_v39 }
0x126c   :  { %v4380_v16 = vmul.f32 %v6133_v22, %v6129_v6  ;;  %v6135_v57 = vpop.eup %6134  ;;  %v9024_v22 = vld [vmem:[#allocation44_spill] sm:$0xff] }
0x126d   :  { %6136 = vrcp.f32 %v4368_v40  ;;  %v4495_v19 = vadd.f32 1.0, %v6135_v57 }
0x126e   :  { %v4381_v61 = vadd.f32 %v4380_v16, %v8454_v47 }
0x1270   :  { %6138 = vtanh.f32 %v4381_v61 }
0x1271   :  { %6140 = vrcp.f32 %v4495_v19  ;;  %v8556_v19 = vld [vmem:[#allocation8 + $0x8] sm:$0x3] }
0x1276   :  { %v4463_v56 = vpop.f32.mrf.mxu0 }
0x1277   :  { %v4476_v49 = vrot.slane %v4463_v56, 2  ;;  %v4617_v56 = vld [vmem:[#allocation8] sm:$0xff] }
0x1278   :  { %v4465_v0 = vpop.f32.mrf.mxu0 }
0x1279   :  { %v4484_v9 = vadd.f32 %v4476_v49, %v8100_v51  ;;  %v4477_v43 = vrot.slane %v4465_v0, 2  ;;  %v9025_v49 = vld [vmem:[#allocation13_spill] sm:$0xff] }
0x127a   :  { %v4467_v53 = vpop.f32.mrf.mxu0  ;;  %v6137_v42 = vpop.eup %6136  ;;  %v4619_v0 = vld [vmem:[%s8705_s9] sm:$0xff] }
0x127b   :  { %v5300_v54 = vmul.f32 -1.442695, %v4484_v9  ;;  %v4485_v33 = vadd.f32 %v4477_v43, %v8966_v1  ;;  %v5294_v1 = vmul.f32 -1.442695, %v4223_v36  ;;  %v4232_v36 = vrot.slane %v8443_v4, 6  ;;  %v4826_v9 = vld [vmem:[%s8706_s10 + $0xf0] sm:$0xff] }
0x127c   :  { %v4468_v14 = vpop.f32.mrf.mxu0  ;;  %v4810_v43 = vld [vmem:[%s8706_s10 + $0x70] sm:$0xff]  ;;  %v4825_v53 = vld [vmem:[%s8706_s10 + $0xe8] sm:$0xff] }
0x127d   :  { %v6139_v58 = vpop.eup %6138  ;;  %6142 = vpow2.f32 %v5300_v54  ;;  %v4824_v14 = vld [vmem:[%s8706_s10 + $0xe0] sm:$0xff] }
0x127e   :  { %6144 = vtanh.f32 %v4485_v33  ;;  %v4383_v47 = vmul.f32 %v6139_v58, %v6137_v42  ;;  %v6141_v13 = vpop.eup %6140  ;;  %v4809_v33 = vld [vmem:[%s8706_s10 + $0x68] sm:$0xff]  ;;  %v4808_v58 = vld [vmem:[%s8706_s10 + $0x60] sm:$0xff] }
0x1280   :  { %v4614_v18 = vsel %vm4604_vm6, %v8415_v59, %v4383_v47  ;;  %v9021_v59 = vld [vmem:[#allocation42_spill] sm:$0xff]  ;;  %v4823_v47 = vld [vmem:[%s8706_s10 + $0xd8] sm:$0xff] }
0x128a   :  { %v6143_v63 = vpop.eup %6142 }
0x128b   :  { %v6145_v7 = vpop.eup %6144  ;;  %v4497_v17 = vadd.f32 1.0, %v6143_v63  ;;  %v4806_v63 = vld [vmem:[%s8706_s10 + $0x50] sm:$0xff] }
0x128c   :  { %v4509_v51 = vmul.f32 %v6145_v7, %v6141_v13  ;;  %v4822_v13 = vld [vmem:[%s8706_s10 + $0xd0] sm:$0xff]  ;;  %v9026_v7 = vld [vmem:[#allocation56_spill] sm:$0xff] }
0x128d   :  { %6146 = vrcp.f32 %v4497_v17  ;;  %v4821_v17 = vld [vmem:[%s8706_s10 + $0xc8] sm:$0xff] }
0x128e   :  { %v4510_v46 = vadd.f32 %v4509_v51, %v8457_v52  ;;  %v4620_v51 = vld [vmem:[%s8705_s9 + $0x8] sm:$0x3] }
0x1290   :  { %6148 = vtanh.f32 %v4510_v46  ;;  %v4805_v46 = vld [vmem:[%s8706_s10 + $0x48] sm:$0xff] }
0x1291   :  { %6150 = vpow2.f32 %v5294_v1  ;;  %v4820_v1 = vld [vmem:[%s8706_s10 + $0xc0] sm:$0xff] }
0x129a   :  { %v6147_v12 = vpop.eup %6146 }
0x129d   :  { %v6149_v44 = vpop.eup %6148 }
0x129e   :  { %v4512_v35 = vmul.f32 %v6149_v44, %v6147_v12  ;;  %v6151_v32 = vpop.eup %6150  ;;  %v4804_v12 = vld [vmem:[%s8706_s10 + $0x40] sm:$0xff]  ;;  %v4819_v44 = vld [vmem:[%s8706_s10 + $0xb8] sm:$0xff] }
0x129f   :  { %v4227_v2 = vadd.f32 1.0, %v6151_v32  ;;  %v4801_v32 = vld [vmem:[%s8706_s10 + $0x28] sm:$0xff] }
0x12a0   :  { %v4615_v30 = vsel %vm4604_vm6, %v8430_v28, %v4512_v35  ;;  %v4803_v35 = vld [vmem:[%s8706_s10 + $0x38] sm:$0xff] }
0x12a1   :  { %4666 = vmatprep.subr.mxu0 %v4615_v30  ;;  %6152 = vrcp.f32 %v4227_v2  ;;  %v4818_v30 = vld [vmem:[%s8706_s10 + $0xb0] sm:$0xff]  ;;  %v4816_v2 = vld [vmem:[%s8706_s10 + $0xa0] sm:$0xff] }
0x12a2   :  { %4667 = vmatpush1.msra.mxu0 %v4614_v18  ;;  %v4807_v18 = vld [vmem:[%s8706_s10 + $0x58] sm:$0xff] }
0x12a3   :  { %4668 = vmatprep.subr.mxu0 %v9021_v59  ;;  %v4802_v59 = vld [vmem:[%s8706_s10 + $0x30] sm:$0xff] }
0x12a4   :  { %4669 = vmatpush1.msra.mxu0 %v9022_v45  ;;  %v4817_v45 = vld [vmem:[%s8706_s10 + $0xa8] sm:$0xff] }
0x12a5   :  { %5303 = vmatmul.mubr.msk.f32.vlgmr.msra.gmra.mxu0 %vm4631_vm7, %v4617_v56 }
0x12a6   :  { %4708 = vmatprep.mubr.f32.mxu0 %v9004_v24  ;;  %v4827_v24 = vld [vmem:[%s8706_s10 + $0xf8] sm:$0xff] }
0x12a7   :  { %5365 = vmatprep.subr.mxu0 %v4827_v24 }
0x12a9   :  { %5304 = vmatmul.mubr.msk.f32.gmra.mxu0 %vm4631_vm7, %v8556_v19 }
0x12ae   :  { %v6153_v52 = vpop.eup %6152 }
0x12af   :  { %v4234_v26 = vmul.f32 %v6153_v52, %v4232_v36  ;;  %v4814_v36 = vld [vmem:[%s8706_s10 + $0x90] sm:$0xff] }
0x12bb   :  { %v4237_v25 = vpop.permute.xlu0 %4236 }
0x12bc   :  { %v4239_v62 = vmul.f32 %v6153_v52, %v4237_v25  ;;  %v4815_v25 = vld [vmem:[%s8706_s10 + $0x98] sm:$0xff] }
0x12be   :  { %4241 = vrot.lane.b32.xlu1 %v4239_v62, %s6394_s4  ;;  %v4799_v62 = vld [vmem:[%s8706_s10 + $0x18] sm:$0xff] }
0x1330   :  { %v4242_v55 = vpop.permute.xlu1 %4241 }
0x1331   :  { %v4244_v29 = vadd.f32 %v4242_v55, %v4234_v26  ;;  %v4798_v26 = vld [vmem:[%s8706_s10 + $0x10] sm:$0xff]  ;;  %v4813_v55 = vld [vmem:[%s8706_s10 + $0x88] sm:$0xff] }
0x1333   :  { %6154 = vtanh.f32 %v4244_v29  ;;  %v4573_v40 = vrot.slane %v4244_v29, 6  ;;  %v4797_v29 = vld [vmem:[%s8706_s10 + $0x8] sm:$0xff] }
0x1340   :  { %v6155_v28 = vpop.eup %6154 }
0x1341   :  { %4247 = vrot.lane.b32.xlu0 %v6155_v28, %s6394_s4  ;;  %v4812_v28 = vld [vmem:[%s8706_s10 + $0x80] sm:$0xff] }
0x13b3   :  { %v4248_v15 = vpop.permute.xlu0 %4247 }
0x13b4   :  { %v4250_v37 = vmul.f32 %v6153_v52, %v4248_v15  ;;  %v4800_v52 = vld [vmem:[%s8706_s10 + $0x20] sm:$0xff] }
0x13b5   :  { %v4796_v15 = vld [vmem:[%s8706_s10] sm:$0xff] }
0x13b6   :  { %v4513_v23 = vpack.c.bf16 %v4250_v37, %v4250_v37 }
0x13b8   :  { %v4515_v3 = vrot.slane %v4513_v23, 2 }
0x13ba   :  { %4516 = vrot.lane.b32.xlu1 %v4515_v3, %s6386_s19 }
0x142c   :  { %v4517_v8 = vpop.permute.xlu1 %4516 }
0x142d   :  { %5481 = vmatmul.mubr.msk.bf16.vlgmr.msra.gmra.mxu1 %vm1364_vm2, %v4517_v8 }
0x142e   :  { %5488 = vmatprep.mubr.msk.f32.mxu1 %vm4631_vm7, %v4617_v56 }
0x14ed   :  { %v4555_v41 = vpop.f32.mrf.mxu1 }
0x14ee   :  { %v4562_v31 = vrot.slane %v4555_v41, 2 }
0x14ef   :  { %v5482_v21 = vpop.f32.mrf.mxu1 }
0x14f0   :  { %v4564_v4 = vadd.f32 %v4562_v31, %v9017_v10  ;;  %v9023_v10 = vld [vmem:[#allocation38_spill] sm:$0xff]  ;;  %v4704_v21 = vpop.f32.mrf.mxu0 }
0x14f1   :  { %v4558_v50 = vpop.f32.mrf.mxu1 }
0x14f2   :  { %6156 = vtanh.f32 %v4564_v4  ;;  %v5302_v11 = vmul.f32 -1.442695, %v4564_v4 }
0x14f3   :  { %v5483_v20 = vpop.f32.mrf.mxu1 }
0x14f4   :  { %6158 = vpow2.f32 %v5302_v11 }
0x14ff   :  { %v6157_v5 = vpop.eup %6156 }
0x1500   :  { %4577 = vrot.lane.b32.xlu0 %v6157_v5, %s6394_s4 }
0x1501   :  { %v6159_v27 = vpop.eup %6158 }
0x1502   :  { %v4568_v38 = vadd.f32 1.0, %v6159_v27  ;;  %v4706_v27 = vpop.f32.mrf.mxu0 }
0x1504   :  { %6160 = vrcp.f32 %v4568_v38 }
0x1511   :  { %v6161_v34 = vpop.eup %6160 }
0x1512   :  { %v4575_v16 = vmul.f32 %v6161_v34, %v4573_v40 }
0x1572   :  { %v4578_v6 = vpop.permute.xlu0 %4577 }
0x1573   :  { %v4580_v39 = vmul.f32 %v6161_v34, %v4578_v6 }
0x1575   :  { %4582 = vrot.lane.b32.xlu1 %v4580_v39, %s6394_s4 }
0x1579   :  { %3577 = vrot.lane.b32.xlu1 %v8304_v60, %s6386_s19 }
0x157d   :  { %4252 = vrot.lane.b32.xlu1 %v4250_v37, %s6386_s19 }
0x1581   :  { %2581 = vrot.lane.b32.xlu1 %v9023_v10, %s6386_s19 }
0x1585   :  { %2922 = vrot.lane.b32.xlu1 %v9024_v22, %s6386_s19 }
0x1589   :  { %4623 = vperm.xlu1 %5518, %v4619_v0  }
0x15e7   :  { %v4583_v61 = vpop.permute.xlu1 %4582 }
0x15e8   :  { %v4585_v57 = vadd.f32 %v4583_v61, %v4575_v16 }
0x15ea   :  { %6162 = vtanh.f32 %v4585_v57  ;;  %v4710_v57 = vpop.f32.mrf.mxu0 }
0x15eb   :  { %v3578_v37 = vpop.permute.xlu1 %3577 }
0x15ef   :  { %v4253_v23 = vpop.permute.xlu1 %4252 }
0x15f3   :  { %v2582_v8 = vpop.permute.xlu1 %2581 }
0x15f7   :  { %v6163_v60 = vpop.eup %6162  ;;  %v2923_v4 = vpop.permute.xlu1 %2922 }
0x15f8   :  { %4588 = vrot.lane.b32.xlu0 %v6163_v60, %s6394_s4  ;;  %v4712_v60 = vpop.f32.mrf.mxu0 }
0x15fc   :  { %3911 = vrot.lane.b32.xlu0 %v8459_v48, %s6386_s19  ;;  %v4811_v48 = vld [vmem:[%s8706_s10 + $0x78] sm:$0xff] }
0x15fd   :  { %5366 = vmatpush3.msra.mxu0 %v4811_v48  ;;  %v4831_v48 = vld [vmem:[%s8706_s10 + $0x118] sm:$0xff] }
0x15fe   :  { %5367 = vmatprep.subr.mxu0 %v4826_v9  ;;  %v4829_v9 = vld [vmem:[%s8706_s10 + $0x108] sm:$0xff] }
0x15ff   :  { %5368 = vmatpush3.msra.mxu0 %v4810_v43  ;;  %v4828_v43 = vld [vmem:[%s8706_s10 + $0x100] sm:$0xff] }
0x1600   :  { %1913 = vrot.lane.b32.xlu0 %v9025_v49, %s6386_s19  ;;  %5369 = vmatprep.subr.mxu0 %v4825_v53 }
0x1601   :  { %5370 = vmatpush3.msra.mxu0 %v4809_v33 }
0x1602   :  { %5371 = vmatprep.subr.mxu0 %v4824_v14 }
0x1603   :  { %5372 = vmatpush3.msra.mxu0 %v4808_v58 }
0x1604   :  { %5373 = vmatprep.subr.mxu0 %v4823_v47  ;;  %v4624_v6 = vpop.permute.xlu1 %4623 }
0x1605   :  { %5374 = vmatpush3.msra.mxu0 %v4807_v18  ;;  %v4705_v10 = vadd.f32 %v4704_v21, %v4624_v6  ;;  %v4707_v22 = vadd.f32 %v4706_v27, %v4624_v6 }
0x1606   :  { %5375 = vmatprep.subr.mxu0 %v4822_v13 }
0x1607   :  { %5376 = vmatpush3.msra.mxu0 %v4806_v63  ;;  %v4790_v40 = vmax.f32 %v4705_v10, 0.0  ;;  %v4791_v16 = vmax.f32 %v4707_v22, 0.0 }
0x1608   :  { %5377 = vmatprep.subr.mxu0 %v4821_v17 }
0x1609   :  { %5378 = vmatpush3.msra.mxu0 %v4805_v46  ;;  %4904 = vmatprep.mubr.f32.mxu0 %v4791_v16 }
0x160a   :  { %5379 = vmatprep.subr.mxu0 %v4820_v1 }
0x160b   :  { %5380 = vmatpush3.msra.mxu0 %v4804_v12 }
0x160c   :  { %5381 = vmatprep.subr.mxu0 %v4819_v44 }
0x160d   :  { %5382 = vmatpush3.msra.mxu0 %v4803_v35 }
0x160e   :  { %5383 = vmatprep.subr.mxu0 %v4818_v30 }
0x160f   :  { %5384 = vmatpush3.msra.mxu0 %v4802_v59 }
0x1610   :  { %5385 = vmatprep.subr.mxu0 %v4817_v45 }
0x1611   :  { %5386 = vmatpush3.msra.mxu0 %v4801_v32 }
0x1612   :  { %5387 = vmatprep.subr.mxu0 %v4816_v2 }
0x1613   :  { %5388 = vmatpush3.msra.mxu0 %v4800_v52 }
0x1614   :  { %5389 = vmatprep.subr.mxu0 %v4815_v25 }
0x1615   :  { %5390 = vmatpush3.msra.mxu0 %v4799_v62 }
0x1616   :  { %5391 = vmatprep.subr.mxu0 %v4814_v36 }
0x1617   :  { %5392 = vmatpush3.msra.mxu0 %v4798_v26 }
0x1618   :  { %5393 = vmatprep.subr.mxu0 %v4813_v55 }
0x1619   :  { %5394 = vmatpush3.msra.mxu0 %v4797_v29 }
0x161a   :  { %5395 = vmatprep.subr.mxu0 %v4812_v28 }
0x161b   :  { %5396 = vmatpush3.msra.mxu0 %v4796_v15 }
0x161c   :  { %4905 = vmatmul.mubr.f32.vlgmr.msra.gmra.mxu0 %v4790_v40 }
0x166a   :  { %v4589_v54 = vpop.permute.xlu0 %4588 }
0x166b   :  { %v4591_v42 = vmul.f32 %v6161_v34, %v4589_v54 }
0x166d   :  { %4593 = vrot.lane.b32.xlu0 %v4591_v42, %s6386_s19 }
0x166e   :  { %v3912_v3 = vpop.permute.xlu0 %3911 }
0x166f   :  { %v4610_v31 = vsel %vm4596_vm4, %v3578_v37, %v3912_v3 }
0x1670   :  { %v4613_v20 = vsel %vm4600_vm5, %v4610_v31, %v4253_v23 }
0x1671   :  { %3263 = vrot.lane.b32.xlu0 %v9026_v7, %s6386_s19 }
0x1672   :  { %v1914_v41 = vpop.permute.xlu0 %1913 }
0x1673   :  { %v4599_v5 = vsel %vm4596_vm4, %v1914_v41, %v2582_v8 }
0x1674   :  { %v4603_v34 = vsel %vm4600_vm5, %v4599_v5, %v2923_v4 }
0x1675   :  { %4628 = vperm.xlu0 %5519, %v4620_v51   ;;  %v4833_v51 = vstv %s8707_s11 }
0x16dc   :  { %v5397_v47 = vpop.f32.mrf.mxu0 }
0x16de   :  { %v5398_v18 = vpop.f32.mrf.mxu0 }
0x16df   :  { %v4594_v50 = vpop.permute.xlu0 %4593  ;;  %v5399_v17 = vadd.f32 %v5398_v18, %v5397_v47 }
0x16e0   :  { %v4616_v11 = vsel %vm4604_vm6, %v4613_v20, %v4594_v50 }
0x16e1   :  { %5484 = vmatprep.subr.mxu1 %v4616_v11  ;;  %v4907_v44 = vadd.f32 %v5399_v17, %v4833_v51 }
0x16e2   :  { %5485 = vmatpush3.msra.mxu1 %v4616_v11 }
0x16e3   :  { %v3264_v38 = vpop.permute.xlu0 %3263 }
0x16e4   :  { %v4607_v39 = vsel %vm4604_vm6, %v4603_v34, %v3264_v38 }
0x16e5   :  { %5486 = vmatprep.subr.mxu1 %v4607_v39 }
0x16e6   :  { %5487 = vmatpush3.msra.mxu1 %v4607_v39 }
0x16e7   :  { %5489 = vmatmul.mubr.msk.f32.vlgmr.msra.gmra.mxu1 %vm4631_vm7, %v8556_v19  ;;  %5491 = vmatprep.subr.mxu1 %v4831_v48  ;;  %v4830_v19 = vld [vmem:[%s8706_s10 + $0x110] sm:$0xff] }
0x16e8   :  { %5492 = vmatpush3.msra.mxu1 %v4831_v48 }
0x16e9   :  { %5493 = vmatprep.subr.mxu1 %v4830_v19 }
0x16ea   :  { %5494 = vmatpush3.msra.mxu1 %v4830_v19 }
0x16eb   :  { %5495 = vmatprep.subr.mxu1 %v4829_v9 }
0x16ec   :  { %5496 = vmatpush3.msra.mxu1 %v4829_v9 }
0x16ed   :  { %5497 = vmatprep.subr.mxu1 %v4828_v43 }
0x16ee   :  { %5498 = vmatpush3.msra.mxu1 %v4828_v43 }
0x16f0   :  { %v4629_v61 = vpop.permute.xlu0 %4628 }
0x16f1   :  { %v4711_v56 = vadd.f32 %v4710_v57, %v4629_v61  ;;  %v4713_v49 = vadd.f32 %v4712_v60, %v4629_v61 }
0x16f3   :  { %v4793_v0 = vmax.f32 %v4711_v56, 0.0  ;;  %v4794_v24 = vmax.f32 %v4713_v49, 0.0 }
0x16f5   :  { %4909 = vmatprep.mubr.f32.mxu0 %v4794_v24 }
0x16f6   :  { %4910 = vmatmul.mubr.f32.gmra.mxu0 %v4793_v0 }
0x17a7   :  { %v5490_v53 = vpop.f32.mrf.mxu1 }
0x17a8   :  { %v4787_v54 = vadd.f32 %v5490_v53, %v4629_v61 }
0x17a9   :  { %v4781_v33 = vpop.f32.mrf.mxu1 }
0x17aa   :  { %v4782_v42 = vadd.f32 %v4781_v33, %v4624_v6  ;;  %v4795_v58 = vmax.f32 %v4787_v54, 0.0 }
0x17ac   :  { %v4792_v14 = vmax.f32 %v4782_v42, 0.0 }
0x17ae   :  { %5499 = vmatprep.mubr.msk.f32.mxu1 %vm1364_vm2, %v4792_v14 }
0x17af   :  { %5500 = vmatmul.mubr.msk.f32.vlgmr.msra.gmra.mxu1 %vm1364_vm2, %v4795_v58 }
0x17b6   :  { %v5400_v13 = vpop.f32.mrf.mxu0 }
0x17b8   :  { %v5401_v63 = vpop.f32.mrf.mxu0 }
0x17b9   :  { %v5402_v7 = vadd.f32 %v5401_v63, %v5400_v13 }
0x17bb   :  { %v4912_v46 = vadd.f32 %v5402_v7, %v4833_v51 }
0x186f   :  { %v5501_v1 = vpop.f32.mrf.mxu1 }
0x1870   :  { %v4987_v12 = vadd.f32 %v5501_v1, %v4912_v46 }
0x1871   :  { %v4981_v35 = vpop.f32.mrf.mxu1 }
0x1872   :  { %4993 = vst.msk [vmem:[%s8708_s12 + $0x8] sm:$0x3] %vm4992_vm8, %v4987_v12  ;;  %v4982_v30 = vadd.f32 %v4981_v35, %v4907_v44 }
0x1874   :  { %4991 = vst.msk [vmem:[%s8708_s12] sm:$0xff] %vm4990_vm9, %v4982_v30 }
0x1875   :  { %4998 = vsyncpa [#allocation4], 1 }
0x1876   :  { %4999 = vsyncpa [#allocation6], 1 }
0x1877   :  { %5000 = vsyncpa [#allocation9], 1 }

</bundles_post_ra>
